<compile_context>
chip_gen: v5e
topology: v5e:2x2
jax: 0.10.0
libtpu: 0.0.40
codegen_flags: <defaults>
</compile_context>

<pallas_src>
import functools

import jax
import jax.numpy as jnp
from jax import lax
from jax.experimental import pallas as pl
from jax.experimental.pallas import tpu as pltpu

EPS = 1e-5
EXPANSION = 4


# --------------------------- VMEM limit (per-chip) -------------------------- #

def _vmem_limit_bytes():
    """Generation-aware scoped-VMEM limit (~96 MiB on v5e/v6e, ~48 MiB on v7x)."""
    try:
        info = pltpu.get_tpu_info()
        cap = getattr(info, "vmem_capacity_bytes", None) or getattr(info, "vmem_bytes", None)
        if cap:
            return int(cap) * 3 // 4
    except Exception:
        pass
    return 48 * 1024 * 1024  # safe on every current generation


_VMEM_LIMIT = _vmem_limit_bytes()


# ----------------------------- Pallas kernels ------------------------------ #

def _matmul_shift_kernel(a_ref, w_ref, shift_ref, o_ref, *, relu):
    # (tm, K) @ (K, tn) on the MXU (bf16 in, f32 acc), + folded-BN shift (+ReLU).
    acc = jnp.dot(a_ref[...], w_ref[...], preferred_element_type=jnp.float32)
    out = acc + shift_ref[...]
    if relu:
        out = jnp.maximum(out, 0.0)
    o_ref[...] = out.astype(o_ref.dtype)


def _conv3_identity_kernel(a_ref, w_ref, shift_ref, res_ref, o_ref):
    # Final 1x1 conv + BN + identity residual + ReLU.  Epilogue kept minimal
    # (shift add + relu + cast) so the VALU slot never binds on v5e.
    acc = jnp.dot(a_ref[...], w_ref[...], preferred_element_type=jnp.float32)
    out = acc + shift_ref[...] + res_ref[...].astype(jnp.float32)
    o_ref[...] = jnp.maximum(out, 0.0).astype(o_ref.dtype)


def _conv3_proj_kernel(a_ref, w_ref, xs_ref, wsc_ref, shift_ref, o_ref):
    # Final 1x1 conv + BN + projection-shortcut (second matmul, fused) + ReLU.
    acc = jnp.dot(a_ref[...], w_ref[...], preferred_element_type=jnp.float32)
    acc = acc + jnp.dot(xs_ref[...], wsc_ref[...], preferred_element_type=jnp.float32)
    out = acc + shift_ref[...]
    o_ref[...] = jnp.maximum(out, 0.0).astype(o_ref.dtype)


def _conv3x3_shift_relu_kernel(x_ref, w_ref, shift_ref, o_ref, *, stride, ho, wo):
    # 3x3 conv (pad=1, stride) as 9 accumulating matmuls over a space-to-depth
    # (stride-parity) input tile.  nbb images per step so M = nbb*ho*wo fills
    # the MXU; cout is tiled by the grid so per-tap copies stay bounded.
    s = stride
    nbb = x_ref.shape[1]
    cin = x_ref.shape[-1]
    tco = w_ref.shape[-1]
    acc = jnp.zeros((nbb * ho * wo, tco), jnp.float32)
    for dh in range(3):
        for dw in range(3):
            par = (dh % s) * s + (dw % s)
            patch = x_ref[par, :, pl.ds(dh // s, ho), pl.ds(dw // s, wo), :]
            acc = acc + jnp.dot(patch.reshape(nbb * ho * wo, cin),
                                w_ref[dh * 3 + dw],
                                preferred_element_type=jnp.float32)
    out = jnp.maximum(acc + shift_ref[...], 0.0)
    o_ref[...] = out.reshape(nbb, ho, wo, tco).astype(o_ref.dtype)


# ------------------------------ tiling helpers ------------------------------ #

def _pick_tn(n):
    # Keep the N tile a multiple of 128 (lane / MXU native on v6e/v7x: 256);
    # cdiv + masked edge blocks handle ragged N, so no divisor hunting. 384 is
    # intentionally excluded (splits into a 256 + half-utilized 128 pass).
    return n if n <= 512 else 512


def _pick_matmul_tiles(m, k_total, n, *, out_bytes=2, mn_extra_bytes=0):
    """Pick (tm, tn) so the double-buffered working set fits the VMEM limit."""
    tn = _pick_tn(n)
    tm = min(m, 1024)

    def vmem(tm_):
        return 2 * (tm_ * k_total * 2            # row operand blocks (bf16)
                    + k_total * tn * 2 + tn * 4  # weight blocks + f32 shift
                    + tm_ * tn * (out_bytes + mn_extra_bytes))

    while tm > 128 and vmem(tm) > _VMEM_LIMIT // 2:
        tm //= 2
    return tm, tn


def _m_outer(gm, gn, row_bytes, col_bytes):
    # True  -> M outer axis: row operands resident, col operands re-read gm x.
    # False -> N outer axis: col operands resident, row operands re-read gn x.
    return row_bytes + gm * col_bytes <= col_bytes + gn * row_bytes


# ------------------------------ kernel wrappers ----------------------------- #

def matmul_shift(a, w, shift, *, relu, out_dtype=jnp.bfloat16):
    """1x1 conv as channel matmul with fused (folded-BN) shift and optional ReLU."""
    M, K = a.shape
    N = w.shape[1]
    out_bytes = jnp.dtype(out_dtype).itemsize
    tm, tn = _pick_matmul_tiles(M, K, N, out_bytes=out_bytes)
    gm, gn = pl.cdiv(M, tm), pl.cdiv(N, tn)
    row_bytes = a.size * a.dtype.itemsize
    col_bytes = w.size * w.dtype.itemsize

    if _m_outer(gm, gn, row_bytes, col_bytes):
        grid = (gm, gn)
        a_map = lambda i, j: (i, 0)
        w_map = lambda i, j: (0, j)
        o_map = lambda i, j: (i, j)
    else:  # weight-resident: keep the (K, tn) tile in VMEM across all M tiles
        grid = (gn, gm)
        a_map = lambda j, i: (i, 0)
        w_map = lambda j, i: (0, j)
        o_map = lambda j, i: (i, j)

    # Deepen the activation pipeline on low-arithmetic-intensity (small K)
    # layers where the DMA would otherwise be exposed behind a short MXU burst.
    if K <= 128 and gm >= 4:
        a_spec = pl.BlockSpec((tm, K), a_map, pipeline_mode=pl.Buffered(3))
    else:
        a_spec = pl.BlockSpec((tm, K), a_map)

    shift2 = shift.reshape(1, N).astype(jnp.float32)
    cost = pl.CostEstimate(
        flops=2 * M * N * K, transcendentals=0,
        bytes_accessed=row_bytes + col_bytes + M * N * out_bytes)
    return pl.pallas_call(
        functools.partial(_matmul_shift_kernel, relu=relu),
        out_shape=jax.ShapeDtypeStruct((M, N), out_dtype),
        grid=grid,
        in_specs=[a_spec,
                  pl.BlockSpec((K, tn), w_map),
                  pl.BlockSpec((1, tn), w_map)],
        out_specs=pl.BlockSpec((tm, tn), o_map),
        compiler_params=pltpu.CompilerParams(
            dimension_semantics=("parallel", "parallel"),
            vmem_limit_bytes=_VMEM_LIMIT),
        cost_estimate=cost,
    )(a, w, shift2)


def conv3_fused(a, w, shift, *, res=None, xs=None, wsc=None, shift_sc=None,
                out_dtype=jnp.bfloat16):
    """Final 1x1 conv + BN + shortcut + ReLU, fully fused.

    Either `res` (identity shortcut, (M,N) bf16) or (`xs`, `wsc`, `shift_sc`)
    (projection shortcut: its matmul runs inside this same kernel) is given.
    """
    M, Kp = a.shape
    N = w.shape[1]
    proj = xs is not None
    Kx = xs.shape[1] if proj else 0
    shift2 = (shift + shift_sc if proj else shift).reshape(1, N).astype(jnp.float32)

    out_bytes = jnp.dtype(out_dtype).itemsize
    tm, tn = _pick_matmul_tiles(M, Kp + Kx, N, out_bytes=out_bytes,
                                mn_extra_bytes=0 if proj else 2)
    gm, gn = pl.cdiv(M, tm), pl.cdiv(N, tn)

    row_bytes = a.size * a.dtype.itemsize + (xs.size * xs.dtype.itemsize if proj else 0)
    col_bytes = w.size * w.dtype.itemsize + (wsc.size * wsc.dtype.itemsize if proj else 0)

    if _m_outer(gm, gn, row_bytes, col_bytes):
        grid = (gm, gn)
        row_map = lambda i, j: (i, 0)
        col_map = lambda i, j: (0, j)
        mn_map = lambda i, j: (i, j)
    else:
        grid = (gn, gm)
        row_map = lambda j, i: (i, 0)
        col_map = lambda j, i: (0, j)
        mn_map = lambda j, i: (i, j)

    cost = pl.CostEstimate(
        flops=2 * M * N * (Kp + Kx), transcendentals=0,
        bytes_accessed=row_bytes + col_bytes + M * N * out_bytes
        + (0 if proj else M * N * 2))

    if proj:
        kernel = _conv3_proj_kernel
        in_specs = [pl.BlockSpec((tm, Kp), row_map),
                    pl.BlockSpec((Kp, tn), col_map),
                    pl.BlockSpec((tm, Kx), row_map),
                    pl.BlockSpec((Kx, tn), col_map),
                    pl.BlockSpec((1, tn), col_map)]
        args = (a, w, xs, wsc, shift2)
    else:
        kernel = _conv3_identity_kernel
        in_specs = [pl.BlockSpec((tm, Kp), row_map),
                    pl.BlockSpec((Kp, tn), col_map),
                    pl.BlockSpec((1, tn), col_map),
                    pl.BlockSpec((tm, tn), mn_map)]
        args = (a, w, shift2, res)

    return pl.pallas_call(
        kernel,
        out_shape=jax.ShapeDtypeStruct((M, N), out_dtype),
        grid=grid,
        in_specs=in_specs,
        out_specs=pl.BlockSpec((tm, tn), mn_map),
        compiler_params=pltpu.CompilerParams(
            dimension_semantics=("parallel", "parallel"),
            vmem_limit_bytes=_VMEM_LIMIT),
        cost_estimate=cost,
    )(*args)


def conv3x3_shift_relu(x_nhwc, w_stack, shift, stride):
    """3x3 conv (pad=1, stride) + folded-BN shift + ReLU.

    x_nhwc: (N, H, W, Cin) bf16; w_stack: (9, Cin, Cout) bf16 (scale-folded).
    """
    nb, h, w, cin = x_nhwc.shape
    cout = w_stack.shape[-1]
    s = stride
    ho = (h - 1) // s + 1
    wo = (w - 1) // s + 1
    hp, wp = h + 2, w + 2
    hp2 = pl.cdiv(hp, s) * s
    wp2 = pl.cdiv(wp, s) * s
    hh, wh = hp2 // s, wp2 // s

    # TODO(synk): have conv1 emit its output directly in this padded
    # space-to-depth layout via its out_spec index_map to remove this HBM pass.
    xp = jnp.pad(x_nhwc, ((0, 0), (1, 1 + hp2 - hp), (1, 1 + wp2 - wp), (0, 0)))
    # Parity-major space-to-depth: (s*s, nb, hh, wh, cin); all in-kernel window
    # slices become plain (contiguous-start) slices, no strided loads.
    xps = (xp.reshape(nb, hh, s, wh, s, cin)
             .transpose(2, 4, 0, 1, 3, 5)
             .reshape(s * s, nb, hh, wh, cin))

    # Several images per grid step so M = nbb*ho*wo >= ~256 (MXU fill), bounded
    # by the VMEM limit.
    nbb = max(1, min(nb, -(-256 // (ho * wo))))
    while nbb > 1 and 2 * (nbb * s * s * hh * wh * cin * 2) > _VMEM_LIMIT // 4:
        nbb -= 1
    # Second parallel grid axis over cout (v7x megacore + bounded weight/acc).
    tco = cout if cout <= 256 else 256
    grid = (pl.cdiv(nb, nbb), pl.cdiv(cout, tco))

    shift2 = shift.reshape(1, cout).astype(jnp.float32)
    cost = pl.CostEstimate(
        flops=2 * nb * ho * wo * 9 * cin * cout, transcendentals=0,
        bytes_accessed=xps.size * 2 + w_stack.size * 2 + nb * ho * wo * cout * 2)
    out = pl.pallas_call(
        functools.partial(_conv3x3_shift_relu_kernel, stride=s, ho=ho, wo=wo),
        out_shape=jax.ShapeDtypeStruct((nb, ho, wo, cout), jnp.bfloat16),
        grid=grid,
        in_specs=[
            pl.BlockSpec((s * s, nbb, hh, wh, cin), lambda b, c: (0, b, 0, 0, 0)),
            pl.BlockSpec((9, cin, tco), lambda b, c: (0, 0, c)),
            pl.BlockSpec((1, tco), lambda b, c: (0, c)),
        ],
        out_specs=pl.BlockSpec((nbb, ho, wo, tco), lambda b, c: (b, 0, 0, c)),
        compiler_params=pltpu.CompilerParams(
            dimension_semantics=("parallel", "parallel"),
            vmem_limit_bytes=_VMEM_LIMIT),
        cost_estimate=cost,
    )(xps, w_stack, shift2)
    return out, ho, wo


# ------------------------------- glue (JAX) -------------------------------- #

def fold_bn(bn):
    gamma, beta, mean, var = bn
    scale = gamma / jnp.sqrt(var + EPS)
    shift = beta - mean * scale
    return scale, shift


def bottleneck_forward(x_nchw, params, *, stride):
    nb = x_nchw.shape[0]
    cin = x_nchw.shape[1]
    planes = params["conv1_w"].shape[0]
    cout = EXPANSION * planes

    # Cast to bf16 fused with the NHWC transpose (half the transpose bytes).
    x_bf = jnp.transpose(x_nchw.astype(jnp.bfloat16), (0, 2, 3, 1))  # NHWC bf16
    _, h, w, _ = x_bf.shape

    # conv1 (1x1) + bn1 + relu   (BN scale folded into weight columns)
    s1, b1 = fold_bn(params["bn1"])
    w1 = (params["conv1_w"].reshape(planes, cin).T * s1[None, :]).astype(jnp.bfloat16)
    # TODO(synk): for planes < 128 this store is lane-sparse; fusing conv1 into
    # the 3x3 kernel would keep the narrow intermediate VMEM-resident.
    o1 = matmul_shift(x_bf.reshape(-1, cin), w1, b1, relu=True)
    o1 = o1.reshape(nb, h, w, planes)                  # bf16

    # conv2 (3x3, stride, pad=1) + bn2 + relu   (fused, no HBM im2col)
    s2, b2 = fold_bn(params["bn2"])
    w2 = jnp.transpose(params["conv2_w"], (2, 3, 1, 0)).reshape(9, planes, planes)
    w2 = (w2 * s2[None, None, :]).astype(jnp.bfloat16)
    o2, ho, wo = conv3x3_shift_relu(o1, w2, b2, stride)  # bf16 (nb, ho, wo, planes)

    # conv3 (1x1) + bn3 + shortcut + relu — fully fused in one kernel.
    s3, b3 = fold_bn(params["bn3"])
    w3 = (params["conv3_w"].reshape(cout, planes).T * s3[None, :]).astype(jnp.bfloat16)
    if "sc_conv_w" in params:
        # TODO(synk): the stride-s gather of x could be folded into the kernel's
        # index_map instead of an XLA strided slice.
        xs = x_bf[:, ::stride, ::stride, :].reshape(-1, cin)
        ssc, bsc = fold_bn(params["sc_bn"])
        wsc = (params["sc_conv_w"].reshape(cout, cin).T * ssc[None, :]).astype(jnp.bfloat16)
        out = conv3_fused(o2.reshape(-1, planes), w3, b3,
                          xs=xs, wsc=wsc, shift_sc=bsc)
    else:
        res = x_bf.reshape(-1, cin)                    # identity (cin == cout, stride == 1)
        out = conv3_fused(o2.reshape(-1, planes), w3, b3, res=res)

    out = out.reshape(nb, ho, wo, cout)
    # Transpose in bf16 (half the bytes); restore the module's f32 output dtype.
    # A following block would consume the bf16 NHWC tensor directly.
    return jnp.transpose(out, (0, 3, 1, 2)).astype(jnp.float32)   # -> NCHW f32


# ----------------------- deterministic parameter init ---------------------- #

def _bn_init(key, c):
    k1, k2, k3, k4 = jax.random.split(key, 4)
    gamma = 1.0 + 0.1 * jax.random.normal(k1, (c,), jnp.float32)
    beta = 0.1 * jax.random.normal(k2, (c,), jnp.float32)
    mean = 0.1 * jax.random.normal(k3, (c,), jnp.float32)
    var = 0.5 + 0.25 * jax.random.uniform(k4, (c,), jnp.float32)
    return (gamma, beta, mean, var)


def init_params(key, in_planes, planes, stride):
    cout = EXPANSION * planes
    ks = jax.random.split(key, 8)
    params = {
        "conv1_w": 0.1 * jax.random.normal(ks[0], (planes, in_planes, 1, 1), jnp.float32),
        "bn1": _bn_init(ks[1], planes),
        "conv2_w": 0.1 * jax.random.normal(ks[2], (planes, planes, 3, 3), jnp.float32),
        "bn2": _bn_init(ks[3], planes),
        "conv3_w": 0.1 * jax.random.normal(ks[4], (cout, planes, 1, 1), jnp.float32),
        "bn3": _bn_init(ks[5], cout),
    }
    if stride != 1 or in_planes != cout:
        params["sc_conv_w"] = 0.1 * jax.random.normal(ks[6], (cout, in_planes, 1, 1), jnp.float32)
        params["sc_bn"] = _bn_init(ks[7], cout)
    return params


# ------------------------------ pure-JAX ref -------------------------------- #

def _ref_conv(x, w, stride=1, padding=0):
    return lax.conv_general_dilated(
        x, w, (stride, stride), [(padding, padding), (padding, padding)],
        dimension_numbers=("NCHW", "OIHW", "NCHW"))


def _ref_bn(x, bn):
    g, b, m, v = bn
    g = g[None, :, None, None]
    b = b[None, :, None, None]
    m = m[None, :, None, None]
    v = v[None, :, None, None]
    return (x - m) / jnp.sqrt(v + EPS) * g + b


def bottleneck_ref(x, params, stride):
    out = jax.nn.relu(_ref_bn(_ref_conv(x, params["conv1_w"]), params["bn1"]))
    out = jax.nn.relu(_ref_bn(_ref_conv(out, params["conv2_w"], stride, 1), params["bn2"]))
    out = _ref_bn(_ref_conv(out, params["conv3_w"]), params["bn3"])
    if "sc_conv_w" in params:
        sc = _ref_bn(_ref_conv(x, params["sc_conv_w"], stride, 0), params["sc_bn"])
    else:
        sc = x
    return jax.nn.relu(out + sc)


# ---------------------------------- main ------------------------------------ #

if __name__ == "__main__":
    key = jax.random.PRNGKey(0)
    kx, kx2, kp1, kp2, kp3 = jax.random.split(key, 5)

    fwd = jax.jit(bottleneck_forward, static_argnames="stride")

    # Projection-shortcut configs (stride 1 and 2) on the spec shape.
    x = jax.random.normal(kx, (2, 4, 16, 16), jnp.float32)        # NCHW
    # Identity-shortcut config (in_planes == expansion*planes, stride 1);
    # larger spatial so the weight-resident grid order path is also exercised.
    x_id = jax.random.normal(kx2, (2, 16, 32, 32), jnp.float32)   # NCHW

    cases = [
        (x, init_params(kp1, 4, 4, 1), 1),
        (x, init_params(kp2, 4, 4, 2), 2),
        (x_id, init_params(kp3, 16, 4, 1), 1),
    ]

    ok = True
    for xi, params, stride in cases:
        out = jax.block_until_ready(fwd(xi, params, stride=stride))
        ref = jax.block_until_ready(bottleneck_ref(xi, params, stride))
        # bf16 activations/weights -> looser tolerance than a pure-fp32 path.
        if out.shape != ref.shape or not jnp.allclose(out, ref, atol=5e-2, rtol=5e-2):
            ok = False

    if ok:
        print("KERNEL_OK")
    else:
        print("KERNEL_MISMATCH")
</pallas_src>

<mosaic_0001>
module attributes {stable_mosaic.version = 11 : i64} {
  func.func @_matmul_shift_kernel(%arg0: i32, %arg1: i32, %arg2: memref<512x4xbf16, #tpu.memory_space<vmem>>, %arg3: memref<4x4xbf16, #tpu.memory_space<vmem>>, %arg4: memref<1x4xf32, #tpu.memory_space<vmem>>, %arg5: memref<512x4xbf16, #tpu.memory_space<vmem>>) attributes {dimension_semantics = [#tpu.dimension_semantics<parallel>, #tpu.dimension_semantics<parallel>], iteration_bounds = array<i64: 1, 1>, scalar_prefetch = 0 : i64, scratch_operands = 0 : i64, tpu.core_type = #tpu.core_type<tc>, window_params = [{transform_indices = @transform_0, window_bounds = array<i64: 512, 4>}, {transform_indices = @transform_1, window_bounds = array<i64: 4, 4>}, {transform_indices = @transform_2, window_bounds = array<i64: 1, 4>}, {transform_indices = @transform_3, window_bounds = array<i64: 512, 4>}]} {
    %c0 = arith.constant 0 : index
    %c0_0 = arith.constant 0 : index
    %0 = vector.load %arg2[%c0, %c0_0] : memref<512x4xbf16, #tpu.memory_space<vmem>>, vector<512x4xbf16>
    %c0_1 = arith.constant 0 : index
    %c0_2 = arith.constant 0 : index
    %1 = vector.load %arg3[%c0_1, %c0_2] : memref<4x4xbf16, #tpu.memory_space<vmem>>, vector<4x4xbf16>
    %cst = arith.constant dense<0.000000e+00> : vector<512x4xf32>
    %2 = tpu.matmul %0, %1, %cst {dimension_numbers = #tpu.dot_dimension_numbers<[1], [0], [0], [1], [0, 0, 1, 1], [], []>} : vector<512x4xbf16>, vector<4x4xbf16>, vector<512x4xf32> -> vector<512x4xf32>
    %c0_3 = arith.constant 0 : index
    %c0_4 = arith.constant 0 : index
    %3 = vector.load %arg4[%c0_3, %c0_4] : memref<1x4xf32, #tpu.memory_space<vmem>>, vector<1x4xf32>
    %4 = vector.broadcast %3 : vector<1x4xf32> to vector<512x4xf32>
    %5 = arith.addf %2, %4 : vector<512x4xf32>
    %cst_5 = arith.constant 0.000000e+00 : f32
    %6 = vector.broadcast %cst_5 : f32 to vector<512x4xf32>
    %7 = arith.maximumf %5, %6 : vector<512x4xf32>
    %8 = arith.truncf %7 : vector<512x4xf32> to vector<512x4xbf16>
    %c0_6 = arith.constant 0 : index
    %c0_7 = arith.constant 0 : index
    %9 = vector.load %arg5[%c0_6, %c0_7] : memref<512x4xbf16, #tpu.memory_space<vmem>>, vector<512x4xbf16>
    tpu.vector_store %arg5[%c0_6, %c0_7], %8 {strides = array<i32>} : memref<512x4xbf16, #tpu.memory_space<vmem>>, vector<512x4xbf16>,
    return
  }
  func.func @transform_0(%arg0: i32, %arg1: i32) -> (i32, i32) {
    %c0_i32 = arith.constant 0 : i32
    %c0_i32_0 = arith.constant 0 : i32
    return %arg0, %c0_i32 : i32, i32
  }
  func.func @transform_1(%arg0: i32, %arg1: i32) -> (i32, i32) {
    %c0_i32 = arith.constant 0 : i32
    %c0_i32_0 = arith.constant 0 : i32
    return %c0_i32, %arg1 : i32, i32
  }
  func.func @transform_2(%arg0: i32, %arg1: i32) -> (i32, i32) {
    %c0_i32 = arith.constant 0 : i32
    %c0_i32_0 = arith.constant 0 : i32
    return %c0_i32, %arg1 : i32, i32
  }
  func.func @transform_3(%arg0: i32, %arg1: i32) -> (i32, i32) {
    %c0_i32 = arith.constant 0 : i32
    return %arg0, %arg1 : i32, i32
  }
}

module attributes {stable_mosaic.version = 11 : i64} {
  func.func @_conv3x3_shift_relu_kernel(%arg0: i32, %arg1: i32, %arg2: memref<1x1x18x18x4xbf16, #tpu.memory_space<vmem>>, %arg3: memref<9x4x4xbf16, #tpu.memory_space<vmem>>, %arg4: memref<1x4xf32, #tpu.memory_space<vmem>>, %arg5: memref<1x16x16x4xbf16, #tpu.memory_space<vmem>>) attributes {dimension_semantics = [#tpu.dimension_semantics<parallel>, #tpu.dimension_semantics<parallel>], iteration_bounds = array<i64: 2, 1>, scalar_prefetch = 0 : i64, scratch_operands = 0 : i64, tpu.core_type = #tpu.core_type<tc>, window_params = [{transform_indices = @transform_0, window_bounds = array<i64: 1, 1, 18, 18, 4>}, {transform_indices = @transform_1, window_bounds = array<i64: 9, 4, 4>}, {transform_indices = @transform_2, window_bounds = array<i64: 1, 4>}, {transform_indices = @transform_3, window_bounds = array<i64: 1, 16, 16, 4>}]} {
    %cst = arith.constant 0.000000e+00 : f32
    %0 = vector.broadcast %cst : f32 to vector<256x4xf32>
    %c0 = arith.constant 0 : index
    %c0_0 = arith.constant 0 : index
    %c0_1 = arith.constant 0 : index
    %c0_2 = arith.constant 0 : index
    %c0_3 = arith.constant 0 : index
    %1 = vector.load %arg2[%c0, %c0_0, %c0_1, %c0_2, %c0_3] : memref<1x1x18x18x4xbf16, #tpu.memory_space<vmem>>, vector<1x1x16x16x4xbf16>
    %2 = vector.shape_cast %1 : vector<1x1x16x16x4xbf16> to vector<1x16x16x4xbf16>
    %3 = vector.shape_cast %2 : vector<1x16x16x4xbf16> to vector<256x4xbf16>
    %c0_4 = arith.constant 0 : index
    %c0_5 = arith.constant 0 : index
    %c0_6 = arith.constant 0 : index
    %4 = vector.load %arg3[%c0_4, %c0_5, %c0_6] : memref<9x4x4xbf16, #tpu.memory_space<vmem>>, vector<1x4x4xbf16>
    %5 = vector.shape_cast %4 : vector<1x4x4xbf16> to vector<4x4xbf16>
    %cst_7 = arith.constant dense<0.000000e+00> : vector<256x4xf32>
    %6 = tpu.matmul %3, %5, %cst_7 {dimension_numbers = #tpu.dot_dimension_numbers<[1], [0], [0], [1], [0, 0, 1, 1], [], []>} : vector<256x4xbf16>, vector<4x4xbf16>, vector<256x4xf32> -> vector<256x4xf32>
    %7 = arith.addf %0, %6 : vector<256x4xf32>
    %c0_8 = arith.constant 0 : index
    %c0_9 = arith.constant 0 : index
    %c0_10 = arith.constant 0 : index
    %c1 = arith.constant 1 : index
    %c0_11 = arith.constant 0 : index
    %8 = vector.load %arg2[%c0_8, %c0_9, %c0_10, %c1, %c0_11] : memref<1x1x18x18x4xbf16, #tpu.memory_space<vmem>>, vector<1x1x16x16x4xbf16>
    %9 = vector.shape_cast %8 : vector<1x1x16x16x4xbf16> to vector<1x16x16x4xbf16>
    %10 = vector.shape_cast %9 : vector<1x16x16x4xbf16> to vector<256x4xbf16>
    %c1_12 = arith.constant 1 : index
    %c0_13 = arith.constant 0 : index
    %c0_14 = arith.constant 0 : index
    %11 = vector.load %arg3[%c1_12, %c0_13, %c0_14] : memref<9x4x4xbf16, #tpu.memory_space<vmem>>, vector<1x4x4xbf16>
    %12 = vector.shape_cast %11 : vector<1x4x4xbf16> to vector<4x4xbf16>
    %cst_15 = arith.constant dense<0.000000e+00> : vector<256x4xf32>
    %13 = tpu.matmul %10, %12, %cst_15 {dimension_numbers = #tpu.dot_dimension_numbers<[1], [0], [0], [1], [0, 0, 1, 1], [], []>} : vector<256x4xbf16>, vector<4x4xbf16>, vector<256x4xf32> -> vector<256x4xf32>
    %14 = arith.addf %7, %13 : vector<256x4xf32>
    %c0_16 = arith.constant 0 : index
    %c0_17 = arith.constant 0 : index
    %c0_18 = arith.constant 0 : index
    %c2 = arith.constant 2 : index
    %c0_19 = arith.constant 0 : index
    %15 = vector.load %arg2[%c0_16, %c0_17, %c0_18, %c2, %c0_19] : memref<1x1x18x18x4xbf16, #tpu.memory_space<vmem>>, vector<1x1x16x16x4xbf16>
    %16 = vector.shape_cast %15 : vector<1x1x16x16x4xbf16> to vector<1x16x16x4xbf16>
    %17 = vector.shape_cast %16 : vector<1x16x16x4xbf16> to vector<256x4xbf16>
    %c2_20 = arith.constant 2 : index
    %c0_21 = arith.constant 0 : index
    %c0_22 = arith.constant 0 : index
    %18 = vector.load %arg3[%c2_20, %c0_21, %c0_22] : memref<9x4x4xbf16, #tpu.memory_space<vmem>>, vector<1x4x4xbf16>
    %19 = vector.shape_cast %18 : vector<1x4x4xbf16> to vector<4x4xbf16>
    %cst_23 = arith.constant dense<0.000000e+00> : vector<256x4xf32>
    %20 = tpu.matmul %17, %19, %cst_23 {dimension_numbers = #tpu.dot_dimension_numbers<[1], [0], [0], [1], [0, 0, 1, 1], [], []>} : vector<256x4xbf16>, vector<4x4xbf16>, vector<256x4xf32> -> vector<256x4xf32>
    %21 = arith.addf %14, %20 : vector<256x4xf32>
    %c0_24 = arith.constant 0 : index
    %c0_25 = arith.constant 0 : index
    %c1_26 = arith.constant 1 : index
    %c0_27 = arith.constant 0 : index
    %c0_28 = arith.constant 0 : index
    %22 = vector.load %arg2[%c0_24, %c0_25, %c1_26, %c0_27, %c0_28] : memref<1x1x18x18x4xbf16, #tpu.memory_space<vmem>>, vector<1x1x16x16x4xbf16>
    %23 = vector.shape_cast %22 : vector<1x1x16x16x4xbf16> to vector<1x16x16x4xbf16>
    %24 = vector.shape_cast %23 : vector<1x16x16x4xbf16> to vector<256x4xbf16>
    %c3 = arith.constant 3 : index
    %c0_29 = arith.constant 0 : index
    %c0_30 = arith.constant 0 : index
    %25 = vector.load %arg3[%c3, %c0_29, %c0_30] : memref<9x4x4xbf16, #tpu.memory_space<vmem>>, vector<1x4x4xbf16>
    %26 = vector.shape_cast %25 : vector<1x4x4xbf16> to vector<4x4xbf16>
    %cst_31 = arith.constant dense<0.000000e+00> : vector<256x4xf32>
    %27 = tpu.matmul %24, %26, %cst_31 {dimension_numbers = #tpu.dot_dimension_numbers<[1], [0], [0], [1], [0, 0, 1, 1], [], []>} : vector<256x4xbf16>, vector<4x4xbf16>, vector<256x4xf32> -> vector<256x4xf32>
    %28 = arith.addf %21, %27 : vector<256x4xf32>
    %c0_32 = arith.constant 0 : index
    %c0_33 = arith.constant 0 : index
    %c1_34 = arith.constant 1 : index
    %c1_35 = arith.constant 1 : index
    %c0_36 = arith.constant 0 : index
    %29 = vector.load %arg2[%c0_32, %c0_33, %c1_34, %c1_35, %c0_36] : memref<1x1x18x18x4xbf16, #tpu.memory_space<vmem>>, vector<1x1x16x16x4xbf16>
    %30 = vector.shape_cast %29 : vector<1x1x16x16x4xbf16> to vector<1x16x16x4xbf16>
    %31 = vector.shape_cast %30 : vector<1x16x16x4xbf16> to vector<256x4xbf16>
    %c4 = arith.constant 4 : index
    %c0_37 = arith.constant 0 : index
    %c0_38 = arith.constant 0 : index
    %32 = vector.load %arg3[%c4, %c0_37, %c0_38] : memref<9x4x4xbf16, #tpu.memory_space<vmem>>, vector<1x4x4xbf16>
    %33 = vector.shape_cast %32 : vector<1x4x4xbf16> to vector<4x4xbf16>
    %cst_39 = arith.constant dense<0.000000e+00> : vector<256x4xf32>
    %34 = tpu.matmul %31, %33, %cst_39 {dimension_numbers = #tpu.dot_dimension_numbers<[1], [0], [0], [1], [0, 0, 1, 1], [], []>} : vector<256x4xbf16>, vector<4x4xbf16>, vector<256x4xf32> -> vector<256x4xf32>
    %35 = arith.addf %28, %34 : vector<256x4xf32>
    %c0_40 = arith.constant 0 : index
    %c0_41 = arith.constant 0 : index
    %c1_42 = arith.constant 1 : index
    %c2_43 = arith.constant 2 : index
    %c0_44 = arith.constant 0 : index
    %36 = vector.load %arg2[%c0_40, %c0_41, %c1_42, %c2_43, %c0_44] : memref<1x1x18x18x4xbf16, #tpu.memory_space<vmem>>, vector<1x1x16x16x4xbf16>
    %37 = vector.shape_cast %36 : vector<1x1x16x16x4xbf16> to vector<1x16x16x4xbf16>
    %38 = vector.shape_cast %37 : vector<1x16x16x4xbf16> to vector<256x4xbf16>
    %c5 = arith.constant 5 : index
    %c0_45 = arith.constant 0 : index
    %c0_46 = arith.constant 0 : index
    %39 = vector.load %arg3[%c5, %c0_45, %c0_46] : memref<9x4x4xbf16, #tpu.memory_space<vmem>>, vector<1x4x4xbf16>
    %40 = vector.shape_cast %39 : vector<1x4x4xbf16> to vector<4x4xbf16>
    %cst_47 = arith.constant dense<0.000000e+00> : vector<256x4xf32>
    %41 = tpu.matmul %38, %40, %cst_47 {dimension_numbers = #tpu.dot_dimension_numbers<[1], [0], [0], [1], [0, 0, 1, 1], [], []>} : vector<256x4xbf16>, vector<4x4xbf16>, vector<256x4xf32> -> vector<256x4xf32>
    %42 = arith.addf %35, %41 : vector<256x4xf32>
    %c0_48 = arith.constant 0 : index
    %c0_49 = arith.constant 0 : index
    %c2_50 = arith.constant 2 : index
    %c0_51 = arith.constant 0 : index
    %c0_52 = arith.constant 0 : index
    %43 = vector.load %arg2[%c0_48, %c0_49, %c2_50, %c0_51, %c0_52] : memref<1x1x18x18x4xbf16, #tpu.memory_space<vmem>>, vector<1x1x16x16x4xbf16>
    %44 = vector.shape_cast %43 : vector<1x1x16x16x4xbf16> to vector<1x16x16x4xbf16>
    %45 = vector.shape_cast %44 : vector<1x16x16x4xbf16> to vector<256x4xbf16>
    %c6 = arith.constant 6 : index
    %c0_53 = arith.constant 0 : index
    %c0_54 = arith.constant 0 : index
    %46 = vector.load %arg3[%c6, %c0_53, %c0_54] : memref<9x4x4xbf16, #tpu.memory_space<vmem>>, vector<1x4x4xbf16>
    %47 = vector.shape_cast %46 : vector<1x4x4xbf16> to vector<4x4xbf16>
    %cst_55 = arith.constant dense<0.000000e+00> : vector<256x4xf32>
    %48 = tpu.matmul %45, %47, %cst_55 {dimension_numbers = #tpu.dot_dimension_numbers<[1], [0], [0], [1], [0, 0, 1, 1], [], []>} : vector<256x4xbf16>, vector<4x4xbf16>, vector<256x4xf32> -> vector<256x4xf32>
    %49 = arith.addf %42, %48 : vector<256x4xf32>
    %c0_56 = arith.constant 0 : index
    %c0_57 = arith.constant 0 : index
    %c2_58 = arith.constant 2 : index
    %c1_59 = arith.constant 1 : index
    %c0_60 = arith.constant 0 : index
    %50 = vector.load %arg2[%c0_56, %c0_57, %c2_58, %c1_59, %c0_60] : memref<1x1x18x18x4xbf16, #tpu.memory_space<vmem>>, vector<1x1x16x16x4xbf16>
    %51 = vector.shape_cast %50 : vector<1x1x16x16x4xbf16> to vector<1x16x16x4xbf16>
    %52 = vector.shape_cast %51 : vector<1x16x16x4xbf16> to vector<256x4xbf16>
    %c7 = arith.constant 7 : index
    %c0_61 = arith.constant 0 : index
    %c0_62 = arith.constant 0 : index
    %53 = vector.load %arg3[%c7, %c0_61, %c0_62] : memref<9x4x4xbf16, #tpu.memory_space<vmem>>, vector<1x4x4xbf16>
    %54 = vector.shape_cast %53 : vector<1x4x4xbf16> to vector<4x4xbf16>
    %cst_63 = arith.constant dense<0.000000e+00> : vector<256x4xf32>
    %55 = tpu.matmul %52, %54, %cst_63 {dimension_numbers = #tpu.dot_dimension_numbers<[1], [0], [0], [1], [0, 0, 1, 1], [], []>} : vector<256x4xbf16>, vector<4x4xbf16>, vector<256x4xf32> -> vector<256x4xf32>
    %56 = arith.addf %49, %55 : vector<256x4xf32>
    %c0_64 = arith.constant 0 : index
    %c0_65 = arith.constant 0 : index
    %c2_66 = arith.constant 2 : index
    %c2_67 = arith.constant 2 : index
    %c0_68 = arith.constant 0 : index
    %57 = vector.load %arg2[%c0_64, %c0_65, %c2_66, %c2_67, %c0_68] : memref<1x1x18x18x4xbf16, #tpu.memory_space<vmem>>, vector<1x1x16x16x4xbf16>
    %58 = vector.shape_cast %57 : vector<1x1x16x16x4xbf16> to vector<1x16x16x4xbf16>
    %59 = vector.shape_cast %58 : vector<1x16x16x4xbf16> to vector<256x4xbf16>
    %c8 = arith.constant 8 : index
    %c0_69 = arith.constant 0 : index
    %c0_70 = arith.constant 0 : index
    %60 = vector.load %arg3[%c8, %c0_69, %c0_70] : memref<9x4x4xbf16, #tpu.memory_space<vmem>>, vector<1x4x4xbf16>
    %61 = vector.shape_cast %60 : vector<1x4x4xbf16> to vector<4x4xbf16>
    %cst_71 = arith.constant dense<0.000000e+00> : vector<256x4xf32>
    %62 = tpu.matmul %59, %61, %cst_71 {dimension_numbers = #tpu.dot_dimension_numbers<[1], [0], [0], [1], [0, 0, 1, 1], [], []>} : vector<256x4xbf16>, vector<4x4xbf16>, vector<256x4xf32> -> vector<256x4xf32>
    %63 = arith.addf %56, %62 : vector<256x4xf32>
    %c0_72 = arith.constant 0 : index
    %c0_73 = arith.constant 0 : index
    %64 = vector.load %arg4[%c0_72, %c0_73] : memref<1x4xf32, #tpu.memory_space<vmem>>, vector<1x4xf32>
    %65 = vector.broadcast %64 : vector<1x4xf32> to vector<256x4xf32>
    %66 = arith.addf %63, %65 : vector<256x4xf32>
    %cst_74 = arith.constant 0.000000e+00 : f32
    %67 = vector.broadcast %cst_74 : f32 to vector<256x4xf32>
    %68 = arith.maximumf %66, %67 : vector<256x4xf32>
    %69 = vector.shape_cast %68 : vector<256x4xf32> to vector<1x16x16x4xf32>
    %70 = arith.truncf %69 : vector<1x16x16x4xf32> to vector<1x16x16x4xbf16>
    %c0_75 = arith.constant 0 : index
    %c0_76 = arith.constant 0 : index
    %c0_77 = arith.constant 0 : index
    %c0_78 = arith.constant 0 : index
    %71 = vector.load %arg5[%c0_75, %c0_76, %c0_77, %c0_78] : memref<1x16x16x4xbf16, #tpu.memory_space<vmem>>, vector<1x16x16x4xbf16>
    tpu.vector_store %arg5[%c0_75, %c0_76, %c0_77, %c0_78], %70 {strides = array<i32>} : memref<1x16x16x4xbf16, #tpu.memory_space<vmem>>, vector<1x16x16x4xbf16>,
    return
  }
  func.func @transform_0(%arg0: i32, %arg1: i32) -> (i32, i32, i32, i32, i32) {
    %c0_i32 = arith.constant 0 : i32
    %c0_i32_0 = arith.constant 0 : i32
    %c0_i32_1 = arith.constant 0 : i32
    %c0_i32_2 = arith.constant 0 : i32
    %c0_i32_3 = arith.constant 0 : i32
    return %c0_i32, %arg0, %c0_i32_0, %c0_i32_1, %c0_i32_2 : i32, i32, i32, i32, i32
  }
  func.func @transform_1(%arg0: i32, %arg1: i32) -> (i32, i32, i32) {
    %c0_i32 = arith.constant 0 : i32
    %c0_i32_0 = arith.constant 0 : i32
    %c0_i32_1 = arith.constant 0 : i32
    return %c0_i32, %c0_i32_0, %arg1 : i32, i32, i32
  }
  func.func @transform_2(%arg0: i32, %arg1: i32) -> (i32, i32) {
    %c0_i32 = arith.constant 0 : i32
    %c0_i32_0 = arith.constant 0 : i32
    return %c0_i32, %arg1 : i32, i32
  }
  func.func @transform_3(%arg0: i32, %arg1: i32) -> (i32, i32, i32, i32) {
    %c0_i32 = arith.constant 0 : i32
    %c0_i32_0 = arith.constant 0 : i32
    %c0_i32_1 = arith.constant 0 : i32
    return %arg0, %c0_i32, %c0_i32_0, %arg1 : i32, i32, i32, i32
  }
}

module attributes {stable_mosaic.version = 11 : i64} {
  func.func @_conv3_proj_kernel(%arg0: i32, %arg1: i32, %arg2: memref<512x4xbf16, #tpu.memory_space<vmem>>, %arg3: memref<4x16xbf16, #tpu.memory_space<vmem>>, %arg4: memref<512x4xbf16, #tpu.memory_space<vmem>>, %arg5: memref<4x16xbf16, #tpu.memory_space<vmem>>, %arg6: memref<1x16xf32, #tpu.memory_space<vmem>>, %arg7: memref<512x16xbf16, #tpu.memory_space<vmem>>) attributes {dimension_semantics = [#tpu.dimension_semantics<parallel>, #tpu.dimension_semantics<parallel>], iteration_bounds = array<i64: 1, 1>, scalar_prefetch = 0 : i64, scratch_operands = 0 : i64, tpu.core_type = #tpu.core_type<tc>, window_params = [{transform_indices = @transform_0, window_bounds = array<i64: 512, 4>}, {transform_indices = @transform_1, window_bounds = array<i64: 4, 16>}, {transform_indices = @transform_2, window_bounds = array<i64: 512, 4>}, {transform_indices = @transform_3, window_bounds = array<i64: 4, 16>}, {transform_indices = @transform_4, window_bounds = array<i64: 1, 16>}, {transform_indices = @transform_5, window_bounds = array<i64: 512, 16>}]} {
    %c0 = arith.constant 0 : index
    %c0_0 = arith.constant 0 : index
    %0 = vector.load %arg2[%c0, %c0_0] : memref<512x4xbf16, #tpu.memory_space<vmem>>, vector<512x4xbf16>
    %c0_1 = arith.constant 0 : index
    %c0_2 = arith.constant 0 : index
    %1 = vector.load %arg3[%c0_1, %c0_2] : memref<4x16xbf16, #tpu.memory_space<vmem>>, vector<4x16xbf16>
    %cst = arith.constant dense<0.000000e+00> : vector<512x16xf32>
    %2 = tpu.matmul %0, %1, %cst {dimension_numbers = #tpu.dot_dimension_numbers<[1], [0], [0], [1], [0, 0, 1, 1], [], []>} : vector<512x4xbf16>, vector<4x16xbf16>, vector<512x16xf32> -> vector<512x16xf32>
    %c0_3 = arith.constant 0 : index
    %c0_4 = arith.constant 0 : index
    %3 = vector.load %arg4[%c0_3, %c0_4] : memref<512x4xbf16, #tpu.memory_space<vmem>>, vector<512x4xbf16>
    %c0_5 = arith.constant 0 : index
    %c0_6 = arith.constant 0 : index
    %4 = vector.load %arg5[%c0_5, %c0_6] : memref<4x16xbf16, #tpu.memory_space<vmem>>, vector<4x16xbf16>
    %cst_7 = arith.constant dense<0.000000e+00> : vector<512x16xf32>
    %5 = tpu.matmul %3, %4, %cst_7 {dimension_numbers = #tpu.dot_dimension_numbers<[1], [0], [0], [1], [0, 0, 1, 1], [], []>} : vector<512x4xbf16>, vector<4x16xbf16>, vector<512x16xf32> -> vector<512x16xf32>
    %6 = arith.addf %2, %5 : vector<512x16xf32>
    %c0_8 = arith.constant 0 : index
    %c0_9 = arith.constant 0 : index
    %7 = vector.load %arg6[%c0_8, %c0_9] : memref<1x16xf32, #tpu.memory_space<vmem>>, vector<1x16xf32>
    %8 = vector.broadcast %7 : vector<1x16xf32> to vector<512x16xf32>
    %9 = arith.addf %6, %8 : vector<512x16xf32>
    %cst_10 = arith.constant 0.000000e+00 : f32
    %10 = vector.broadcast %cst_10 : f32 to vector<512x16xf32>
    %11 = arith.maximumf %9, %10 : vector<512x16xf32>
    %12 = arith.truncf %11 : vector<512x16xf32> to vector<512x16xbf16>
    %c0_11 = arith.constant 0 : index
    %c0_12 = arith.constant 0 : index
    %13 = vector.load %arg7[%c0_11, %c0_12] : memref<512x16xbf16, #tpu.memory_space<vmem>>, vector<512x16xbf16>
    tpu.vector_store %arg7[%c0_11, %c0_12], %12 {strides = array<i32>} : memref<512x16xbf16, #tpu.memory_space<vmem>>, vector<512x16xbf16>,
    return
  }
  func.func @transform_0(%arg0: i32, %arg1: i32) -> (i32, i32) {
    %c0_i32 = arith.constant 0 : i32
    %c0_i32_0 = arith.constant 0 : i32
    return %arg0, %c0_i32 : i32, i32
  }
  func.func @transform_1(%arg0: i32, %arg1: i32) -> (i32, i32) {
    %c0_i32 = arith.constant 0 : i32
    %c0_i32_0 = arith.constant 0 : i32
    return %c0_i32, %arg1 : i32, i32
  }
  func.func @transform_2(%arg0: i32, %arg1: i32) -> (i32, i32) {
    %c0_i32 = arith.constant 0 : i32
    %c0_i32_0 = arith.constant 0 : i32
    return %arg0, %c0_i32 : i32, i32
  }
  func.func @transform_3(%arg0: i32, %arg1: i32) -> (i32, i32) {
    %c0_i32 = arith.constant 0 : i32
    %c0_i32_0 = arith.constant 0 : i32
    return %c0_i32, %arg1 : i32, i32
  }
  func.func @transform_4(%arg0: i32, %arg1: i32) -> (i32, i32) {
    %c0_i32 = arith.constant 0 : i32
    %c0_i32_0 = arith.constant 0 : i32
    return %c0_i32, %arg1 : i32, i32
  }
  func.func @transform_5(%arg0: i32, %arg1: i32) -> (i32, i32) {
    %c0_i32 = arith.constant 0 : i32
    return %arg0, %arg1 : i32, i32
  }
}

</mosaic_0001>

<bundles_post_ra>
// kernel: bottleneck_forward.3
= control target key start
LH: loop header
LB: loop body
LE: loop exit
PB: predicated region body
PF: predicated region fallthrough
CT: control target
= control target key end

     0   :  { %vm341_vm0 = vcmask 1041408   ;;  %vm244_vm1 = vcmask 31744   ;;  %vm642_vm2 = vcmask 27648   ;;  %s1383_s1 = inlined_call_operand.vmem [shape: bf16[4,4], index: 1, kind: input, shape index: {}]   ;;  %s1384_s0 = inlined_call_operand.vmem [shape: bf16[512,4], index: 0, kind: input, shape index: {}]   ;;  %s1385_s2 = inlined_call_operand.vmem [shape: f32[1,4], index: 2, kind: input, shape index: {}]   ;;  %s1386_s3 = inlined_call_operand.vmem [shape: bf16[512,4], index: 3, kind: output, shape index: {}]  }
   0x1   :  { %v79_v0 = vld [vmem:[%s1383_s1] sm:$0x3]  ;;  %v872_v6 = vld [vmem:[%s1384_s0 + $0x8] sm:$0xff]  ;;  %v873_v10 = vld [vmem:[%s1384_s0 + $0x10] sm:$0xff] }
   0x2   :  { %v343_v1 = vsel %vm341_vm0, %v79_v0, 0  ;;  %v871_v2 = vld [vmem:[%s1384_s0] sm:$0xff]  ;;  %v880_v7 = vld [vmem:[%s1384_s0 + $0x48] sm:$0xff]  ;;  %v881_v11 = vld [vmem:[%s1384_s0 + $0x50] sm:$0xff] }
   0x3   :  { %v879_v3 = vld [vmem:[%s1384_s0 + $0x40] sm:$0xff]  ;;  %352 = vmatpush.bf16.msra.mxu0 %v343_v1  ;;  %903 = vmatpush.bf16.msra.mxu1 %v343_v1  ;;  %v888_v8 = vld [vmem:[%s1384_s0 + $0x88] sm:$0xff]  ;;  %v889_v12 = vld [vmem:[%s1384_s0 + $0x90] sm:$0xff] }
   0x4   :  { %v887_v4 = vld [vmem:[%s1384_s0 + $0x80] sm:$0xff]  ;;  %904 = vmatpush.bf16.msra.mxu2 %v343_v1  ;;  %905 = vmatpush.bf16.msra.mxu3 %v343_v1  ;;  %v896_v9 = vld [vmem:[%s1384_s0 + $0xc8] sm:$0xff]  ;;  %v897_v13 = vld [vmem:[%s1384_s0 + $0xd0] sm:$0xff] }
   0x5   :  { %v895_v5 = vld [vmem:[%s1384_s0 + $0xc0] sm:$0xff]  ;;  %v874_v14 = vld [vmem:[%s1384_s0 + $0x18] sm:$0xff]  ;;  %v876_v22 = vld [vmem:[%s1384_s0 + $0x28] sm:$0xff] }
   0x6   :  { %839 = vmatmul.msk.bf16.vlgmr.msra.gmra.mxu0 %vm244_vm1, %v871_v2  ;;  %847 = vmatmul.msk.bf16.vlgmr.msra.gmra.mxu1 %vm244_vm1, %v879_v3  ;;  %v882_v15 = vld [vmem:[%s1384_s0 + $0x58] sm:$0xff]  ;;  %v875_v18 = vld [vmem:[%s1384_s0 + $0x20] sm:$0xff]  ;;  %v884_v23 = vld [vmem:[%s1384_s0 + $0x68] sm:$0xff] }
   0x7   :  { %855 = vmatmul.msk.bf16.vlgmr.msra.gmra.mxu2 %vm244_vm1, %v887_v4  ;;  %863 = vmatmul.msk.bf16.vlgmr.msra.gmra.mxu3 %vm244_vm1, %v895_v5  ;;  %v890_v16 = vld [vmem:[%s1384_s0 + $0x98] sm:$0xff]  ;;  %v883_v19 = vld [vmem:[%s1384_s0 + $0x60] sm:$0xff]  ;;  %v892_v24 = vld [vmem:[%s1384_s0 + $0xa8] sm:$0xff] }
   0x8   :  { %v898_v17 = vld [vmem:[%s1384_s0 + $0xd8] sm:$0xff]  ;;  %v891_v20 = vld [vmem:[%s1384_s0 + $0xa0] sm:$0xff]  ;;  %v900_v25 = vld [vmem:[%s1384_s0 + $0xe8] sm:$0xff] }
   0x9   :  { %v899_v21 = vld [vmem:[%s1384_s0 + $0xe0] sm:$0xff]  ;;  %v877_v26 = vld [vmem:[%s1384_s0 + $0x30] sm:$0xff]  ;;  %v878_v30 = vld [vmem:[%s1384_s0 + $0x38] sm:$0xff] }
   0xa   :  { %v885_v27 = vld [vmem:[%s1384_s0 + $0x70] sm:$0xff]  ;;  %v886_v31 = vld [vmem:[%s1384_s0 + $0x78] sm:$0xff]  ;;  %v1061_v34 = vld [vmem:[%s1385_s2] ss:$0 sm:$0xff] }
   0xb   :  { %v893_v28 = vld [vmem:[%s1384_s0 + $0xb0] sm:$0xff]  ;;  %v894_v32 = vld [vmem:[%s1384_s0 + $0xb8] sm:$0xff] }
   0xc   :  { %v901_v29 = vld [vmem:[%s1384_s0 + $0xf0] sm:$0xff]  ;;  %v902_v33 = vld [vmem:[%s1384_s0 + $0xf8] sm:$0xff] }
  0x16   :  { %840 = vmatmul.msk.bf16.gmra.mxu0 %vm244_vm1, %v872_v6  ;;  %848 = vmatmul.msk.bf16.gmra.mxu1 %vm244_vm1, %v880_v7 }
  0x17   :  { %856 = vmatmul.msk.bf16.gmra.mxu2 %vm244_vm1, %v888_v8  ;;  %864 = vmatmul.msk.bf16.gmra.mxu3 %vm244_vm1, %v896_v9 }
  0x26   :  { %841 = vmatmul.msk.bf16.gmra.mxu0 %vm244_vm1, %v873_v10  ;;  %849 = vmatmul.msk.bf16.gmra.mxu1 %vm244_vm1, %v881_v11 }
  0x27   :  { %857 = vmatmul.msk.bf16.gmra.mxu2 %vm244_vm1, %v889_v12  ;;  %865 = vmatmul.msk.bf16.gmra.mxu3 %vm244_vm1, %v897_v13 }
  0x36   :  { %842 = vmatmul.msk.bf16.gmra.mxu0 %vm244_vm1, %v874_v14  ;;  %850 = vmatmul.msk.bf16.gmra.mxu1 %vm244_vm1, %v882_v15 }
  0x37   :  { %858 = vmatmul.msk.bf16.gmra.mxu2 %vm244_vm1, %v890_v16  ;;  %866 = vmatmul.msk.bf16.gmra.mxu3 %vm244_vm1, %v898_v17 }
  0x46   :  { %843 = vmatmul.msk.bf16.gmra.mxu0 %vm244_vm1, %v875_v18  ;;  %851 = vmatmul.msk.bf16.gmra.mxu1 %vm244_vm1, %v883_v19 }
  0x47   :  { %859 = vmatmul.msk.bf16.gmra.mxu2 %vm244_vm1, %v891_v20  ;;  %867 = vmatmul.msk.bf16.gmra.mxu3 %vm244_vm1, %v899_v21 }
  0x56   :  { %844 = vmatmul.msk.bf16.gmra.mxu0 %vm244_vm1, %v876_v22  ;;  %852 = vmatmul.msk.bf16.gmra.mxu1 %vm244_vm1, %v884_v23 }
  0x57   :  { %860 = vmatmul.msk.bf16.gmra.mxu2 %vm244_vm1, %v892_v24  ;;  %868 = vmatmul.msk.bf16.gmra.mxu3 %vm244_vm1, %v900_v25 }
  0x66   :  { %845 = vmatmul.msk.bf16.gmra.mxu0 %vm244_vm1, %v877_v26  ;;  %853 = vmatmul.msk.bf16.gmra.mxu1 %vm244_vm1, %v885_v27 }
  0x67   :  { %861 = vmatmul.msk.bf16.gmra.mxu2 %vm244_vm1, %v893_v28  ;;  %869 = vmatmul.msk.bf16.gmra.mxu3 %vm244_vm1, %v901_v29 }
  0x76   :  { %846 = vmatmul.msk.bf16.gmra.mxu0 %vm244_vm1, %v878_v30  ;;  %854 = vmatmul.msk.bf16.gmra.mxu1 %vm244_vm1, %v886_v31 }
  0x77   :  { %862 = vmatmul.msk.bf16.gmra.mxu2 %vm244_vm1, %v894_v32  ;;  %870 = vmatmul.msk.bf16.gmra.mxu3 %vm244_vm1, %v902_v33 }
  0x83   :  { %v354_v35 = vpop.f32.mrf.mxu0  ;;  %v394_v36 = vpop.f32.mrf.mxu1 }
  0x84   :  { %v355_v37 = vadd.f32 %v1061_v34, %v354_v35  ;;  %v395_v38 = vadd.f32 %v1061_v34, %v394_v36 }
  0x86   :  { %v514_v39 = vmax.f32 %v355_v37, 0.0  ;;  %v530_v40 = vmax.f32 %v395_v38, 0.0 }
  0x88   :  { %v578_v41 = vpack.c.bf16 %v514_v39, %v514_v39  ;;  %v594_v42 = vpack.c.bf16 %v530_v40, %v530_v40 }
  0x8a   :  { %643 = vst.msk [vmem:[%s1386_s3] sm:$0xf] %vm642_vm2, %v578_v41  ;;  %v434_v43 = vpop.f32.mrf.mxu2  ;;  %v474_v44 = vpop.f32.mrf.mxu3 }
  0x8b   :  { %659 = vst.msk [vmem:[%s1386_s3 + $0x40] sm:$0xf] %vm642_vm2, %v594_v42  ;;  %v435_v45 = vadd.f32 %v1061_v34, %v434_v43  ;;  %v475_v46 = vadd.f32 %v1061_v34, %v474_v44  ;;  %v356_v47 = vpop.f32.mrf.mxu0  ;;  %v396_v48 = vpop.f32.mrf.mxu1 }
  0x8c   :  { %v357_v49 = vadd.f32 %v1061_v34, %v356_v47  ;;  %v397_v50 = vadd.f32 %v1061_v34, %v396_v48 }
  0x8d   :  { %v546_v51 = vmax.f32 %v435_v45, 0.0  ;;  %v562_v52 = vmax.f32 %v475_v46, 0.0 }
  0x8e   :  { %v515_v53 = vmax.f32 %v357_v49, 0.0  ;;  %v531_v54 = vmax.f32 %v397_v50, 0.0 }
  0x8f   :  { %v610_v55 = vpack.c.bf16 %v546_v51, %v546_v51  ;;  %v626_v56 = vpack.c.bf16 %v562_v52, %v562_v52 }
  0x90   :  { %v579_v57 = vpack.c.bf16 %v515_v53, %v515_v53  ;;  %v595_v58 = vpack.c.bf16 %v531_v54, %v531_v54 }
  0x91   :  { %675 = vst.msk [vmem:[%s1386_s3 + $0x80] sm:$0xf] %vm642_vm2, %v610_v55 }
  0x92   :  { %691 = vst.msk [vmem:[%s1386_s3 + $0xc0] sm:$0xf] %vm642_vm2, %v626_v56  ;;  %v436_v59 = vpop.f32.mrf.mxu2  ;;  %v476_v60 = vpop.f32.mrf.mxu3 }
  0x93   :  { %644 = vst.msk [vmem:[%s1386_s3 + $0x4] sm:$0xf] %vm642_vm2, %v579_v57  ;;  %v437_v61 = vadd.f32 %v1061_v34, %v436_v59  ;;  %v477_v62 = vadd.f32 %v1061_v34, %v476_v60  ;;  %v359_v63 = vpop.f32.mrf.mxu0  ;;  %v399_v0 = vpop.f32.mrf.mxu1 }
  0x94   :  { %660 = vst.msk [vmem:[%s1386_s3 + $0x44] sm:$0xf] %vm642_vm2, %v595_v58  ;;  %v360_v1 = vadd.f32 %v1061_v34, %v359_v63  ;;  %v400_v2 = vadd.f32 %v1061_v34, %v399_v0 }
  0x95   :  { %v547_v3 = vmax.f32 %v437_v61, 0.0  ;;  %v563_v4 = vmax.f32 %v477_v62, 0.0 }
  0x96   :  { %v516_v5 = vmax.f32 %v360_v1, 0.0  ;;  %v532_v6 = vmax.f32 %v400_v2, 0.0 }
  0x97   :  { %v611_v7 = vpack.c.bf16 %v547_v3, %v547_v3  ;;  %v627_v8 = vpack.c.bf16 %v563_v4, %v563_v4 }
  0x98   :  { %v580_v9 = vpack.c.bf16 %v516_v5, %v516_v5  ;;  %v596_v10 = vpack.c.bf16 %v532_v6, %v532_v6 }
  0x99   :  { %676 = vst.msk [vmem:[%s1386_s3 + $0x84] sm:$0xf] %vm642_vm2, %v611_v7 }
  0x9a   :  { %692 = vst.msk [vmem:[%s1386_s3 + $0xc4] sm:$0xf] %vm642_vm2, %v627_v8  ;;  %v439_v11 = vpop.f32.mrf.mxu2  ;;  %v479_v12 = vpop.f32.mrf.mxu3 }
  0x9b   :  { %645 = vst.msk [vmem:[%s1386_s3 + $0x8] sm:$0xf] %vm642_vm2, %v580_v9  ;;  %v440_v13 = vadd.f32 %v1061_v34, %v439_v11  ;;  %v480_v14 = vadd.f32 %v1061_v34, %v479_v12  ;;  %v361_v15 = vpop.f32.mrf.mxu0  ;;  %v401_v16 = vpop.f32.mrf.mxu1 }
  0x9c   :  { %661 = vst.msk [vmem:[%s1386_s3 + $0x48] sm:$0xf] %vm642_vm2, %v596_v10  ;;  %v362_v17 = vadd.f32 %v1061_v34, %v361_v15  ;;  %v402_v18 = vadd.f32 %v1061_v34, %v401_v16 }
  0x9d   :  { %v548_v19 = vmax.f32 %v440_v13, 0.0  ;;  %v564_v20 = vmax.f32 %v480_v14, 0.0 }
  0x9e   :  { %v517_v21 = vmax.f32 %v362_v17, 0.0  ;;  %v533_v22 = vmax.f32 %v402_v18, 0.0 }
  0x9f   :  { %v612_v23 = vpack.c.bf16 %v548_v19, %v548_v19  ;;  %v628_v24 = vpack.c.bf16 %v564_v20, %v564_v20 }
  0xa0   :  { %v581_v25 = vpack.c.bf16 %v517_v21, %v517_v21  ;;  %v597_v26 = vpack.c.bf16 %v533_v22, %v533_v22 }
  0xa1   :  { %677 = vst.msk [vmem:[%s1386_s3 + $0x88] sm:$0xf] %vm642_vm2, %v612_v23 }
  0xa2   :  { %693 = vst.msk [vmem:[%s1386_s3 + $0xc8] sm:$0xf] %vm642_vm2, %v628_v24  ;;  %v441_v27 = vpop.f32.mrf.mxu2  ;;  %v481_v28 = vpop.f32.mrf.mxu3 }
  0xa3   :  { %646 = vst.msk [vmem:[%s1386_s3 + $0xc] sm:$0xf] %vm642_vm2, %v581_v25  ;;  %v442_v29 = vadd.f32 %v1061_v34, %v441_v27  ;;  %v482_v30 = vadd.f32 %v1061_v34, %v481_v28  ;;  %v364_v31 = vpop.f32.mrf.mxu0  ;;  %v404_v32 = vpop.f32.mrf.mxu1 }
  0xa4   :  { %662 = vst.msk [vmem:[%s1386_s3 + $0x4c] sm:$0xf] %vm642_vm2, %v597_v26  ;;  %v365_v33 = vadd.f32 %v1061_v34, %v364_v31  ;;  %v405_v35 = vadd.f32 %v1061_v34, %v404_v32 }
  0xa5   :  { %v549_v36 = vmax.f32 %v442_v29, 0.0  ;;  %v565_v37 = vmax.f32 %v482_v30, 0.0 }
  0xa6   :  { %v518_v38 = vmax.f32 %v365_v33, 0.0  ;;  %v534_v39 = vmax.f32 %v405_v35, 0.0 }
  0xa7   :  { %v613_v40 = vpack.c.bf16 %v549_v36, %v549_v36  ;;  %v629_v41 = vpack.c.bf16 %v565_v37, %v565_v37 }
  0xa8   :  { %v582_v42 = vpack.c.bf16 %v518_v38, %v518_v38  ;;  %v598_v43 = vpack.c.bf16 %v534_v39, %v534_v39 }
  0xa9   :  { %678 = vst.msk [vmem:[%s1386_s3 + $0x8c] sm:$0xf] %vm642_vm2, %v613_v40 }
  0xaa   :  { %694 = vst.msk [vmem:[%s1386_s3 + $0xcc] sm:$0xf] %vm642_vm2, %v629_v41  ;;  %v444_v44 = vpop.f32.mrf.mxu2  ;;  %v484_v45 = vpop.f32.mrf.mxu3 }
  0xab   :  { %647 = vst.msk [vmem:[%s1386_s3 + $0x10] sm:$0xf] %vm642_vm2, %v582_v42  ;;  %v445_v46 = vadd.f32 %v1061_v34, %v444_v44  ;;  %v485_v47 = vadd.f32 %v1061_v34, %v484_v45  ;;  %v366_v48 = vpop.f32.mrf.mxu0  ;;  %v406_v49 = vpop.f32.mrf.mxu1 }
  0xac   :  { %663 = vst.msk [vmem:[%s1386_s3 + $0x50] sm:$0xf] %vm642_vm2, %v598_v43  ;;  %v367_v50 = vadd.f32 %v1061_v34, %v366_v48  ;;  %v407_v51 = vadd.f32 %v1061_v34, %v406_v49 }
  0xad   :  { %v550_v52 = vmax.f32 %v445_v46, 0.0  ;;  %v566_v53 = vmax.f32 %v485_v47, 0.0 }
  0xae   :  { %v519_v54 = vmax.f32 %v367_v50, 0.0  ;;  %v535_v55 = vmax.f32 %v407_v51, 0.0 }
  0xaf   :  { %v614_v56 = vpack.c.bf16 %v550_v52, %v550_v52  ;;  %v630_v57 = vpack.c.bf16 %v566_v53, %v566_v53 }
  0xb0   :  { %v583_v58 = vpack.c.bf16 %v519_v54, %v519_v54  ;;  %v599_v59 = vpack.c.bf16 %v535_v55, %v535_v55 }
  0xb1   :  { %679 = vst.msk [vmem:[%s1386_s3 + $0x90] sm:$0xf] %vm642_vm2, %v614_v56 }
  0xb2   :  { %695 = vst.msk [vmem:[%s1386_s3 + $0xd0] sm:$0xf] %vm642_vm2, %v630_v57  ;;  %v446_v60 = vpop.f32.mrf.mxu2  ;;  %v486_v61 = vpop.f32.mrf.mxu3 }
  0xb3   :  { %648 = vst.msk [vmem:[%s1386_s3 + $0x14] sm:$0xf] %vm642_vm2, %v583_v58  ;;  %v447_v62 = vadd.f32 %v1061_v34, %v446_v60  ;;  %v487_v63 = vadd.f32 %v1061_v34, %v486_v61  ;;  %v369_v0 = vpop.f32.mrf.mxu0  ;;  %v409_v1 = vpop.f32.mrf.mxu1 }
  0xb4   :  { %664 = vst.msk [vmem:[%s1386_s3 + $0x54] sm:$0xf] %vm642_vm2, %v599_v59  ;;  %v370_v2 = vadd.f32 %v1061_v34, %v369_v0  ;;  %v410_v3 = vadd.f32 %v1061_v34, %v409_v1 }
  0xb5   :  { %v551_v4 = vmax.f32 %v447_v62, 0.0  ;;  %v567_v5 = vmax.f32 %v487_v63, 0.0 }
  0xb6   :  { %v520_v6 = vmax.f32 %v370_v2, 0.0  ;;  %v536_v7 = vmax.f32 %v410_v3, 0.0 }
  0xb7   :  { %v615_v8 = vpack.c.bf16 %v551_v4, %v551_v4  ;;  %v631_v9 = vpack.c.bf16 %v567_v5, %v567_v5 }
  0xb8   :  { %v584_v10 = vpack.c.bf16 %v520_v6, %v520_v6  ;;  %v600_v11 = vpack.c.bf16 %v536_v7, %v536_v7 }
  0xb9   :  { %680 = vst.msk [vmem:[%s1386_s3 + $0x94] sm:$0xf] %vm642_vm2, %v615_v8 }
  0xba   :  { %696 = vst.msk [vmem:[%s1386_s3 + $0xd4] sm:$0xf] %vm642_vm2, %v631_v9  ;;  %v449_v12 = vpop.f32.mrf.mxu2  ;;  %v489_v13 = vpop.f32.mrf.mxu3 }
  0xbb   :  { %649 = vst.msk [vmem:[%s1386_s3 + $0x18] sm:$0xf] %vm642_vm2, %v584_v10  ;;  %v450_v14 = vadd.f32 %v1061_v34, %v449_v12  ;;  %v490_v15 = vadd.f32 %v1061_v34, %v489_v13  ;;  %v371_v16 = vpop.f32.mrf.mxu0  ;;  %v411_v17 = vpop.f32.mrf.mxu1 }
  0xbc   :  { %665 = vst.msk [vmem:[%s1386_s3 + $0x58] sm:$0xf] %vm642_vm2, %v600_v11  ;;  %v372_v18 = vadd.f32 %v1061_v34, %v371_v16  ;;  %v412_v19 = vadd.f32 %v1061_v34, %v411_v17 }
  0xbd   :  { %v552_v20 = vmax.f32 %v450_v14, 0.0  ;;  %v568_v21 = vmax.f32 %v490_v15, 0.0 }
  0xbe   :  { %v521_v22 = vmax.f32 %v372_v18, 0.0  ;;  %v537_v23 = vmax.f32 %v412_v19, 0.0 }
  0xbf   :  { %v616_v24 = vpack.c.bf16 %v552_v20, %v552_v20  ;;  %v632_v25 = vpack.c.bf16 %v568_v21, %v568_v21 }
  0xc0   :  { %v585_v26 = vpack.c.bf16 %v521_v22, %v521_v22  ;;  %v601_v27 = vpack.c.bf16 %v537_v23, %v537_v23 }
  0xc1   :  { %681 = vst.msk [vmem:[%s1386_s3 + $0x98] sm:$0xf] %vm642_vm2, %v616_v24 }
  0xc2   :  { %697 = vst.msk [vmem:[%s1386_s3 + $0xd8] sm:$0xf] %vm642_vm2, %v632_v25  ;;  %v451_v28 = vpop.f32.mrf.mxu2  ;;  %v491_v29 = vpop.f32.mrf.mxu3 }
  0xc3   :  { %650 = vst.msk [vmem:[%s1386_s3 + $0x1c] sm:$0xf] %vm642_vm2, %v585_v26  ;;  %v452_v30 = vadd.f32 %v1061_v34, %v451_v28  ;;  %v492_v31 = vadd.f32 %v1061_v34, %v491_v29  ;;  %v374_v32 = vpop.f32.mrf.mxu0  ;;  %v414_v33 = vpop.f32.mrf.mxu1 }
  0xc4   :  { %666 = vst.msk [vmem:[%s1386_s3 + $0x5c] sm:$0xf] %vm642_vm2, %v601_v27  ;;  %v375_v35 = vadd.f32 %v1061_v34, %v374_v32  ;;  %v415_v36 = vadd.f32 %v1061_v34, %v414_v33 }
  0xc5   :  { %v553_v37 = vmax.f32 %v452_v30, 0.0  ;;  %v569_v38 = vmax.f32 %v492_v31, 0.0 }
  0xc6   :  { %v522_v39 = vmax.f32 %v375_v35, 0.0  ;;  %v538_v40 = vmax.f32 %v415_v36, 0.0 }
  0xc7   :  { %v617_v41 = vpack.c.bf16 %v553_v37, %v553_v37  ;;  %v633_v42 = vpack.c.bf16 %v569_v38, %v569_v38 }
  0xc8   :  { %v586_v43 = vpack.c.bf16 %v522_v39, %v522_v39  ;;  %v602_v44 = vpack.c.bf16 %v538_v40, %v538_v40 }
  0xc9   :  { %682 = vst.msk [vmem:[%s1386_s3 + $0x9c] sm:$0xf] %vm642_vm2, %v617_v41 }
  0xca   :  { %698 = vst.msk [vmem:[%s1386_s3 + $0xdc] sm:$0xf] %vm642_vm2, %v633_v42  ;;  %v454_v45 = vpop.f32.mrf.mxu2  ;;  %v494_v46 = vpop.f32.mrf.mxu3 }
  0xcb   :  { %651 = vst.msk [vmem:[%s1386_s3 + $0x20] sm:$0xf] %vm642_vm2, %v586_v43  ;;  %v455_v47 = vadd.f32 %v1061_v34, %v454_v45  ;;  %v495_v48 = vadd.f32 %v1061_v34, %v494_v46  ;;  %v376_v49 = vpop.f32.mrf.mxu0  ;;  %v416_v50 = vpop.f32.mrf.mxu1 }
  0xcc   :  { %667 = vst.msk [vmem:[%s1386_s3 + $0x60] sm:$0xf] %vm642_vm2, %v602_v44  ;;  %v377_v51 = vadd.f32 %v1061_v34, %v376_v49  ;;  %v417_v52 = vadd.f32 %v1061_v34, %v416_v50 }
  0xcd   :  { %v554_v53 = vmax.f32 %v455_v47, 0.0  ;;  %v570_v54 = vmax.f32 %v495_v48, 0.0 }
  0xce   :  { %v523_v55 = vmax.f32 %v377_v51, 0.0  ;;  %v539_v56 = vmax.f32 %v417_v52, 0.0 }
  0xcf   :  { %v618_v57 = vpack.c.bf16 %v554_v53, %v554_v53  ;;  %v634_v58 = vpack.c.bf16 %v570_v54, %v570_v54 }
  0xd0   :  { %v587_v59 = vpack.c.bf16 %v523_v55, %v523_v55  ;;  %v603_v60 = vpack.c.bf16 %v539_v56, %v539_v56 }
  0xd1   :  { %683 = vst.msk [vmem:[%s1386_s3 + $0xa0] sm:$0xf] %vm642_vm2, %v618_v57 }
  0xd2   :  { %699 = vst.msk [vmem:[%s1386_s3 + $0xe0] sm:$0xf] %vm642_vm2, %v634_v58  ;;  %v456_v61 = vpop.f32.mrf.mxu2  ;;  %v496_v62 = vpop.f32.mrf.mxu3 }
  0xd3   :  { %652 = vst.msk [vmem:[%s1386_s3 + $0x24] sm:$0xf] %vm642_vm2, %v587_v59  ;;  %v457_v63 = vadd.f32 %v1061_v34, %v456_v61  ;;  %v497_v0 = vadd.f32 %v1061_v34, %v496_v62  ;;  %v379_v1 = vpop.f32.mrf.mxu0  ;;  %v419_v2 = vpop.f32.mrf.mxu1 }
  0xd4   :  { %668 = vst.msk [vmem:[%s1386_s3 + $0x64] sm:$0xf] %vm642_vm2, %v603_v60  ;;  %v380_v3 = vadd.f32 %v1061_v34, %v379_v1  ;;  %v420_v4 = vadd.f32 %v1061_v34, %v419_v2 }
  0xd5   :  { %v555_v5 = vmax.f32 %v457_v63, 0.0  ;;  %v571_v6 = vmax.f32 %v497_v0, 0.0 }
  0xd6   :  { %v524_v7 = vmax.f32 %v380_v3, 0.0  ;;  %v540_v8 = vmax.f32 %v420_v4, 0.0 }
  0xd7   :  { %v619_v9 = vpack.c.bf16 %v555_v5, %v555_v5  ;;  %v635_v10 = vpack.c.bf16 %v571_v6, %v571_v6 }
  0xd8   :  { %v588_v11 = vpack.c.bf16 %v524_v7, %v524_v7  ;;  %v604_v12 = vpack.c.bf16 %v540_v8, %v540_v8 }
  0xd9   :  { %684 = vst.msk [vmem:[%s1386_s3 + $0xa4] sm:$0xf] %vm642_vm2, %v619_v9 }
  0xda   :  { %700 = vst.msk [vmem:[%s1386_s3 + $0xe4] sm:$0xf] %vm642_vm2, %v635_v10  ;;  %v459_v13 = vpop.f32.mrf.mxu2  ;;  %v499_v14 = vpop.f32.mrf.mxu3 }
  0xdb   :  { %653 = vst.msk [vmem:[%s1386_s3 + $0x28] sm:$0xf] %vm642_vm2, %v588_v11  ;;  %v460_v15 = vadd.f32 %v1061_v34, %v459_v13  ;;  %v500_v16 = vadd.f32 %v1061_v34, %v499_v14  ;;  %v381_v17 = vpop.f32.mrf.mxu0  ;;  %v421_v18 = vpop.f32.mrf.mxu1 }
  0xdc   :  { %669 = vst.msk [vmem:[%s1386_s3 + $0x68] sm:$0xf] %vm642_vm2, %v604_v12  ;;  %v382_v19 = vadd.f32 %v1061_v34, %v381_v17  ;;  %v422_v20 = vadd.f32 %v1061_v34, %v421_v18 }
  0xdd   :  { %v556_v21 = vmax.f32 %v460_v15, 0.0  ;;  %v572_v22 = vmax.f32 %v500_v16, 0.0 }
  0xde   :  { %v525_v23 = vmax.f32 %v382_v19, 0.0  ;;  %v541_v24 = vmax.f32 %v422_v20, 0.0 }
  0xdf   :  { %v620_v25 = vpack.c.bf16 %v556_v21, %v556_v21  ;;  %v636_v26 = vpack.c.bf16 %v572_v22, %v572_v22 }
  0xe0   :  { %v589_v27 = vpack.c.bf16 %v525_v23, %v525_v23  ;;  %v605_v28 = vpack.c.bf16 %v541_v24, %v541_v24 }
  0xe1   :  { %685 = vst.msk [vmem:[%s1386_s3 + $0xa8] sm:$0xf] %vm642_vm2, %v620_v25 }
  0xe2   :  { %701 = vst.msk [vmem:[%s1386_s3 + $0xe8] sm:$0xf] %vm642_vm2, %v636_v26  ;;  %v461_v29 = vpop.f32.mrf.mxu2  ;;  %v501_v30 = vpop.f32.mrf.mxu3 }
  0xe3   :  { %654 = vst.msk [vmem:[%s1386_s3 + $0x2c] sm:$0xf] %vm642_vm2, %v589_v27  ;;  %v462_v31 = vadd.f32 %v1061_v34, %v461_v29  ;;  %v502_v32 = vadd.f32 %v1061_v34, %v501_v30  ;;  %v384_v33 = vpop.f32.mrf.mxu0  ;;  %v424_v35 = vpop.f32.mrf.mxu1 }
  0xe4   :  { %670 = vst.msk [vmem:[%s1386_s3 + $0x6c] sm:$0xf] %vm642_vm2, %v605_v28  ;;  %v385_v36 = vadd.f32 %v1061_v34, %v384_v33  ;;  %v425_v37 = vadd.f32 %v1061_v34, %v424_v35 }
  0xe5   :  { %v557_v38 = vmax.f32 %v462_v31, 0.0  ;;  %v573_v39 = vmax.f32 %v502_v32, 0.0 }
  0xe6   :  { %v526_v40 = vmax.f32 %v385_v36, 0.0  ;;  %v542_v41 = vmax.f32 %v425_v37, 0.0 }
  0xe7   :  { %v621_v42 = vpack.c.bf16 %v557_v38, %v557_v38  ;;  %v637_v43 = vpack.c.bf16 %v573_v39, %v573_v39 }
  0xe8   :  { %v590_v44 = vpack.c.bf16 %v526_v40, %v526_v40  ;;  %v606_v45 = vpack.c.bf16 %v542_v41, %v542_v41 }
  0xe9   :  { %686 = vst.msk [vmem:[%s1386_s3 + $0xac] sm:$0xf] %vm642_vm2, %v621_v42 }
  0xea   :  { %702 = vst.msk [vmem:[%s1386_s3 + $0xec] sm:$0xf] %vm642_vm2, %v637_v43  ;;  %v464_v46 = vpop.f32.mrf.mxu2  ;;  %v504_v47 = vpop.f32.mrf.mxu3 }
  0xeb   :  { %655 = vst.msk [vmem:[%s1386_s3 + $0x30] sm:$0xf] %vm642_vm2, %v590_v44  ;;  %v465_v48 = vadd.f32 %v1061_v34, %v464_v46  ;;  %v505_v49 = vadd.f32 %v1061_v34, %v504_v47  ;;  %v386_v50 = vpop.f32.mrf.mxu0  ;;  %v426_v51 = vpop.f32.mrf.mxu1 }
  0xec   :  { %671 = vst.msk [vmem:[%s1386_s3 + $0x70] sm:$0xf] %vm642_vm2, %v606_v45  ;;  %v387_v52 = vadd.f32 %v1061_v34, %v386_v50  ;;  %v427_v53 = vadd.f32 %v1061_v34, %v426_v51 }
  0xed   :  { %v558_v54 = vmax.f32 %v465_v48, 0.0  ;;  %v574_v55 = vmax.f32 %v505_v49, 0.0 }
  0xee   :  { %v527_v56 = vmax.f32 %v387_v52, 0.0  ;;  %v543_v57 = vmax.f32 %v427_v53, 0.0 }
  0xef   :  { %v622_v58 = vpack.c.bf16 %v558_v54, %v558_v54  ;;  %v638_v59 = vpack.c.bf16 %v574_v55, %v574_v55 }
  0xf0   :  { %v591_v60 = vpack.c.bf16 %v527_v56, %v527_v56  ;;  %v607_v61 = vpack.c.bf16 %v543_v57, %v543_v57 }
  0xf1   :  { %687 = vst.msk [vmem:[%s1386_s3 + $0xb0] sm:$0xf] %vm642_vm2, %v622_v58 }
  0xf2   :  { %703 = vst.msk [vmem:[%s1386_s3 + $0xf0] sm:$0xf] %vm642_vm2, %v638_v59  ;;  %v466_v62 = vpop.f32.mrf.mxu2  ;;  %v506_v63 = vpop.f32.mrf.mxu3 }
  0xf3   :  { %656 = vst.msk [vmem:[%s1386_s3 + $0x34] sm:$0xf] %vm642_vm2, %v591_v60  ;;  %v467_v0 = vadd.f32 %v1061_v34, %v466_v62  ;;  %v507_v1 = vadd.f32 %v1061_v34, %v506_v63  ;;  %v389_v2 = vpop.f32.mrf.mxu0  ;;  %v429_v3 = vpop.f32.mrf.mxu1 }
  0xf4   :  { %672 = vst.msk [vmem:[%s1386_s3 + $0x74] sm:$0xf] %vm642_vm2, %v607_v61  ;;  %v390_v4 = vadd.f32 %v1061_v34, %v389_v2  ;;  %v430_v5 = vadd.f32 %v1061_v34, %v429_v3 }
  0xf5   :  { %v559_v6 = vmax.f32 %v467_v0, 0.0  ;;  %v575_v7 = vmax.f32 %v507_v1, 0.0 }
  0xf6   :  { %v528_v8 = vmax.f32 %v390_v4, 0.0  ;;  %v544_v9 = vmax.f32 %v430_v5, 0.0 }
  0xf7   :  { %v623_v10 = vpack.c.bf16 %v559_v6, %v559_v6  ;;  %v639_v11 = vpack.c.bf16 %v575_v7, %v575_v7 }
  0xf8   :  { %v592_v12 = vpack.c.bf16 %v528_v8, %v528_v8  ;;  %v608_v13 = vpack.c.bf16 %v544_v9, %v544_v9 }
  0xf9   :  { %688 = vst.msk [vmem:[%s1386_s3 + $0xb4] sm:$0xf] %vm642_vm2, %v623_v10 }
  0xfa   :  { %704 = vst.msk [vmem:[%s1386_s3 + $0xf4] sm:$0xf] %vm642_vm2, %v639_v11  ;;  %v469_v14 = vpop.f32.mrf.mxu2  ;;  %v509_v15 = vpop.f32.mrf.mxu3 }
  0xfb   :  { %657 = vst.msk [vmem:[%s1386_s3 + $0x38] sm:$0xf] %vm642_vm2, %v592_v12  ;;  %v470_v16 = vadd.f32 %v1061_v34, %v469_v14  ;;  %v510_v17 = vadd.f32 %v1061_v34, %v509_v15  ;;  %v391_v18 = vpop.f32.mrf.mxu0  ;;  %v431_v19 = vpop.f32.mrf.mxu1 }
  0xfc   :  { %673 = vst.msk [vmem:[%s1386_s3 + $0x78] sm:$0xf] %vm642_vm2, %v608_v13  ;;  %v392_v20 = vadd.f32 %v1061_v34, %v391_v18  ;;  %v432_v21 = vadd.f32 %v1061_v34, %v431_v19 }
  0xfd   :  { %v560_v22 = vmax.f32 %v470_v16, 0.0  ;;  %v576_v23 = vmax.f32 %v510_v17, 0.0 }
  0xfe   :  { %v529_v24 = vmax.f32 %v392_v20, 0.0  ;;  %v545_v25 = vmax.f32 %v432_v21, 0.0 }
  0xff   :  { %v624_v26 = vpack.c.bf16 %v560_v22, %v560_v22  ;;  %v640_v27 = vpack.c.bf16 %v576_v23, %v576_v23 }
 0x100   :  { %v593_v28 = vpack.c.bf16 %v529_v24, %v529_v24  ;;  %v609_v29 = vpack.c.bf16 %v545_v25, %v545_v25 }
 0x101   :  { %689 = vst.msk [vmem:[%s1386_s3 + $0xb8] sm:$0xf] %vm642_vm2, %v624_v26 }
 0x102   :  { %705 = vst.msk [vmem:[%s1386_s3 + $0xf8] sm:$0xf] %vm642_vm2, %v640_v27  ;;  %v471_v30 = vpop.f32.mrf.mxu2  ;;  %v511_v31 = vpop.f32.mrf.mxu3 }
 0x103   :  { %658 = vst.msk [vmem:[%s1386_s3 + $0x3c] sm:$0xf] %vm642_vm2, %v593_v28  ;;  %v472_v32 = vadd.f32 %v1061_v34, %v471_v30  ;;  %v512_v33 = vadd.f32 %v1061_v34, %v511_v31 }
 0x104   :  { %674 = vst.msk [vmem:[%s1386_s3 + $0x7c] sm:$0xf] %vm642_vm2, %v609_v29 }
 0x105   :  { %v561_v35 = vmax.f32 %v472_v32, 0.0  ;;  %v577_v36 = vmax.f32 %v512_v33, 0.0 }
 0x107   :  { %v625_v37 = vpack.c.bf16 %v561_v35, %v561_v35  ;;  %v641_v38 = vpack.c.bf16 %v577_v36, %v577_v36 }
 0x109   :  { %690 = vst.msk [vmem:[%s1386_s3 + $0xbc] sm:$0xf] %vm642_vm2, %v625_v37 }
 0x10a   :  { %706 = vst.msk [vmem:[%s1386_s3 + $0xfc] sm:$0xf] %vm642_vm2, %v641_v38 }

// kernel: bottleneck_forward.5
= control target key start
LH: loop header
LB: loop body
LE: loop exit
PB: predicated region body
PF: predicated region fallthrough
CT: control target
= control target key end

     0   :  { %vm408_vm0 = vcmask 1041408   ;;  %vm311_vm1 = vcmask 31744   ;;  %vm1205_vm2 = vcmask 125952   ;;  %s2278_s3 = inlined_call_operand.vmem [shape: bf16[4,16], index: 3, kind: input, shape index: {}]   ;;  %s2279_s1 = inlined_call_operand.vmem [shape: bf16[4,16], index: 1, kind: input, shape index: {}]   ;;  %s2280_s2 = inlined_call_operand.vmem [shape: bf16[512,4], index: 2, kind: input, shape index: {}]   ;;  %s2281_s0 = inlined_call_operand.vmem [shape: bf16[512,4], index: 0, kind: input, shape index: {}]   ;;  %s2282_s4 = inlined_call_operand.vmem [shape: f32[1,16], index: 4, kind: input, shape index: {}]   ;;  %s2283_s5 = inlined_call_operand.vmem [shape: bf16[512,16], index: 5, kind: output, shape index: {}]  }
   0x1   :  { %v150_v0 = vld [vmem:[%s2278_s3] sm:$0x3]  ;;  %v1627_v8 = vld [vmem:[%s2280_s2 + $0x8] sm:$0xff]  ;;  %v1628_v12 = vld [vmem:[%s2280_s2 + $0x10] sm:$0xff] }
   0x2   :  { %v85_v1 = vld [vmem:[%s2279_s1] sm:$0x3]  ;;  %v410_v2 = vsel %vm408_vm0, %v150_v0, 0  ;;  %v1643_v9 = vld [vmem:[%s2280_s2 + $0x88] sm:$0xff]  ;;  %v1644_v13 = vld [vmem:[%s2280_s2 + $0x90] sm:$0xff] }
   0x3   :  { %v838_v3 = vsel %vm408_vm0, %v85_v1, 0  ;;  %v1626_v4 = vld [vmem:[%s2280_s2] sm:$0xff]  ;;  %419 = vmatpush.bf16.msra.mxu0 %v410_v2  ;;  %1658 = vmatpush.bf16.msra.mxu2 %v410_v2  ;;  %v1595_v10 = vld [vmem:[%s2281_s0 + $0x8] sm:$0xff]  ;;  %v1596_v14 = vld [vmem:[%s2281_s0 + $0x10] sm:$0xff] }
   0x4   :  { %v1642_v5 = vld [vmem:[%s2280_s2 + $0x80] sm:$0xff]  ;;  %847 = vmatpush.bf16.msra.mxu1 %v838_v3  ;;  %1659 = vmatpush.bf16.msra.mxu3 %v838_v3  ;;  %v1611_v11 = vld [vmem:[%s2281_s0 + $0x88] sm:$0xff]  ;;  %v1612_v15 = vld [vmem:[%s2281_s0 + $0x90] sm:$0xff] }
   0x5   :  { %v1594_v6 = vld [vmem:[%s2281_s0] sm:$0xff]  ;;  %v1629_v16 = vld [vmem:[%s2280_s2 + $0x18] sm:$0xff]  ;;  %v1631_v24 = vld [vmem:[%s2280_s2 + $0x28] sm:$0xff] }
   0x6   :  { %v1610_v7 = vld [vmem:[%s2281_s0 + $0x80] sm:$0xff]  ;;  %1402 = vmatmul.msk.bf16.vlgmr.msra.gmra.mxu0 %vm311_vm1, %v1626_v4  ;;  %1418 = vmatmul.msk.bf16.vlgmr.msra.gmra.mxu2 %vm311_vm1, %v1642_v5  ;;  %v1645_v17 = vld [vmem:[%s2280_s2 + $0x98] sm:$0xff]  ;;  %v1647_v25 = vld [vmem:[%s2280_s2 + $0xa8] sm:$0xff] }
   0x7   :  { %1562 = vmatmul.msk.bf16.vlgmr.msra.gmra.mxu1 %vm311_vm1, %v1594_v6  ;;  %1578 = vmatmul.msk.bf16.vlgmr.msra.gmra.mxu3 %vm311_vm1, %v1610_v7  ;;  %v1597_v18 = vld [vmem:[%s2281_s0 + $0x18] sm:$0xff]  ;;  %v1630_v20 = vld [vmem:[%s2280_s2 + $0x20] sm:$0xff]  ;;  %v1599_v26 = vld [vmem:[%s2281_s0 + $0x28] sm:$0xff] }
   0x8   :  { %v1613_v19 = vld [vmem:[%s2281_s0 + $0x98] sm:$0xff]  ;;  %v1646_v21 = vld [vmem:[%s2280_s2 + $0xa0] sm:$0xff]  ;;  %v1615_v27 = vld [vmem:[%s2281_s0 + $0xa8] sm:$0xff] }
   0x9   :  { %v1598_v22 = vld [vmem:[%s2281_s0 + $0x20] sm:$0xff]  ;;  %v1632_v28 = vld [vmem:[%s2280_s2 + $0x30] sm:$0xff]  ;;  %v1633_v32 = vld [vmem:[%s2280_s2 + $0x38] sm:$0xff] }
   0xa   :  { %v1614_v23 = vld [vmem:[%s2281_s0 + $0xa0] sm:$0xff]  ;;  %v1648_v29 = vld [vmem:[%s2280_s2 + $0xb0] sm:$0xff]  ;;  %v1649_v33 = vld [vmem:[%s2280_s2 + $0xb8] sm:$0xff] }
   0xb   :  { %v1600_v30 = vld [vmem:[%s2281_s0 + $0x30] sm:$0xff]  ;;  %v1601_v34 = vld [vmem:[%s2281_s0 + $0x38] sm:$0xff]  ;;  %v1634_v36 = vld [vmem:[%s2280_s2 + $0x40] sm:$0xff] }
   0xc   :  { %v1616_v31 = vld [vmem:[%s2281_s0 + $0xb0] sm:$0xff]  ;;  %v1617_v35 = vld [vmem:[%s2281_s0 + $0xb8] sm:$0xff]  ;;  %v1650_v37 = vld [vmem:[%s2280_s2 + $0xc0] sm:$0xff] }
   0xd   :  { %v1834_v39 = vld [vmem:[%s2282_s4] ss:$0 sm:$0xff]  ;;  %v1635_v60 = vld [vmem:[%s2280_s2 + $0x48] sm:$0xff] }
   0xe   :  { %v1602_v40 = vld [vmem:[%s2281_s0 + $0x40] sm:$0xff]  ;;  %v1651_v61 = vld [vmem:[%s2280_s2 + $0xc8] sm:$0xff] }
   0xf   :  { %v1618_v41 = vld [vmem:[%s2281_s0 + $0xc0] sm:$0xff]  ;;  %v1603_v1 = vld [vmem:[%s2281_s0 + $0x48] sm:$0xff] }
  0x10   :  { %v1619_v2 = vld [vmem:[%s2281_s0 + $0xc8] sm:$0xff] }
  0x16   :  { %1403 = vmatmul.msk.bf16.gmra.mxu0 %vm311_vm1, %v1627_v8  ;;  %1419 = vmatmul.msk.bf16.gmra.mxu2 %vm311_vm1, %v1643_v9 }
  0x17   :  { %1563 = vmatmul.msk.bf16.gmra.mxu1 %vm311_vm1, %v1595_v10  ;;  %1579 = vmatmul.msk.bf16.gmra.mxu3 %vm311_vm1, %v1611_v11 }
  0x26   :  { %1404 = vmatmul.msk.bf16.gmra.mxu0 %vm311_vm1, %v1628_v12  ;;  %1420 = vmatmul.msk.bf16.gmra.mxu2 %vm311_vm1, %v1644_v13 }
  0x27   :  { %1564 = vmatmul.msk.bf16.gmra.mxu1 %vm311_vm1, %v1596_v14  ;;  %1580 = vmatmul.msk.bf16.gmra.mxu3 %vm311_vm1, %v1612_v15 }
  0x36   :  { %1405 = vmatmul.msk.bf16.gmra.mxu0 %vm311_vm1, %v1629_v16  ;;  %1421 = vmatmul.msk.bf16.gmra.mxu2 %vm311_vm1, %v1645_v17 }
  0x37   :  { %1565 = vmatmul.msk.bf16.gmra.mxu1 %vm311_vm1, %v1597_v18  ;;  %1581 = vmatmul.msk.bf16.gmra.mxu3 %vm311_vm1, %v1613_v19 }
  0x46   :  { %1406 = vmatmul.msk.bf16.gmra.mxu0 %vm311_vm1, %v1630_v20  ;;  %1422 = vmatmul.msk.bf16.gmra.mxu2 %vm311_vm1, %v1646_v21 }
  0x47   :  { %1566 = vmatmul.msk.bf16.gmra.mxu1 %vm311_vm1, %v1598_v22  ;;  %1582 = vmatmul.msk.bf16.gmra.mxu3 %vm311_vm1, %v1614_v23 }
  0x56   :  { %1407 = vmatmul.msk.bf16.gmra.mxu0 %vm311_vm1, %v1631_v24  ;;  %1423 = vmatmul.msk.bf16.gmra.mxu2 %vm311_vm1, %v1647_v25  ;;  %v1636_v24 = vld [vmem:[%s2280_s2 + $0x50] sm:$0xff] }
  0x57   :  { %1567 = vmatmul.msk.bf16.gmra.mxu1 %vm311_vm1, %v1599_v26  ;;  %1583 = vmatmul.msk.bf16.gmra.mxu3 %vm311_vm1, %v1615_v27  ;;  %v1652_v25 = vld [vmem:[%s2280_s2 + $0xd0] sm:$0xff] }
  0x66   :  { %1408 = vmatmul.msk.bf16.gmra.mxu0 %vm311_vm1, %v1632_v28  ;;  %1424 = vmatmul.msk.bf16.gmra.mxu2 %vm311_vm1, %v1648_v29  ;;  %v1604_v29 = vld [vmem:[%s2281_s0 + $0x50] sm:$0xff] }
  0x67   :  { %1568 = vmatmul.msk.bf16.gmra.mxu1 %vm311_vm1, %v1600_v30  ;;  %1584 = vmatmul.msk.bf16.gmra.mxu3 %vm311_vm1, %v1616_v31  ;;  %v1620_v30 = vld [vmem:[%s2281_s0 + $0xd0] sm:$0xff] }
  0x76   :  { %1409 = vmatmul.msk.bf16.gmra.mxu0 %vm311_vm1, %v1633_v32  ;;  %1425 = vmatmul.msk.bf16.gmra.mxu2 %vm311_vm1, %v1649_v33 }
  0x77   :  { %1569 = vmatmul.msk.bf16.gmra.mxu1 %vm311_vm1, %v1601_v34  ;;  %1585 = vmatmul.msk.bf16.gmra.mxu3 %vm311_vm1, %v1617_v35 }
  0x83   :  { %v421_v38 = vpop.f32.mrf.mxu0 }
  0x84   :  { %v849_v42 = vpop.f32.mrf.mxu1 }
  0x85   :  { %v850_v43 = vadd.f32 %v849_v42, %v421_v38 }
  0x86   :  { %1410 = vmatmul.msk.bf16.gmra.mxu0 %vm311_vm1, %v1634_v36  ;;  %1426 = vmatmul.msk.bf16.gmra.mxu2 %vm311_vm1, %v1650_v37 }
  0x87   :  { %v1013_v44 = vadd.f32 %v1834_v39, %v850_v43  ;;  %1570 = vmatmul.msk.bf16.gmra.mxu1 %vm311_vm1, %v1602_v40  ;;  %1586 = vmatmul.msk.bf16.gmra.mxu3 %vm311_vm1, %v1618_v41 }
  0x89   :  { %v1077_v45 = vmax.f32 %v1013_v44, 0.0  ;;  %v501_v46 = vpop.f32.mrf.mxu2 }
  0x8a   :  { %v929_v47 = vpop.f32.mrf.mxu3 }
  0x8b   :  { %v1141_v48 = vpack.c.bf16 %v1077_v45, %v1077_v45  ;;  %v930_v49 = vadd.f32 %v929_v47, %v501_v46  ;;  %v423_v50 = vpop.f32.mrf.mxu0 }
  0x8c   :  { %v851_v51 = vpop.f32.mrf.mxu1 }
  0x8d   :  { %1206 = vst.msk [vmem:[%s2283_s5] sm:$0xf] %vm1205_vm2, %v1141_v48  ;;  %v1045_v52 = vadd.f32 %v1834_v39, %v930_v49  ;;  %v852_v53 = vadd.f32 %v851_v51, %v423_v50 }
  0x8f   :  { %v1109_v54 = vmax.f32 %v1045_v52, 0.0  ;;  %v1014_v55 = vadd.f32 %v1834_v39, %v852_v53  ;;  %v1637_v53 = vld [vmem:[%s2280_s2 + $0x58] sm:$0xff] }
  0x91   :  { %v1173_v56 = vpack.c.bf16 %v1109_v54, %v1109_v54  ;;  %v1078_v57 = vmax.f32 %v1014_v55, 0.0  ;;  %v503_v58 = vpop.f32.mrf.mxu2  ;;  %v1653_v54 = vld [vmem:[%s2280_s2 + $0xd8] sm:$0xff] }
  0x92   :  { %v931_v59 = vpop.f32.mrf.mxu3 }
  0x93   :  { %1238 = vst.msk [vmem:[%s2283_s5 + $0x80] sm:$0xf] %vm1205_vm2, %v1173_v56  ;;  %v1142_v62 = vpack.c.bf16 %v1078_v57, %v1078_v57  ;;  %v932_v63 = vadd.f32 %v931_v59, %v503_v58  ;;  %v426_v0 = vpop.f32.mrf.mxu0  ;;  %v1605_v58 = vld [vmem:[%s2281_s0 + $0x58] sm:$0xff] }
  0x94   :  { %v854_v3 = vpop.f32.mrf.mxu1  ;;  %v1621_v59 = vld [vmem:[%s2281_s0 + $0xd8] sm:$0xff] }
  0x95   :  { %1207 = vst.msk [vmem:[%s2283_s5 + $0x4] sm:$0xf] %vm1205_vm2, %v1142_v62  ;;  %v1046_v4 = vadd.f32 %v1834_v39, %v932_v63  ;;  %v855_v5 = vadd.f32 %v854_v3, %v426_v0 }
  0x96   :  { %1411 = vmatmul.msk.bf16.gmra.mxu0 %vm311_vm1, %v1635_v60  ;;  %1427 = vmatmul.msk.bf16.gmra.mxu2 %vm311_vm1, %v1651_v61 }
  0x97   :  { %v1110_v6 = vmax.f32 %v1046_v4, 0.0  ;;  %v1015_v7 = vadd.f32 %v1834_v39, %v855_v5  ;;  %1571 = vmatmul.msk.bf16.gmra.mxu1 %vm311_vm1, %v1603_v1  ;;  %1587 = vmatmul.msk.bf16.gmra.mxu3 %vm311_vm1, %v1619_v2 }
  0x99   :  { %v1174_v8 = vpack.c.bf16 %v1110_v6, %v1110_v6  ;;  %v1079_v9 = vmax.f32 %v1015_v7, 0.0  ;;  %v506_v10 = vpop.f32.mrf.mxu2 }
  0x9a   :  { %v934_v11 = vpop.f32.mrf.mxu3 }
  0x9b   :  { %1239 = vst.msk [vmem:[%s2283_s5 + $0x84] sm:$0xf] %vm1205_vm2, %v1174_v8  ;;  %v1143_v12 = vpack.c.bf16 %v1079_v9, %v1079_v9  ;;  %v935_v13 = vadd.f32 %v934_v11, %v506_v10  ;;  %v428_v14 = vpop.f32.mrf.mxu0 }
  0x9c   :  { %v856_v15 = vpop.f32.mrf.mxu1 }
  0x9d   :  { %1208 = vst.msk [vmem:[%s2283_s5 + $0x8] sm:$0xf] %vm1205_vm2, %v1143_v12  ;;  %v1047_v16 = vadd.f32 %v1834_v39, %v935_v13  ;;  %v857_v17 = vadd.f32 %v856_v15, %v428_v14 }
  0x9f   :  { %v1111_v18 = vmax.f32 %v1047_v16, 0.0  ;;  %v1016_v19 = vadd.f32 %v1834_v39, %v857_v17  ;;  %v1638_v17 = vld [vmem:[%s2280_s2 + $0x60] sm:$0xff] }
  0xa1   :  { %v1175_v20 = vpack.c.bf16 %v1111_v18, %v1111_v18  ;;  %v1080_v21 = vmax.f32 %v1016_v19, 0.0  ;;  %v508_v22 = vpop.f32.mrf.mxu2  ;;  %v1654_v18 = vld [vmem:[%s2280_s2 + $0xe0] sm:$0xff] }
  0xa2   :  { %v936_v23 = vpop.f32.mrf.mxu3 }
  0xa3   :  { %1240 = vst.msk [vmem:[%s2283_s5 + $0x88] sm:$0xf] %vm1205_vm2, %v1175_v20  ;;  %v1144_v26 = vpack.c.bf16 %v1080_v21, %v1080_v21  ;;  %v937_v27 = vadd.f32 %v936_v23, %v508_v22  ;;  %v431_v28 = vpop.f32.mrf.mxu0  ;;  %v1606_v22 = vld [vmem:[%s2281_s0 + $0x60] sm:$0xff] }
  0xa4   :  { %v859_v31 = vpop.f32.mrf.mxu1  ;;  %v1622_v23 = vld [vmem:[%s2281_s0 + $0xe0] sm:$0xff] }
  0xa5   :  { %1209 = vst.msk [vmem:[%s2283_s5 + $0xc] sm:$0xf] %vm1205_vm2, %v1144_v26  ;;  %v1048_v32 = vadd.f32 %v1834_v39, %v937_v27  ;;  %v860_v33 = vadd.f32 %v859_v31, %v431_v28 }
  0xa6   :  { %1412 = vmatmul.msk.bf16.gmra.mxu0 %vm311_vm1, %v1636_v24  ;;  %1428 = vmatmul.msk.bf16.gmra.mxu2 %vm311_vm1, %v1652_v25 }
  0xa7   :  { %v1112_v34 = vmax.f32 %v1048_v32, 0.0  ;;  %v1017_v35 = vadd.f32 %v1834_v39, %v860_v33  ;;  %1572 = vmatmul.msk.bf16.gmra.mxu1 %vm311_vm1, %v1604_v29  ;;  %1588 = vmatmul.msk.bf16.gmra.mxu3 %vm311_vm1, %v1620_v30 }
  0xa9   :  { %v1176_v36 = vpack.c.bf16 %v1112_v34, %v1112_v34  ;;  %v1081_v37 = vmax.f32 %v1017_v35, 0.0  ;;  %v511_v38 = vpop.f32.mrf.mxu2 }
  0xaa   :  { %v939_v40 = vpop.f32.mrf.mxu3 }
  0xab   :  { %1241 = vst.msk [vmem:[%s2283_s5 + $0x8c] sm:$0xf] %vm1205_vm2, %v1176_v36  ;;  %v1145_v41 = vpack.c.bf16 %v1081_v37, %v1081_v37  ;;  %v940_v42 = vadd.f32 %v939_v40, %v511_v38  ;;  %v433_v43 = vpop.f32.mrf.mxu0 }
  0xac   :  { %v861_v44 = vpop.f32.mrf.mxu1 }
  0xad   :  { %1210 = vst.msk [vmem:[%s2283_s5 + $0x10] sm:$0xf] %vm1205_vm2, %v1145_v41  ;;  %v1049_v45 = vadd.f32 %v1834_v39, %v940_v42  ;;  %v862_v46 = vadd.f32 %v861_v44, %v433_v43 }
  0xaf   :  { %v1113_v47 = vmax.f32 %v1049_v45, 0.0  ;;  %v1018_v48 = vadd.f32 %v1834_v39, %v862_v46  ;;  %v1639_v46 = vld [vmem:[%s2280_s2 + $0x68] sm:$0xff] }
  0xb1   :  { %v1177_v49 = vpack.c.bf16 %v1113_v47, %v1113_v47  ;;  %v1082_v50 = vmax.f32 %v1018_v48, 0.0  ;;  %v513_v51 = vpop.f32.mrf.mxu2  ;;  %v1655_v47 = vld [vmem:[%s2280_s2 + $0xe8] sm:$0xff] }
  0xb2   :  { %v941_v52 = vpop.f32.mrf.mxu3 }
  0xb3   :  { %1242 = vst.msk [vmem:[%s2283_s5 + $0x90] sm:$0xf] %vm1205_vm2, %v1177_v49  ;;  %v1146_v55 = vpack.c.bf16 %v1082_v50, %v1082_v50  ;;  %v942_v56 = vadd.f32 %v941_v52, %v513_v51  ;;  %v436_v57 = vpop.f32.mrf.mxu0  ;;  %v1607_v51 = vld [vmem:[%s2281_s0 + $0x68] sm:$0xff] }
  0xb4   :  { %v864_v60 = vpop.f32.mrf.mxu1  ;;  %v1623_v52 = vld [vmem:[%s2281_s0 + $0xe8] sm:$0xff] }
  0xb5   :  { %1211 = vst.msk [vmem:[%s2283_s5 + $0x14] sm:$0xf] %vm1205_vm2, %v1146_v55  ;;  %v1050_v61 = vadd.f32 %v1834_v39, %v942_v56  ;;  %v865_v62 = vadd.f32 %v864_v60, %v436_v57 }
  0xb6   :  { %1413 = vmatmul.msk.bf16.gmra.mxu0 %vm311_vm1, %v1637_v53  ;;  %1429 = vmatmul.msk.bf16.gmra.mxu2 %vm311_vm1, %v1653_v54 }
  0xb7   :  { %v1114_v63 = vmax.f32 %v1050_v61, 0.0  ;;  %v1019_v0 = vadd.f32 %v1834_v39, %v865_v62  ;;  %1573 = vmatmul.msk.bf16.gmra.mxu1 %vm311_vm1, %v1605_v58  ;;  %1589 = vmatmul.msk.bf16.gmra.mxu3 %vm311_vm1, %v1621_v59 }
  0xb9   :  { %v1178_v1 = vpack.c.bf16 %v1114_v63, %v1114_v63  ;;  %v1083_v2 = vmax.f32 %v1019_v0, 0.0  ;;  %v516_v3 = vpop.f32.mrf.mxu2 }
  0xba   :  { %v944_v4 = vpop.f32.mrf.mxu3 }
  0xbb   :  { %1243 = vst.msk [vmem:[%s2283_s5 + $0x94] sm:$0xf] %vm1205_vm2, %v1178_v1  ;;  %v1147_v5 = vpack.c.bf16 %v1083_v2, %v1083_v2  ;;  %v945_v6 = vadd.f32 %v944_v4, %v516_v3  ;;  %v438_v7 = vpop.f32.mrf.mxu0 }
  0xbc   :  { %v866_v8 = vpop.f32.mrf.mxu1 }
  0xbd   :  { %1212 = vst.msk [vmem:[%s2283_s5 + $0x18] sm:$0xf] %vm1205_vm2, %v1147_v5  ;;  %v1051_v9 = vadd.f32 %v1834_v39, %v945_v6  ;;  %v867_v10 = vadd.f32 %v866_v8, %v438_v7 }
  0xbf   :  { %v1115_v11 = vmax.f32 %v1051_v9, 0.0  ;;  %v1020_v12 = vadd.f32 %v1834_v39, %v867_v10  ;;  %v1640_v10 = vld [vmem:[%s2280_s2 + $0x70] sm:$0xff] }
  0xc1   :  { %v1179_v13 = vpack.c.bf16 %v1115_v11, %v1115_v11  ;;  %v1084_v14 = vmax.f32 %v1020_v12, 0.0  ;;  %v518_v15 = vpop.f32.mrf.mxu2  ;;  %v1656_v11 = vld [vmem:[%s2280_s2 + $0xf0] sm:$0xff] }
  0xc2   :  { %v946_v16 = vpop.f32.mrf.mxu3 }
  0xc3   :  { %1244 = vst.msk [vmem:[%s2283_s5 + $0x98] sm:$0xf] %vm1205_vm2, %v1179_v13  ;;  %v1148_v19 = vpack.c.bf16 %v1084_v14, %v1084_v14  ;;  %v947_v20 = vadd.f32 %v946_v16, %v518_v15  ;;  %v441_v21 = vpop.f32.mrf.mxu0  ;;  %v1608_v15 = vld [vmem:[%s2281_s0 + $0x70] sm:$0xff] }
  0xc4   :  { %v869_v24 = vpop.f32.mrf.mxu1  ;;  %v1624_v16 = vld [vmem:[%s2281_s0 + $0xf0] sm:$0xff] }
  0xc5   :  { %1213 = vst.msk [vmem:[%s2283_s5 + $0x1c] sm:$0xf] %vm1205_vm2, %v1148_v19  ;;  %v1052_v25 = vadd.f32 %v1834_v39, %v947_v20  ;;  %v870_v26 = vadd.f32 %v869_v24, %v441_v21 }
  0xc6   :  { %1414 = vmatmul.msk.bf16.gmra.mxu0 %vm311_vm1, %v1638_v17  ;;  %1430 = vmatmul.msk.bf16.gmra.mxu2 %vm311_vm1, %v1654_v18 }
  0xc7   :  { %v1116_v27 = vmax.f32 %v1052_v25, 0.0  ;;  %v1021_v28 = vadd.f32 %v1834_v39, %v870_v26  ;;  %1574 = vmatmul.msk.bf16.gmra.mxu1 %vm311_vm1, %v1606_v22  ;;  %1590 = vmatmul.msk.bf16.gmra.mxu3 %vm311_vm1, %v1622_v23 }
  0xc9   :  { %v1180_v29 = vpack.c.bf16 %v1116_v27, %v1116_v27  ;;  %v1085_v30 = vmax.f32 %v1021_v28, 0.0  ;;  %v521_v31 = vpop.f32.mrf.mxu2 }
  0xca   :  { %v949_v32 = vpop.f32.mrf.mxu3 }
  0xcb   :  { %1245 = vst.msk [vmem:[%s2283_s5 + $0x9c] sm:$0xf] %vm1205_vm2, %v1180_v29  ;;  %v1149_v33 = vpack.c.bf16 %v1085_v30, %v1085_v30  ;;  %v950_v34 = vadd.f32 %v949_v32, %v521_v31  ;;  %v443_v35 = vpop.f32.mrf.mxu0 }
  0xcc   :  { %v871_v36 = vpop.f32.mrf.mxu1 }
  0xcd   :  { %1214 = vst.msk [vmem:[%s2283_s5 + $0x20] sm:$0xf] %vm1205_vm2, %v1149_v33  ;;  %v1053_v37 = vadd.f32 %v1834_v39, %v950_v34  ;;  %v872_v38 = vadd.f32 %v871_v36, %v443_v35 }
  0xcf   :  { %v1117_v40 = vmax.f32 %v1053_v37, 0.0  ;;  %v1022_v41 = vadd.f32 %v1834_v39, %v872_v38  ;;  %v1641_v38 = vld [vmem:[%s2280_s2 + $0x78] sm:$0xff] }
  0xd1   :  { %v1181_v42 = vpack.c.bf16 %v1117_v40, %v1117_v40  ;;  %v1086_v43 = vmax.f32 %v1022_v41, 0.0  ;;  %v523_v44 = vpop.f32.mrf.mxu2  ;;  %v1657_v40 = vld [vmem:[%s2280_s2 + $0xf8] sm:$0xff] }
  0xd2   :  { %v951_v45 = vpop.f32.mrf.mxu3 }
  0xd3   :  { %1246 = vst.msk [vmem:[%s2283_s5 + $0xa0] sm:$0xf] %vm1205_vm2, %v1181_v42  ;;  %v1150_v48 = vpack.c.bf16 %v1086_v43, %v1086_v43  ;;  %v952_v49 = vadd.f32 %v951_v45, %v523_v44  ;;  %v446_v50 = vpop.f32.mrf.mxu0  ;;  %v1609_v44 = vld [vmem:[%s2281_s0 + $0x78] sm:$0xff] }
  0xd4   :  { %v874_v53 = vpop.f32.mrf.mxu1  ;;  %v1625_v45 = vld [vmem:[%s2281_s0 + $0xf8] sm:$0xff] }
  0xd5   :  { %1215 = vst.msk [vmem:[%s2283_s5 + $0x24] sm:$0xf] %vm1205_vm2, %v1150_v48  ;;  %v1054_v54 = vadd.f32 %v1834_v39, %v952_v49  ;;  %v875_v55 = vadd.f32 %v874_v53, %v446_v50 }
  0xd6   :  { %1415 = vmatmul.msk.bf16.gmra.mxu0 %vm311_vm1, %v1639_v46  ;;  %1431 = vmatmul.msk.bf16.gmra.mxu2 %vm311_vm1, %v1655_v47 }
  0xd7   :  { %v1118_v56 = vmax.f32 %v1054_v54, 0.0  ;;  %v1023_v57 = vadd.f32 %v1834_v39, %v875_v55  ;;  %1575 = vmatmul.msk.bf16.gmra.mxu1 %vm311_vm1, %v1607_v51  ;;  %1591 = vmatmul.msk.bf16.gmra.mxu3 %vm311_vm1, %v1623_v52 }
  0xd9   :  { %v1182_v58 = vpack.c.bf16 %v1118_v56, %v1118_v56  ;;  %v1087_v59 = vmax.f32 %v1023_v57, 0.0  ;;  %v526_v60 = vpop.f32.mrf.mxu2 }
  0xda   :  { %v954_v61 = vpop.f32.mrf.mxu3 }
  0xdb   :  { %1247 = vst.msk [vmem:[%s2283_s5 + $0xa4] sm:$0xf] %vm1205_vm2, %v1182_v58  ;;  %v1151_v62 = vpack.c.bf16 %v1087_v59, %v1087_v59  ;;  %v955_v63 = vadd.f32 %v954_v61, %v526_v60  ;;  %v448_v0 = vpop.f32.mrf.mxu0 }
  0xdc   :  { %v876_v1 = vpop.f32.mrf.mxu1 }
  0xdd   :  { %1216 = vst.msk [vmem:[%s2283_s5 + $0x28] sm:$0xf] %vm1205_vm2, %v1151_v62  ;;  %v1055_v2 = vadd.f32 %v1834_v39, %v955_v63  ;;  %v877_v3 = vadd.f32 %v876_v1, %v448_v0 }
  0xdf   :  { %v1119_v4 = vmax.f32 %v1055_v2, 0.0  ;;  %v1024_v5 = vadd.f32 %v1834_v39, %v877_v3 }
  0xe1   :  { %v1183_v6 = vpack.c.bf16 %v1119_v4, %v1119_v4  ;;  %v1088_v7 = vmax.f32 %v1024_v5, 0.0  ;;  %v528_v8 = vpop.f32.mrf.mxu2 }
  0xe2   :  { %v956_v9 = vpop.f32.mrf.mxu3 }
  0xe3   :  { %1248 = vst.msk [vmem:[%s2283_s5 + $0xa8] sm:$0xf] %vm1205_vm2, %v1183_v6  ;;  %v1152_v12 = vpack.c.bf16 %v1088_v7, %v1088_v7  ;;  %v957_v13 = vadd.f32 %v956_v9, %v528_v8  ;;  %v451_v14 = vpop.f32.mrf.mxu0 }
  0xe4   :  { %v879_v17 = vpop.f32.mrf.mxu1 }
  0xe5   :  { %1217 = vst.msk [vmem:[%s2283_s5 + $0x2c] sm:$0xf] %vm1205_vm2, %v1152_v12  ;;  %v1056_v18 = vadd.f32 %v1834_v39, %v957_v13  ;;  %v880_v19 = vadd.f32 %v879_v17, %v451_v14 }
  0xe6   :  { %1416 = vmatmul.msk.bf16.gmra.mxu0 %vm311_vm1, %v1640_v10  ;;  %1432 = vmatmul.msk.bf16.gmra.mxu2 %vm311_vm1, %v1656_v11 }
  0xe7   :  { %v1120_v20 = vmax.f32 %v1056_v18, 0.0  ;;  %v1025_v21 = vadd.f32 %v1834_v39, %v880_v19  ;;  %1576 = vmatmul.msk.bf16.gmra.mxu1 %vm311_vm1, %v1608_v15  ;;  %1592 = vmatmul.msk.bf16.gmra.mxu3 %vm311_vm1, %v1624_v16 }
  0xe9   :  { %v1184_v22 = vpack.c.bf16 %v1120_v20, %v1120_v20  ;;  %v1089_v23 = vmax.f32 %v1025_v21, 0.0  ;;  %v531_v24 = vpop.f32.mrf.mxu2 }
  0xea   :  { %v959_v25 = vpop.f32.mrf.mxu3 }
  0xeb   :  { %1249 = vst.msk [vmem:[%s2283_s5 + $0xac] sm:$0xf] %vm1205_vm2, %v1184_v22  ;;  %v1153_v26 = vpack.c.bf16 %v1089_v23, %v1089_v23  ;;  %v960_v27 = vadd.f32 %v959_v25, %v531_v24  ;;  %v453_v28 = vpop.f32.mrf.mxu0 }
  0xec   :  { %v881_v29 = vpop.f32.mrf.mxu1 }
  0xed   :  { %1218 = vst.msk [vmem:[%s2283_s5 + $0x30] sm:$0xf] %vm1205_vm2, %v1153_v26  ;;  %v1057_v30 = vadd.f32 %v1834_v39, %v960_v27  ;;  %v882_v31 = vadd.f32 %v881_v29, %v453_v28 }
  0xef   :  { %v1121_v32 = vmax.f32 %v1057_v30, 0.0  ;;  %v1026_v33 = vadd.f32 %v1834_v39, %v882_v31 }
  0xf1   :  { %v1185_v34 = vpack.c.bf16 %v1121_v32, %v1121_v32  ;;  %v1090_v35 = vmax.f32 %v1026_v33, 0.0  ;;  %v533_v36 = vpop.f32.mrf.mxu2 }
  0xf2   :  { %v961_v37 = vpop.f32.mrf.mxu3 }
  0xf3   :  { %1250 = vst.msk [vmem:[%s2283_s5 + $0xb0] sm:$0xf] %vm1205_vm2, %v1185_v34  ;;  %v1154_v41 = vpack.c.bf16 %v1090_v35, %v1090_v35  ;;  %v962_v42 = vadd.f32 %v961_v37, %v533_v36  ;;  %v456_v43 = vpop.f32.mrf.mxu0 }
  0xf4   :  { %v884_v46 = vpop.f32.mrf.mxu1 }
  0xf5   :  { %1219 = vst.msk [vmem:[%s2283_s5 + $0x34] sm:$0xf] %vm1205_vm2, %v1154_v41  ;;  %v1058_v47 = vadd.f32 %v1834_v39, %v962_v42  ;;  %v885_v48 = vadd.f32 %v884_v46, %v456_v43 }
  0xf6   :  { %1417 = vmatmul.msk.bf16.gmra.mxu0 %vm311_vm1, %v1641_v38  ;;  %1433 = vmatmul.msk.bf16.gmra.mxu2 %vm311_vm1, %v1657_v40 }
  0xf7   :  { %v1122_v49 = vmax.f32 %v1058_v47, 0.0  ;;  %v1027_v50 = vadd.f32 %v1834_v39, %v885_v48  ;;  %1577 = vmatmul.msk.bf16.gmra.mxu1 %vm311_vm1, %v1609_v44  ;;  %1593 = vmatmul.msk.bf16.gmra.mxu3 %vm311_vm1, %v1625_v45 }
  0xf9   :  { %v1186_v51 = vpack.c.bf16 %v1122_v49, %v1122_v49  ;;  %v1091_v52 = vmax.f32 %v1027_v50, 0.0  ;;  %v536_v53 = vpop.f32.mrf.mxu2 }
  0xfa   :  { %v964_v54 = vpop.f32.mrf.mxu3 }
  0xfb   :  { %1251 = vst.msk [vmem:[%s2283_s5 + $0xb4] sm:$0xf] %vm1205_vm2, %v1186_v51  ;;  %v1155_v55 = vpack.c.bf16 %v1091_v52, %v1091_v52  ;;  %v965_v56 = vadd.f32 %v964_v54, %v536_v53  ;;  %v458_v57 = vpop.f32.mrf.mxu0 }
  0xfc   :  { %v886_v58 = vpop.f32.mrf.mxu1 }
  0xfd   :  { %1220 = vst.msk [vmem:[%s2283_s5 + $0x38] sm:$0xf] %vm1205_vm2, %v1155_v55  ;;  %v1059_v59 = vadd.f32 %v1834_v39, %v965_v56  ;;  %v887_v60 = vadd.f32 %v886_v58, %v458_v57 }
  0xff   :  { %v1123_v61 = vmax.f32 %v1059_v59, 0.0  ;;  %v1028_v62 = vadd.f32 %v1834_v39, %v887_v60 }
 0x101   :  { %v1187_v63 = vpack.c.bf16 %v1123_v61, %v1123_v61  ;;  %v1092_v0 = vmax.f32 %v1028_v62, 0.0  ;;  %v538_v1 = vpop.f32.mrf.mxu2 }
 0x102   :  { %v966_v2 = vpop.f32.mrf.mxu3 }
 0x103   :  { %1252 = vst.msk [vmem:[%s2283_s5 + $0xb8] sm:$0xf] %vm1205_vm2, %v1187_v63  ;;  %v1156_v3 = vpack.c.bf16 %v1092_v0, %v1092_v0  ;;  %v967_v4 = vadd.f32 %v966_v2, %v538_v1  ;;  %v461_v5 = vpop.f32.mrf.mxu0 }
 0x104   :  { %v889_v6 = vpop.f32.mrf.mxu1 }
 0x105   :  { %1221 = vst.msk [vmem:[%s2283_s5 + $0x3c] sm:$0xf] %vm1205_vm2, %v1156_v3  ;;  %v1060_v7 = vadd.f32 %v1834_v39, %v967_v4  ;;  %v890_v8 = vadd.f32 %v889_v6, %v461_v5 }
 0x107   :  { %v1124_v9 = vmax.f32 %v1060_v7, 0.0  ;;  %v1029_v10 = vadd.f32 %v1834_v39, %v890_v8 }
 0x109   :  { %v1188_v11 = vpack.c.bf16 %v1124_v9, %v1124_v9  ;;  %v1093_v12 = vmax.f32 %v1029_v10, 0.0  ;;  %v541_v13 = vpop.f32.mrf.mxu2 }
 0x10a   :  { %v969_v14 = vpop.f32.mrf.mxu3 }
 0x10b   :  { %1253 = vst.msk [vmem:[%s2283_s5 + $0xbc] sm:$0xf] %vm1205_vm2, %v1188_v11  ;;  %v1157_v15 = vpack.c.bf16 %v1093_v12, %v1093_v12  ;;  %v970_v16 = vadd.f32 %v969_v14, %v541_v13  ;;  %v463_v17 = vpop.f32.mrf.mxu0 }
 0x10c   :  { %v891_v18 = vpop.f32.mrf.mxu1 }
 0x10d   :  { %1222 = vst.msk [vmem:[%s2283_s5 + $0x40] sm:$0xf] %vm1205_vm2, %v1157_v15  ;;  %v1061_v19 = vadd.f32 %v1834_v39, %v970_v16  ;;  %v892_v20 = vadd.f32 %v891_v18, %v463_v17 }
 0x10f   :  { %v1125_v21 = vmax.f32 %v1061_v19, 0.0  ;;  %v1030_v22 = vadd.f32 %v1834_v39, %v892_v20 }
 0x111   :  { %v1189_v23 = vpack.c.bf16 %v1125_v21, %v1125_v21  ;;  %v1094_v24 = vmax.f32 %v1030_v22, 0.0  ;;  %v543_v25 = vpop.f32.mrf.mxu2 }
 0x112   :  { %v971_v26 = vpop.f32.mrf.mxu3 }
 0x113   :  { %1254 = vst.msk [vmem:[%s2283_s5 + $0xc0] sm:$0xf] %vm1205_vm2, %v1189_v23  ;;  %v1158_v27 = vpack.c.bf16 %v1094_v24, %v1094_v24  ;;  %v972_v28 = vadd.f32 %v971_v26, %v543_v25  ;;  %v466_v29 = vpop.f32.mrf.mxu0 }
 0x114   :  { %v894_v30 = vpop.f32.mrf.mxu1 }
 0x115   :  { %1223 = vst.msk [vmem:[%s2283_s5 + $0x44] sm:$0xf] %vm1205_vm2, %v1158_v27  ;;  %v1062_v31 = vadd.f32 %v1834_v39, %v972_v28  ;;  %v895_v32 = vadd.f32 %v894_v30, %v466_v29 }
 0x117   :  { %v1126_v33 = vmax.f32 %v1062_v31, 0.0  ;;  %v1031_v34 = vadd.f32 %v1834_v39, %v895_v32 }
 0x119   :  { %v1190_v35 = vpack.c.bf16 %v1126_v33, %v1126_v33  ;;  %v1095_v36 = vmax.f32 %v1031_v34, 0.0  ;;  %v546_v37 = vpop.f32.mrf.mxu2 }
 0x11a   :  { %v974_v38 = vpop.f32.mrf.mxu3 }
 0x11b   :  { %1255 = vst.msk [vmem:[%s2283_s5 + $0xc4] sm:$0xf] %vm1205_vm2, %v1190_v35  ;;  %v1159_v40 = vpack.c.bf16 %v1095_v36, %v1095_v36  ;;  %v975_v41 = vadd.f32 %v974_v38, %v546_v37  ;;  %v468_v42 = vpop.f32.mrf.mxu0 }
 0x11c   :  { %v896_v43 = vpop.f32.mrf.mxu1 }
 0x11d   :  { %1224 = vst.msk [vmem:[%s2283_s5 + $0x48] sm:$0xf] %vm1205_vm2, %v1159_v40  ;;  %v1063_v44 = vadd.f32 %v1834_v39, %v975_v41  ;;  %v897_v45 = vadd.f32 %v896_v43, %v468_v42 }
 0x11f   :  { %v1127_v46 = vmax.f32 %v1063_v44, 0.0  ;;  %v1032_v47 = vadd.f32 %v1834_v39, %v897_v45 }
 0x121   :  { %v1191_v48 = vpack.c.bf16 %v1127_v46, %v1127_v46  ;;  %v1096_v49 = vmax.f32 %v1032_v47, 0.0  ;;  %v548_v50 = vpop.f32.mrf.mxu2 }
 0x122   :  { %v976_v51 = vpop.f32.mrf.mxu3 }
 0x123   :  { %1256 = vst.msk [vmem:[%s2283_s5 + $0xc8] sm:$0xf] %vm1205_vm2, %v1191_v48  ;;  %v1160_v52 = vpack.c.bf16 %v1096_v49, %v1096_v49  ;;  %v977_v53 = vadd.f32 %v976_v51, %v548_v50  ;;  %v471_v54 = vpop.f32.mrf.mxu0 }
 0x124   :  { %v899_v55 = vpop.f32.mrf.mxu1 }
 0x125   :  { %1225 = vst.msk [vmem:[%s2283_s5 + $0x4c] sm:$0xf] %vm1205_vm2, %v1160_v52  ;;  %v1064_v56 = vadd.f32 %v1834_v39, %v977_v53  ;;  %v900_v57 = vadd.f32 %v899_v55, %v471_v54 }
 0x127   :  { %v1128_v58 = vmax.f32 %v1064_v56, 0.0  ;;  %v1033_v59 = vadd.f32 %v1834_v39, %v900_v57 }
 0x129   :  { %v1192_v60 = vpack.c.bf16 %v1128_v58, %v1128_v58  ;;  %v1097_v61 = vmax.f32 %v1033_v59, 0.0  ;;  %v551_v62 = vpop.f32.mrf.mxu2 }
 0x12a   :  { %v979_v63 = vpop.f32.mrf.mxu3 }
 0x12b   :  { %1257 = vst.msk [vmem:[%s2283_s5 + $0xcc] sm:$0xf] %vm1205_vm2, %v1192_v60  ;;  %v1161_v0 = vpack.c.bf16 %v1097_v61, %v1097_v61  ;;  %v980_v1 = vadd.f32 %v979_v63, %v551_v62  ;;  %v473_v2 = vpop.f32.mrf.mxu0 }
 0x12c   :  { %v901_v3 = vpop.f32.mrf.mxu1 }
 0x12d   :  { %1226 = vst.msk [vmem:[%s2283_s5 + $0x50] sm:$0xf] %vm1205_vm2, %v1161_v0  ;;  %v1065_v4 = vadd.f32 %v1834_v39, %v980_v1  ;;  %v902_v5 = vadd.f32 %v901_v3, %v473_v2 }
 0x12f   :  { %v1129_v6 = vmax.f32 %v1065_v4, 0.0  ;;  %v1034_v7 = vadd.f32 %v1834_v39, %v902_v5 }
 0x131   :  { %v1193_v8 = vpack.c.bf16 %v1129_v6, %v1129_v6  ;;  %v1098_v9 = vmax.f32 %v1034_v7, 0.0  ;;  %v553_v10 = vpop.f32.mrf.mxu2 }
 0x132   :  { %v981_v11 = vpop.f32.mrf.mxu3 }
 0x133   :  { %1258 = vst.msk [vmem:[%s2283_s5 + $0xd0] sm:$0xf] %vm1205_vm2, %v1193_v8  ;;  %v1162_v12 = vpack.c.bf16 %v1098_v9, %v1098_v9  ;;  %v982_v13 = vadd.f32 %v981_v11, %v553_v10  ;;  %v476_v14 = vpop.f32.mrf.mxu0 }
 0x134   :  { %v904_v15 = vpop.f32.mrf.mxu1 }
 0x135   :  { %1227 = vst.msk [vmem:[%s2283_s5 + $0x54] sm:$0xf] %vm1205_vm2, %v1162_v12  ;;  %v1066_v16 = vadd.f32 %v1834_v39, %v982_v13  ;;  %v905_v17 = vadd.f32 %v904_v15, %v476_v14 }
 0x137   :  { %v1130_v18 = vmax.f32 %v1066_v16, 0.0  ;;  %v1035_v19 = vadd.f32 %v1834_v39, %v905_v17 }
 0x139   :  { %v1194_v20 = vpack.c.bf16 %v1130_v18, %v1130_v18  ;;  %v1099_v21 = vmax.f32 %v1035_v19, 0.0  ;;  %v556_v22 = vpop.f32.mrf.mxu2 }
 0x13a   :  { %v984_v23 = vpop.f32.mrf.mxu3 }
 0x13b   :  { %1259 = vst.msk [vmem:[%s2283_s5 + $0xd4] sm:$0xf] %vm1205_vm2, %v1194_v20  ;;  %v1163_v24 = vpack.c.bf16 %v1099_v21, %v1099_v21  ;;  %v985_v25 = vadd.f32 %v984_v23, %v556_v22  ;;  %v478_v26 = vpop.f32.mrf.mxu0 }
 0x13c   :  { %v906_v27 = vpop.f32.mrf.mxu1 }
 0x13d   :  { %1228 = vst.msk [vmem:[%s2283_s5 + $0x58] sm:$0xf] %vm1205_vm2, %v1163_v24  ;;  %v1067_v28 = vadd.f32 %v1834_v39, %v985_v25  ;;  %v907_v29 = vadd.f32 %v906_v27, %v478_v26 }
 0x13f   :  { %v1131_v30 = vmax.f32 %v1067_v28, 0.0  ;;  %v1036_v31 = vadd.f32 %v1834_v39, %v907_v29 }
 0x141   :  { %v1195_v32 = vpack.c.bf16 %v1131_v30, %v1131_v30  ;;  %v1100_v33 = vmax.f32 %v1036_v31, 0.0  ;;  %v558_v34 = vpop.f32.mrf.mxu2 }
 0x142   :  { %v986_v35 = vpop.f32.mrf.mxu3 }
 0x143   :  { %1260 = vst.msk [vmem:[%s2283_s5 + $0xd8] sm:$0xf] %vm1205_vm2, %v1195_v32  ;;  %v1164_v36 = vpack.c.bf16 %v1100_v33, %v1100_v33  ;;  %v987_v37 = vadd.f32 %v986_v35, %v558_v34  ;;  %v481_v38 = vpop.f32.mrf.mxu0 }
 0x144   :  { %v909_v40 = vpop.f32.mrf.mxu1 }
 0x145   :  { %1229 = vst.msk [vmem:[%s2283_s5 + $0x5c] sm:$0xf] %vm1205_vm2, %v1164_v36  ;;  %v1068_v41 = vadd.f32 %v1834_v39, %v987_v37  ;;  %v910_v42 = vadd.f32 %v909_v40, %v481_v38 }
 0x147   :  { %v1132_v43 = vmax.f32 %v1068_v41, 0.0  ;;  %v1037_v44 = vadd.f32 %v1834_v39, %v910_v42 }
 0x149   :  { %v1196_v45 = vpack.c.bf16 %v1132_v43, %v1132_v43  ;;  %v1101_v46 = vmax.f32 %v1037_v44, 0.0  ;;  %v561_v47 = vpop.f32.mrf.mxu2 }
 0x14a   :  { %v989_v48 = vpop.f32.mrf.mxu3 }
 0x14b   :  { %1261 = vst.msk [vmem:[%s2283_s5 + $0xdc] sm:$0xf] %vm1205_vm2, %v1196_v45  ;;  %v1165_v49 = vpack.c.bf16 %v1101_v46, %v1101_v46  ;;  %v990_v50 = vadd.f32 %v989_v48, %v561_v47  ;;  %v483_v51 = vpop.f32.mrf.mxu0 }
 0x14c   :  { %v911_v52 = vpop.f32.mrf.mxu1 }
 0x14d   :  { %1230 = vst.msk [vmem:[%s2283_s5 + $0x60] sm:$0xf] %vm1205_vm2, %v1165_v49  ;;  %v1069_v53 = vadd.f32 %v1834_v39, %v990_v50  ;;  %v912_v54 = vadd.f32 %v911_v52, %v483_v51 }
 0x14f   :  { %v1133_v55 = vmax.f32 %v1069_v53, 0.0  ;;  %v1038_v56 = vadd.f32 %v1834_v39, %v912_v54 }
 0x151   :  { %v1197_v57 = vpack.c.bf16 %v1133_v55, %v1133_v55  ;;  %v1102_v58 = vmax.f32 %v1038_v56, 0.0  ;;  %v563_v59 = vpop.f32.mrf.mxu2 }
 0x152   :  { %v991_v60 = vpop.f32.mrf.mxu3 }
 0x153   :  { %1262 = vst.msk [vmem:[%s2283_s5 + $0xe0] sm:$0xf] %vm1205_vm2, %v1197_v57  ;;  %v1166_v61 = vpack.c.bf16 %v1102_v58, %v1102_v58  ;;  %v992_v62 = vadd.f32 %v991_v60, %v563_v59  ;;  %v486_v63 = vpop.f32.mrf.mxu0 }
 0x154   :  { %v914_v0 = vpop.f32.mrf.mxu1 }
 0x155   :  { %1231 = vst.msk [vmem:[%s2283_s5 + $0x64] sm:$0xf] %vm1205_vm2, %v1166_v61  ;;  %v1070_v1 = vadd.f32 %v1834_v39, %v992_v62  ;;  %v915_v2 = vadd.f32 %v914_v0, %v486_v63 }
 0x157   :  { %v1134_v3 = vmax.f32 %v1070_v1, 0.0  ;;  %v1039_v4 = vadd.f32 %v1834_v39, %v915_v2 }
 0x159   :  { %v1198_v5 = vpack.c.bf16 %v1134_v3, %v1134_v3  ;;  %v1103_v6 = vmax.f32 %v1039_v4, 0.0  ;;  %v566_v7 = vpop.f32.mrf.mxu2 }
 0x15a   :  { %v994_v8 = vpop.f32.mrf.mxu3 }
 0x15b   :  { %1263 = vst.msk [vmem:[%s2283_s5 + $0xe4] sm:$0xf] %vm1205_vm2, %v1198_v5  ;;  %v1167_v9 = vpack.c.bf16 %v1103_v6, %v1103_v6  ;;  %v995_v10 = vadd.f32 %v994_v8, %v566_v7  ;;  %v488_v11 = vpop.f32.mrf.mxu0 }
 0x15c   :  { %v916_v12 = vpop.f32.mrf.mxu1 }
 0x15d   :  { %1232 = vst.msk [vmem:[%s2283_s5 + $0x68] sm:$0xf] %vm1205_vm2, %v1167_v9  ;;  %v1071_v13 = vadd.f32 %v1834_v39, %v995_v10  ;;  %v917_v14 = vadd.f32 %v916_v12, %v488_v11 }
 0x15f   :  { %v1135_v15 = vmax.f32 %v1071_v13, 0.0  ;;  %v1040_v16 = vadd.f32 %v1834_v39, %v917_v14 }
 0x161   :  { %v1199_v17 = vpack.c.bf16 %v1135_v15, %v1135_v15  ;;  %v1104_v18 = vmax.f32 %v1040_v16, 0.0  ;;  %v568_v19 = vpop.f32.mrf.mxu2 }
 0x162   :  { %v996_v20 = vpop.f32.mrf.mxu3 }
 0x163   :  { %1264 = vst.msk [vmem:[%s2283_s5 + $0xe8] sm:$0xf] %vm1205_vm2, %v1199_v17  ;;  %v1168_v21 = vpack.c.bf16 %v1104_v18, %v1104_v18  ;;  %v997_v22 = vadd.f32 %v996_v20, %v568_v19  ;;  %v491_v23 = vpop.f32.mrf.mxu0 }
 0x164   :  { %v919_v24 = vpop.f32.mrf.mxu1 }
 0x165   :  { %1233 = vst.msk [vmem:[%s2283_s5 + $0x6c] sm:$0xf] %vm1205_vm2, %v1168_v21  ;;  %v1072_v25 = vadd.f32 %v1834_v39, %v997_v22  ;;  %v920_v26 = vadd.f32 %v919_v24, %v491_v23 }
 0x167   :  { %v1136_v27 = vmax.f32 %v1072_v25, 0.0  ;;  %v1041_v28 = vadd.f32 %v1834_v39, %v920_v26 }
 0x169   :  { %v1200_v29 = vpack.c.bf16 %v1136_v27, %v1136_v27  ;;  %v1105_v30 = vmax.f32 %v1041_v28, 0.0  ;;  %v571_v31 = vpop.f32.mrf.mxu2 }
 0x16a   :  { %v999_v32 = vpop.f32.mrf.mxu3 }
 0x16b   :  { %1265 = vst.msk [vmem:[%s2283_s5 + $0xec] sm:$0xf] %vm1205_vm2, %v1200_v29  ;;  %v1169_v33 = vpack.c.bf16 %v1105_v30, %v1105_v30  ;;  %v1000_v34 = vadd.f32 %v999_v32, %v571_v31  ;;  %v493_v35 = vpop.f32.mrf.mxu0 }
 0x16c   :  { %v921_v36 = vpop.f32.mrf.mxu1 }
 0x16d   :  { %1234 = vst.msk [vmem:[%s2283_s5 + $0x70] sm:$0xf] %vm1205_vm2, %v1169_v33  ;;  %v1073_v37 = vadd.f32 %v1834_v39, %v1000_v34  ;;  %v922_v38 = vadd.f32 %v921_v36, %v493_v35 }
 0x16f   :  { %v1137_v40 = vmax.f32 %v1073_v37, 0.0  ;;  %v1042_v41 = vadd.f32 %v1834_v39, %v922_v38 }
 0x171   :  { %v1201_v42 = vpack.c.bf16 %v1137_v40, %v1137_v40  ;;  %v1106_v43 = vmax.f32 %v1042_v41, 0.0  ;;  %v573_v44 = vpop.f32.mrf.mxu2 }
 0x172   :  { %v1001_v45 = vpop.f32.mrf.mxu3 }
 0x173   :  { %1266 = vst.msk [vmem:[%s2283_s5 + $0xf0] sm:$0xf] %vm1205_vm2, %v1201_v42  ;;  %v1170_v46 = vpack.c.bf16 %v1106_v43, %v1106_v43  ;;  %v1002_v47 = vadd.f32 %v1001_v45, %v573_v44  ;;  %v496_v48 = vpop.f32.mrf.mxu0 }
 0x174   :  { %v924_v49 = vpop.f32.mrf.mxu1 }
 0x175   :  { %1235 = vst.msk [vmem:[%s2283_s5 + $0x74] sm:$0xf] %vm1205_vm2, %v1170_v46  ;;  %v1074_v50 = vadd.f32 %v1834_v39, %v1002_v47  ;;  %v925_v51 = vadd.f32 %v924_v49, %v496_v48 }
 0x177   :  { %v1138_v52 = vmax.f32 %v1074_v50, 0.0  ;;  %v1043_v53 = vadd.f32 %v1834_v39, %v925_v51 }
 0x179   :  { %v1202_v54 = vpack.c.bf16 %v1138_v52, %v1138_v52  ;;  %v1107_v55 = vmax.f32 %v1043_v53, 0.0  ;;  %v576_v56 = vpop.f32.mrf.mxu2 }
 0x17a   :  { %v1004_v57 = vpop.f32.mrf.mxu3 }
 0x17b   :  { %1267 = vst.msk [vmem:[%s2283_s5 + $0xf4] sm:$0xf] %vm1205_vm2, %v1202_v54  ;;  %v1171_v58 = vpack.c.bf16 %v1107_v55, %v1107_v55  ;;  %v1005_v59 = vadd.f32 %v1004_v57, %v576_v56  ;;  %v498_v60 = vpop.f32.mrf.mxu0 }
 0x17c   :  { %v926_v61 = vpop.f32.mrf.mxu1 }
 0x17d   :  { %1236 = vst.msk [vmem:[%s2283_s5 + $0x78] sm:$0xf] %vm1205_vm2, %v1171_v58  ;;  %v1075_v62 = vadd.f32 %v1834_v39, %v1005_v59  ;;  %v927_v63 = vadd.f32 %v926_v61, %v498_v60 }
 0x17f   :  { %v1139_v0 = vmax.f32 %v1075_v62, 0.0  ;;  %v1044_v1 = vadd.f32 %v1834_v39, %v927_v63 }
 0x181   :  { %v1203_v2 = vpack.c.bf16 %v1139_v0, %v1139_v0  ;;  %v1108_v3 = vmax.f32 %v1044_v1, 0.0  ;;  %v578_v4 = vpop.f32.mrf.mxu2 }
 0x182   :  { %v1006_v5 = vpop.f32.mrf.mxu3 }
 0x183   :  { %1268 = vst.msk [vmem:[%s2283_s5 + $0xf8] sm:$0xf] %vm1205_vm2, %v1203_v2  ;;  %v1172_v6 = vpack.c.bf16 %v1108_v3, %v1108_v3  ;;  %v1007_v7 = vadd.f32 %v1006_v5, %v578_v4 }
 0x185   :  { %1237 = vst.msk [vmem:[%s2283_s5 + $0x7c] sm:$0xf] %vm1205_vm2, %v1172_v6  ;;  %v1076_v8 = vadd.f32 %v1834_v39, %v1007_v7 }
 0x187   :  { %v1140_v9 = vmax.f32 %v1076_v8, 0.0 }
 0x189   :  { %v1204_v10 = vpack.c.bf16 %v1140_v9, %v1140_v9 }
 0x18b   :  { %1269 = vst.msk [vmem:[%s2283_s5 + $0xfc] sm:$0xf] %vm1205_vm2, %v1204_v10 }

// kernel: bottleneck_forward.4
= control target key start
LH: loop header
LB: loop body
LE: loop exit
PB: predicated region body
PF: predicated region fallthrough
CT: control target
= control target key end

     0   :  { %s5141_s12 = smov 0   ;;  %s5143_s13 = smov 0   ;;  %s6574_s0 = inlined_call_operand.vmem [shape: bf16[1,2,18,18,4], index: 0, kind: input, shape index: {}]   ;;  %s6575_s1 = inlined_call_operand.vmem [shape: bf16[9,4,4], index: 1, kind: input, shape index: {}]   ;;  %s6576_s2 = inlined_call_operand.vmem [shape: f32[1,4], index: 2, kind: input, shape index: {}]   ;;  %s6577_s3 = inlined_call_operand.vmem [shape: bf16[2,16,16,4], index: 3, kind: output, shape index: {}]  }
   0x1   :  { %s5145_s14 = smov 0  }
   0x2 LB: > { %s25_s15 = sadd.s32 1, %s5115_s13  ;;  %p4378_p0 = scmp.ge.s32.totalorder %s5119_s14, 1  ;;  %s5119_s14 = sphi %s5145_s14, %s13_s14   ;;  %s5115_s13 = sphi %s5143_s13, %s6589_s13   ;;  %s5111_s12 = sphi %s5141_s12, %s6588_s12  }
   0x3   : > { %p27_p1 = scmp.ge.s32.totalorder %s25_s15, 2  ;;  %p168_p2 = scmp.lt.s32.totalorder %s5119_s14, 3 }
   0x5   : > { %s6591_s15 = smov (%p27_p1, %s25_s15), 0  ;;  %p169_p3 = pnand %p4378_p0, %p168_p2 }
   0x7   : > { %172 = sbr.rel (%p169_p3) target bundleno = 761 (0x2f9), region = 32 }
   0xc   : > { %v4382_v0 = vld [vmem:[%s6575_s1 + $0x2] sm:$0x3]  ;;  %vm758_vm0 = vcmask 1041408   ;;  %p202_p4 = scmp.lt.s32.totalorder %s5111_s12, 1  ;;  %v4495_v2 = vld [vmem:[%s6575_s1 + $0x4] sm:$0x3] }
   0xd   : > { %v760_v1 = vsel %vm758_vm0, %v4382_v0, 0  ;;  %v1333_v3 = vsel %vm758_vm0, %v4495_v2, 0  ;;  %v4544_v4 = vld [vmem:[%s6575_s1 + $0x6] sm:$0x3]  ;;  %v255_v5 = vld [vmem:[%s6575_s1] sm:$0x3] }
   0xe   : > { %5017 = vmatpush.bf16.msra.mxu1 %v760_v1  ;;  %5018 = vmatpush.bf16.msra.mxu2 %v760_v1  ;;  %s6593_s12 = smov (!%p202_p4, %s5111_s12), 1  ;;  %v4673_v6 = vld [vmem:[%s6575_s1 + $0x8] sm:$0x3]  ;;  %v1620_v7 = vsel %vm758_vm0, %v4544_v4, 0  ;;  %v980_v8 = vsel %vm758_vm0, %v255_v5, 0  ;;  %vm709_vm4 = vcmask 31744  }
   0xf   : > { %5019 = vmatpush.bf16.msra.mxu3 %v760_v1  ;;  %769 = vmatpush.bf16.msra.mxu0 %v760_v1  ;;  %s5020_s26 = smul.u32 216, %s6593_s12  ;;  %v2274_v9 = vsel %vm758_vm0, %v4673_v6, 0  ;;  %vm272_vm1 = vsmask.f32 3328  ;;  %vm273_vm2 = vsmask.f32 7440 }
  0x10   : > { %vm5197_vm3 = vmor %vm272_vm1, %vm273_vm2  ;;  %vm1119_vm5 = vcmask 1042432   ;;  %vm1120_vm6 = vcmask 1046532   ;;  %s4968_s17 = sshll.u32 %s6593_s12, 7  ;;  %vm4234_vm8 = vcmask 27648  }
  0x11   : > { %s5185_s29 = scalar_lea.vmem %s6574_s0, %s5020_s26  ;;  %vm5371_vm7 = vmor %vm1119_vm5, %vm1120_vm6  ;;  %s6230_s20 = scalar_lea.vmem %s6577_s3, %s4968_s17 }
  0x12   : > { %1342 = vmatpush.bf16.msrb.mxu2 %v1333_v3  ;;  %989 = vmatpush.bf16.msrb.mxu1 %v980_v8  ;;  %v231_v10 = vld [vmem:[%s5185_s29 + $0x30] sm:$0xf]  ;;  %v232_v11 = vld [vmem:[%s5185_s29 + $0x34] sm:$0xf]  ;;  %v260_v12 = vld [vmem:[%s5185_s29 + $0x38] sm:$0x1] }
  0x13   : > { %1629 = vmatpush.bf16.msrb.mxu3 %v1620_v7  ;;  %2283 = vmatpush.bf16.msrb.mxu0 %v2274_v9  ;;  %v372_v13 = vshrl.u32 %v231_v10, 16  ;;  %v375_v14 = vshll.u32 %v231_v10, 16  ;;  %v381_v15 = vshll.u32 %v232_v11, 16  ;;  %v385_v16 = vshrl.u32 %v232_v11, 16  ;;  %v239_v17 = vld [vmem:[%s5185_s29 + $0x60] sm:$0xf] }
  0x14   : > { %v391_v18 = vshll.u32 %v260_v12, 16  ;;  %v240_v19 = vld [vmem:[%s5185_s29 + $0x64] sm:$0xf]  ;;  %v264_v20 = vld [vmem:[%s5185_s29 + $0x68] sm:$0x1]  ;;  %v468_v21 = vshrl.u32 %v239_v17, 16 }
  0x15   : > { %v374_v22 = vrot.slane %v372_v13, 4  ;;  %v377_v23 = vrot.slane %v375_v14, 5  ;;  %v383_v24 = vrot.slane %v381_v15, 5  ;;  %v387_v25 = vrot.slane %v385_v16, 4  ;;  %v247_v26 = vld [vmem:[%s5185_s29 + $0x90] sm:$0xf] }
  0x16   : > { %v393_v27 = vrot.slane %v391_v18, 5  ;;  %v470_v28 = vrot.slane %v468_v21, 4  ;;  %v471_v29 = vshll.u32 %v239_v17, 16  ;;  %v477_v30 = vshll.u32 %v240_v19, 16  ;;  %v248_v35 = vld [vmem:[%s5185_s29 + $0x94] sm:$0xf] }
  0x17   : > { %v378_v31 = vor.u32 %v377_v23, %v374_v22  ;;  %v388_v32 = vor.u32 %v387_v25, %v383_v24  ;;  %v481_v33 = vshrl.u32 %v240_v19, 16  ;;  %v487_v34 = vshll.u32 %v264_v20, 16  ;;  %v268_v45 = vld [vmem:[%s5185_s29 + $0x98] sm:$0x1]  ;;  %v223_v61 = vld [vmem:[%s5185_s29] sm:$0xf] }
  0x18   : > { %v473_v37 = vrot.slane %v471_v29, 5  ;;  %v479_v38 = vrot.slane %v477_v30, 5  ;;  %v564_v39 = vshrl.u32 %v247_v26, 16  ;;  %v567_v47 = vshll.u32 %v247_v26, 16  ;;  %v5210_v1 = vld [vmem:[%s5185_s29 + $0x4] sm:$0xf] }
  0x19   : > { %v379_v40 = vrot.slane %v378_v31, 4  ;;  %v389_v41 = vrot.slane %v388_v32, 4  ;;  %v483_v42 = vrot.slane %v481_v33, 4  ;;  %v489_v43 = vrot.slane %v487_v34, 5  ;;  %v5213_v2 = vld [vmem:[%s5185_s29 + $0x8] sm:$0x1] }
  0x1a   : > { %v474_v44 = vor.u32 %v473_v37, %v470_v28  ;;  %v566_v46 = vrot.slane %v564_v39, 4  ;;  %v573_v48 = vshll.u32 %v248_v35, 16  ;;  %v577_v52 = vshrl.u32 %v248_v35, 16  ;;  %v233_v19 = vld [vmem:[%s5185_s29 + $0x3c] sm:$0xf] }
  0x1b   : > { %v384_v49 = vsel %vm5197_vm3, %v379_v40, %v383_v24  ;;  %v394_v50 = vsel %vm5197_vm3, %v389_v41, %v393_v27  ;;  %v484_v51 = vor.u32 %v483_v42, %v479_v38  ;;  %v569_v56 = vrot.slane %v567_v47, 5  ;;  %v5225_v20 = vld [vmem:[%s5185_s29 + $0x40] sm:$0xf]  ;;  %v5230_v25 = vld [vmem:[%s5185_s29 + $0x44] sm:$0x1] }
  0x1c   : > { %v669_v53 = vunpack.c.l.b16 %v384_v49  ;;  %v670_v54 = vunpack.c.l.b16 %v394_v50  ;;  %v475_v55 = vrot.slane %v474_v44, 4  ;;  %v575_v58 = vrot.slane %v573_v48, 5  ;;  %v241_v33 = vld [vmem:[%s5185_s29 + $0x6c] sm:$0xf]  ;;  %v265_v47 = vld [vmem:[%s5185_s29 + $0x74] sm:$0x1] }
  0x1d   : > { %v485_v57 = vrot.slane %v484_v51, 4  ;;  %v579_v59 = vrot.slane %v577_v52, 4  ;;  %v583_v60 = vshll.u32 %v268_v45, 16  ;;  %v570_v0 = vor.u32 %v569_v56, %v566_v46 }
  0x1e   : > { %v697_v62 = vpack.c.b16 %v670_v54, %v669_v53  ;;  %v480_v63 = vsel %vm5197_vm3, %v475_v55, %v479_v38  ;;  %v276_v9 = vshrl.u32 %v223_v61, 16  ;;  %v279_v10 = vshll.u32 %v223_v61, 16  ;;  %v249_v61 = vld [vmem:[%s5185_s29 + $0x9c] sm:$0xf] }
  0x1f   : > { %v490_v3 = vsel %vm5197_vm3, %v485_v57, %v489_v43  ;;  %v677_v4 = vunpack.c.l.b16 %v480_v63  ;;  %v580_v5 = vor.u32 %v579_v59, %v575_v58  ;;  %v585_v6 = vrot.slane %v583_v60, 5  ;;  %v242_v43 = vld [vmem:[%s5185_s29 + $0x70] sm:$0xf] }
  0x20   : > { %4387 = vmatmul.msk.bf16.vlgmr.msra.gmra.mxu1 %vm709_vm4, %v697_v62  ;;  %v678_v7 = vunpack.c.l.b16 %v490_v3  ;;  %v571_v8 = vrot.slane %v570_v0, 4  ;;  %v285_v12 = vshll.u32 %v5210_v1, 16  ;;  %v289_v13 = vshrl.u32 %v5210_v1, 16  ;;  %v250_v3 = vld [vmem:[%s5185_s29 + $0xa0] sm:$0xf] }
  0x21   : > { %v581_v11 = vrot.slane %v580_v5, 4  ;;  %v295_v14 = vshll.u32 %v5213_v2, 16  ;;  %v278_v17 = vrot.slane %v276_v9, 4  ;;  %v281_v18 = vrot.slane %v279_v10, 5 }
  0x22   : > { %v701_v15 = vpack.c.b16 %v678_v7, %v677_v4  ;;  %v576_v16 = vsel %vm5197_vm3, %v571_v8, %v575_v58  ;;  %v287_v23 = vrot.slane %v285_v12, 5  ;;  %v291_v24 = vrot.slane %v289_v13, 4  ;;  %v269_v8 = vld [vmem:[%s5185_s29 + $0xa4] sm:$0x1] }
  0x23   : > { %v586_v21 = vsel %vm5197_vm3, %v581_v11, %v585_v6  ;;  %v685_v22 = vunpack.c.l.b16 %v576_v16  ;;  %v282_v27 = vor.u32 %v281_v18, %v278_v17  ;;  %v297_v28 = vrot.slane %v295_v14, 5 }
  0x24   : > { %4391 = vmatmul.msk.bf16.vlgmr.msra.gmra.mxu2 %vm709_vm4, %v701_v15  ;;  %v686_v26 = vunpack.c.l.b16 %v586_v21  ;;  %v292_v29 = vor.u32 %v291_v24, %v287_v23  ;;  %v396_v30 = vshrl.u32 %v233_v19, 16  ;;  %v399_v31 = vshll.u32 %v233_v19, 16 }
  0x25   : > { %v405_v32 = vshll.u32 %v5225_v20, 16  ;;  %v283_v35 = vrot.slane %v282_v27, 4  ;;  %v409_v37 = vshrl.u32 %v5225_v20, 16  ;;  %v415_v38 = vshll.u32 %v5230_v25, 16 }
  0x26   : > { %v705_v34 = vpack.c.b16 %v686_v26, %v685_v22  ;;  %v293_v39 = vrot.slane %v292_v29, 4  ;;  %v398_v40 = vrot.slane %v396_v30, 4  ;;  %v401_v41 = vrot.slane %v399_v31, 5  ;;  %v225_v22 = vld [vmem:[%s5185_s29 + $0xc] sm:$0xf] }
  0x27   : > { %v407_v42 = vrot.slane %v405_v32, 5  ;;  %v288_v44 = vsel %vm5197_vm3, %v283_v35, %v287_v23  ;;  %v411_v45 = vrot.slane %v409_v37, 4  ;;  %v417_v46 = vrot.slane %v415_v38, 5  ;;  %v5259_v32 = vld [vmem:[%s5185_s29 + $0x14] sm:$0x1] }
  0x28   : > { %4395 = vmatmul.msk.bf16.vlgmr.msra.gmra.mxu3 %vm709_vm4, %v705_v34  ;;  %v492_v48 = vshrl.u32 %v241_v33, 16  ;;  %v298_v49 = vsel %vm5197_vm3, %v293_v39, %v297_v28  ;;  %v661_v50 = vunpack.c.l.b16 %v288_v44  ;;  %v402_v51 = vor.u32 %v401_v41, %v398_v40  ;;  %v5256_v28 = vld [vmem:[%s5185_s29 + $0x10] sm:$0xf] }
  0x29   : > { %v495_v52 = vshll.u32 %v241_v33, 16  ;;  %v662_v53 = vunpack.c.l.b16 %v298_v49  ;;  %v412_v54 = vor.u32 %v411_v45, %v407_v42  ;;  %v501_v56 = vshll.u32 %v242_v43, 16 }
  0x2a   : > { %v494_v55 = vrot.slane %v492_v48, 4  ;;  %v403_v57 = vrot.slane %v402_v51, 4  ;;  %v505_v59 = vshrl.u32 %v242_v43, 16  ;;  %v511_v60 = vshll.u32 %v265_v47, 16  ;;  %v5269_v47 = vld [vmem:[%s5185_s29 + $0x4c] sm:$0xf] }
  0x2b   : > { %v497_v58 = vrot.slane %v495_v52, 5  ;;  %v693_v62 = vpack.c.b16 %v662_v53, %v661_v50  ;;  %v413_v63 = vrot.slane %v412_v54, 4  ;;  %v503_v0 = vrot.slane %v501_v56, 5  ;;  %v5274_v56 = vld [vmem:[%s5185_s29 + $0x50] sm:$0x1] }
  0x2c   : > { %v408_v4 = vsel %vm5197_vm3, %v403_v57, %v407_v42  ;;  %v507_v6 = vrot.slane %v505_v59, 4  ;;  %v513_v7 = vrot.slane %v511_v60, 5  ;;  %v588_v11 = vshrl.u32 %v249_v61, 16  ;;  %v235_v42 = vld [vmem:[%s5185_s29 + $0x48] sm:$0xf] }
  0x2d   : > { %v498_v5 = vor.u32 %v497_v58, %v494_v55  ;;  %4383 = vmatmul.msk.bf16.vlgmr.msra.gmra.mxu0 %vm709_vm4, %v693_v62  ;;  %v418_v9 = vsel %vm5197_vm3, %v413_v63, %v417_v46  ;;  %v671_v10 = vunpack.c.l.b16 %v408_v4  ;;  %v591_v12 = vshll.u32 %v249_v61, 16 }
  0x2e   : > { %v672_v13 = vunpack.c.l.b16 %v418_v9  ;;  %v508_v15 = vor.u32 %v507_v6, %v503_v0  ;;  %v597_v16 = vshll.u32 %v250_v3, 16  ;;  %v590_v17 = vrot.slane %v588_v11, 4 }
  0x2f   : > { %v499_v14 = vrot.slane %v498_v5, 4  ;;  %v593_v18 = vrot.slane %v591_v12, 5  ;;  %v601_v19 = vshrl.u32 %v250_v3, 16  ;;  %v607_v21 = vshll.u32 %v269_v8, 16  ;;  %v243_v3 = vld [vmem:[%s5185_s29 + $0x78] sm:$0xf] }
  0x30   : > { %v698_v23 = vpack.c.b16 %v672_v13, %v671_v10  ;;  %v509_v26 = vrot.slane %v508_v15, 4  ;;  %v599_v27 = vrot.slane %v597_v16, 5  ;;  %v300_v35 = vshrl.u32 %v225_v22, 16  ;;  %v244_v8 = vld [vmem:[%s5185_s29 + $0x7c] sm:$0xf] }
  0x31   : > { %v504_v24 = vsel %vm5197_vm3, %v499_v14, %v503_v0  ;;  %v594_v30 = vor.u32 %v593_v18, %v590_v17  ;;  %v603_v31 = vrot.slane %v601_v19, 4  ;;  %v609_v34 = vrot.slane %v607_v21, 5  ;;  %v266_v16 = vld [vmem:[%s5185_s29 + $0x80] sm:$0x1] }
  0x32   : > { %v679_v29 = vunpack.c.l.b16 %v504_v24  ;;  %4388 = vmatmul.msk.bf16.gmra.mxu1 %vm709_vm4, %v698_v23  ;;  %v514_v33 = vsel %vm5197_vm3, %v509_v26, %v513_v7  ;;  %v303_v37 = vshll.u32 %v225_v22, 16  ;;  %v309_v41 = vshll.u32 %v5256_v28, 16 }
  0x33   : > { %v680_v38 = vunpack.c.l.b16 %v514_v33  ;;  %v595_v39 = vrot.slane %v594_v30, 4  ;;  %v604_v40 = vor.u32 %v603_v31, %v599_v27  ;;  %v302_v43 = vrot.slane %v300_v35, 4 }
  0x34   : > { %v305_v44 = vrot.slane %v303_v37, 5  ;;  %v313_v45 = vshrl.u32 %v5256_v28, 16  ;;  %v319_v46 = vshll.u32 %v5259_v32, 16  ;;  %v311_v51 = vrot.slane %v309_v41, 5 }
  0x35   : > { %v702_v48 = vpack.c.b16 %v680_v38, %v679_v29  ;;  %v600_v49 = vsel %vm5197_vm3, %v595_v39, %v599_v27  ;;  %v605_v50 = vrot.slane %v604_v40, 4  ;;  %v420_v58 = vshrl.u32 %v235_v42, 16  ;;  %v252_v39 = vld [vmem:[%s5185_s29 + $0xac] sm:$0xf]  ;;  %v270_v40 = vld [vmem:[%s5185_s29 + $0xb0] sm:$0x1] }
  0x36   : > { %v687_v52 = vunpack.c.l.b16 %v600_v49  ;;  %v306_v53 = vor.u32 %v305_v44, %v302_v43  ;;  %v315_v54 = vrot.slane %v313_v45, 4  ;;  %v321_v55 = vrot.slane %v319_v46, 5 }
  0x37   : > { %4392 = vmatmul.msk.bf16.gmra.mxu2 %vm709_vm4, %v702_v48  ;;  %v610_v57 = vsel %vm5197_vm3, %v605_v50, %v609_v34  ;;  %v423_v59 = vshll.u32 %v235_v42, 16  ;;  %v429_v60 = vshll.u32 %v5269_v47, 16  ;;  %v433_v0 = vshrl.u32 %v5269_v47, 16  ;;  %v251_v34 = vld [vmem:[%s5185_s29 + $0xa8] sm:$0xf] }
  0x38   : > { %v688_v61 = vunpack.c.l.b16 %v610_v57  ;;  %v307_v62 = vrot.slane %v306_v53, 4  ;;  %v316_v63 = vor.u32 %v315_v54, %v311_v51  ;;  %v422_v4 = vrot.slane %v420_v58, 4 }
  0x39   : > { %v425_v5 = vrot.slane %v423_v59, 5  ;;  %v431_v6 = vrot.slane %v429_v60, 5  ;;  %v439_v7 = vshll.u32 %v5274_v56, 16  ;;  %v435_v12 = vrot.slane %v433_v0, 4  ;;  %v227_v59 = vld [vmem:[%s5185_s29 + $0x18] sm:$0xf] }
  0x3a   : > { %v706_v9 = vpack.c.b16 %v688_v61, %v687_v52  ;;  %v312_v10 = vsel %vm5197_vm3, %v307_v62, %v311_v51  ;;  %v317_v11 = vrot.slane %v316_v63, 4  ;;  %v516_v17 = vshrl.u32 %v243_v3, 16  ;;  %v5302_v63 = vld [vmem:[%s5185_s29 + $0x1c] sm:$0xf]  ;;  %v5305_v0 = vld [vmem:[%s5185_s29 + $0x20] sm:$0x1] }
  0x3b   : > { %v663_v13 = vunpack.c.l.b16 %v312_v10  ;;  %v426_v14 = vor.u32 %v425_v5, %v422_v4  ;;  %v441_v15 = vrot.slane %v439_v7, 5  ;;  %v436_v19 = vor.u32 %v435_v12, %v431_v6 }
  0x3c   : > { %4396 = vmatmul.msk.bf16.gmra.mxu3 %vm709_vm4, %v706_v9  ;;  %v322_v18 = vsel %vm5197_vm3, %v317_v11, %v321_v55  ;;  %v519_v21 = vshll.u32 %v243_v3, 16  ;;  %v525_v22 = vshll.u32 %v244_v8, 16  ;;  %v518_v26 = vrot.slane %v516_v17, 4 }
  0x3d   : > { %v664_v23 = vunpack.c.l.b16 %v322_v18  ;;  %v427_v24 = vrot.slane %v426_v14, 4  ;;  %v529_v27 = vshrl.u32 %v244_v8, 16  ;;  %v437_v29 = vrot.slane %v436_v19, 4 }
  0x3e   : > { %v521_v30 = vrot.slane %v519_v21, 5  ;;  %v527_v31 = vrot.slane %v525_v22, 5  ;;  %v535_v33 = vshll.u32 %v266_v16, 16  ;;  %v612_v48 = vshrl.u32 %v251_v34, 16  ;;  %v5315_v21 = vld [vmem:[%s5185_s29 + $0x58] sm:$0xf] }
  0x3f   : > { %v694_v35 = vpack.c.b16 %v664_v23, %v663_v13  ;;  %v432_v37 = vsel %vm5197_vm3, %v427_v24, %v431_v6  ;;  %v531_v38 = vrot.slane %v529_v27, 4  ;;  %v442_v41 = vsel %vm5197_vm3, %v437_v29, %v441_v15  ;;  %v237_v15 = vld [vmem:[%s5185_s29 + $0x54] sm:$0xf]  ;;  %v5320_v27 = vld [vmem:[%s5185_s29 + $0x5c] sm:$0x1] }
  0x40   : > { %v673_v42 = vunpack.c.l.b16 %v432_v37  ;;  %v522_v43 = vor.u32 %v521_v30, %v518_v26  ;;  %v537_v44 = vrot.slane %v535_v33, 5  ;;  %v674_v45 = vunpack.c.l.b16 %v442_v41 }
  0x41   : > { %4384 = vmatmul.msk.bf16.gmra.mxu0 %vm709_vm4, %v694_v35  ;;  %v532_v46 = vor.u32 %v531_v38, %v527_v31  ;;  %v615_v49 = vshll.u32 %v251_v34, 16  ;;  %v621_v51 = vshll.u32 %v252_v39, 16  ;;  %v625_v52 = vshrl.u32 %v252_v39, 16  ;;  %v245_v39 = vld [vmem:[%s5185_s29 + $0x84] sm:$0xf] }
  0x42   : > { %v523_v50 = vrot.slane %v522_v43, 4  ;;  %v631_v53 = vshll.u32 %v270_v40, 16  ;;  %v699_v54 = vpack.c.b16 %v674_v45, %v673_v42  ;;  %v614_v57 = vrot.slane %v612_v48, 4 }
  0x43   : > { %v533_v55 = vrot.slane %v532_v46, 4  ;;  %v617_v58 = vrot.slane %v615_v49, 5  ;;  %v623_v61 = vrot.slane %v621_v51, 5  ;;  %v627_v62 = vrot.slane %v625_v52, 4  ;;  %v246_v49 = vld [vmem:[%s5185_s29 + $0x88] sm:$0xf] }
  0x44   : > { %v528_v60 = vsel %vm5197_vm3, %v523_v50, %v527_v31  ;;  %4389 = vmatmul.msk.bf16.gmra.mxu1 %vm709_vm4, %v699_v54  ;;  %v633_v6 = vrot.slane %v631_v53, 5  ;;  %v324_v9 = vshrl.u32 %v227_v59, 16  ;;  %v327_v10 = vshll.u32 %v227_v59, 16  ;;  %v267_v53 = vld [vmem:[%s5185_s29 + $0x8c] sm:$0x1] }
  0x45   : > { %v538_v3 = vsel %vm5197_vm3, %v533_v55, %v537_v44  ;;  %v681_v4 = vunpack.c.l.b16 %v528_v60  ;;  %v618_v5 = vor.u32 %v617_v58, %v614_v57  ;;  %v628_v8 = vor.u32 %v627_v62, %v623_v61 }
  0x46   : > { %v682_v7 = vunpack.c.l.b16 %v538_v3  ;;  %v333_v12 = vshll.u32 %v5302_v63, 16  ;;  %v337_v13 = vshrl.u32 %v5302_v63, 16  ;;  %v343_v14 = vshll.u32 %v5305_v0, 16 }
  0x47   : > { %v619_v11 = vrot.slane %v618_v5, 4  ;;  %v629_v17 = vrot.slane %v628_v8, 4  ;;  %v326_v18 = vrot.slane %v324_v9, 4  ;;  %v329_v19 = vrot.slane %v327_v10, 5  ;;  %v253_v8 = vld [vmem:[%s5185_s29 + $0xb4] sm:$0xf] }
  0x48   : > { %v703_v16 = vpack.c.b16 %v682_v7, %v681_v4  ;;  %v335_v23 = vrot.slane %v333_v12, 5  ;;  %v339_v24 = vrot.slane %v337_v13, 4  ;;  %v345_v26 = vrot.slane %v343_v14, 5  ;;  %v254_v12 = vld [vmem:[%s5185_s29 + $0xb8] sm:$0xf] }
  0x49   : > { %v624_v22 = vsel %vm5197_vm3, %v619_v11, %v623_v61  ;;  %v634_v29 = vsel %vm5197_vm3, %v629_v17, %v633_v6  ;;  %v330_v31 = vor.u32 %v329_v19, %v326_v18  ;;  %v444_v33 = vshrl.u32 %v237_v15, 16  ;;  %v271_v17 = vld [vmem:[%s5185_s29 + $0xbc] sm:$0x1] }
  0x4a   : > { %4393 = vmatmul.msk.bf16.gmra.mxu2 %vm709_vm4, %v703_v16  ;;  %v689_v30 = vunpack.c.l.b16 %v624_v22  ;;  %v690_v34 = vunpack.c.l.b16 %v634_v29  ;;  %v340_v35 = vor.u32 %v339_v24, %v335_v23  ;;  %v447_v37 = vshll.u32 %v237_v15, 16 }
  0x4b   : > { %v453_v38 = vshll.u32 %v5315_v21, 16  ;;  %v331_v40 = vrot.slane %v330_v31, 4  ;;  %v446_v41 = vrot.slane %v444_v33, 4  ;;  %v457_v42 = vshrl.u32 %v5315_v21, 16 }
  0x4c   : > { %v463_v43 = vshll.u32 %v5320_v27, 16  ;;  %v707_v44 = vpack.c.b16 %v690_v34, %v689_v30  ;;  %v341_v45 = vrot.slane %v340_v35, 4  ;;  %v449_v46 = vrot.slane %v447_v37, 5  ;;  %v229_v37 = vld [vmem:[%s5185_s29 + $0x24] sm:$0xf] }
  0x4d   : > { %v455_v48 = vrot.slane %v453_v38, 5  ;;  %v336_v50 = vsel %vm5197_vm3, %v331_v40, %v335_v23  ;;  %v459_v51 = vrot.slane %v457_v42, 4  ;;  %v540_v54 = vshrl.u32 %v245_v39, 16  ;;  %v5348_v42 = vld [vmem:[%s5185_s29 + $0x28] sm:$0xf] }
  0x4e   : > { %v465_v52 = vrot.slane %v463_v43, 5  ;;  %4397 = vmatmul.msk.bf16.gmra.mxu3 %vm709_vm4, %v707_v44  ;;  %v346_v55 = vsel %vm5197_vm3, %v341_v45, %v345_v26  ;;  %v665_v57 = vunpack.c.l.b16 %v336_v50  ;;  %v450_v58 = vor.u32 %v449_v46, %v446_v41 }
  0x4f   : > { %v543_v59 = vshll.u32 %v245_v39, 16  ;;  %v666_v60 = vunpack.c.l.b16 %v346_v55  ;;  %v460_v61 = vor.u32 %v459_v51, %v455_v48  ;;  %v542_v62 = vrot.slane %v540_v54, 4 }
  0x50   : > { %v549_v3 = vshll.u32 %v246_v49, 16  ;;  %v451_v4 = vrot.slane %v450_v58, 4  ;;  %v553_v6 = vshrl.u32 %v246_v49, 16  ;;  %v559_v7 = vshll.u32 %v267_v53, 16 }
  0x51   : > { %v545_v5 = vrot.slane %v543_v59, 5  ;;  %v695_v9 = vpack.c.b16 %v666_v60, %v665_v57  ;;  %v461_v10 = vrot.slane %v460_v61, 4  ;;  %v636_v22 = vshrl.u32 %v253_v8, 16  ;;  %v1071_v61 = vld [vmem:[%s5185_s29] sm:$0xe] }
  0x52   : > { %v551_v11 = vrot.slane %v549_v3, 5  ;;  %v456_v13 = vsel %vm5197_vm3, %v451_v4, %v455_v48  ;;  %v555_v15 = vrot.slane %v553_v6, 4  ;;  %v561_v16 = vrot.slane %v559_v7, 5  ;;  %v5352_v48 = vld [vmem:[%s5185_s29 + $0x2c] sm:$0x1] }
  0x53   : > { %v546_v14 = vor.u32 %v545_v5, %v542_v62  ;;  %4385 = vmatmul.msk.bf16.gmra.mxu0 %vm709_vm4, %v695_v9  ;;  %v466_v18 = vsel %vm5197_vm3, %v461_v10, %v465_v52  ;;  %v675_v19 = vunpack.c.l.b16 %v456_v13  ;;  %v639_v23 = vshll.u32 %v253_v8, 16  ;;  %v4625_v6 = vld [vmem:[%s5185_s29 + $0xc] sm:$0xf] }
  0x54   : > { %v676_v24 = vunpack.c.l.b16 %v466_v18  ;;  %v556_v29 = vor.u32 %v555_v15, %v551_v11  ;;  %v645_v30 = vshll.u32 %v254_v12, 16  ;;  %v638_v31 = vrot.slane %v636_v22, 4 }
  0x55   : > { %v547_v26 = vrot.slane %v546_v14, 4  ;;  %v641_v33 = vrot.slane %v639_v23, 5  ;;  %v649_v34 = vshrl.u32 %v254_v12, 16  ;;  %v655_v35 = vshll.u32 %v271_v17, 16  ;;  %v4626_v12 = vld [vmem:[%s5185_s29 + $0x10] sm:$0xf] }
  0x56   : > { %v700_v38 = vpack.c.b16 %v676_v24, %v675_v19  ;;  %v557_v40 = vrot.slane %v556_v29, 4  ;;  %v647_v41 = vrot.slane %v645_v30, 5  ;;  %v1127_v43 = vrot.slane %v5213_v2, 5 }
  0x57   : > { %v552_v39 = vsel %vm5197_vm3, %v547_v26, %v551_v11  ;;  %v642_v45 = vor.u32 %v641_v33, %v638_v31  ;;  %v651_v46 = vrot.slane %v649_v34, 4  ;;  %v657_v50 = vrot.slane %v655_v35, 5  ;;  %v4771_v11 = vld [vmem:[%s6575_s1 + $0xc] sm:$0x3] }
  0x58   : > { %v683_v44 = vunpack.c.l.b16 %v552_v39  ;;  %4390 = vmatmul.msk.bf16.gmra.mxu1 %vm709_vm4, %v700_v38  ;;  %v562_v49 = vsel %vm5197_vm3, %v557_v40, %v561_v16  ;;  %v348_v51 = vshrl.u32 %v229_v37, 16  ;;  %v351_v52 = vshll.u32 %v229_v37, 16  ;;  %v4627_v38 = vld [vmem:[%s5185_s29 + $0x14] sm:$0x1] }
  0x59   : > { %v684_v53 = vunpack.c.l.b16 %v562_v49  ;;  %v643_v54 = vrot.slane %v642_v45, 4  ;;  %v652_v55 = vor.u32 %v651_v46, %v647_v41  ;;  %v357_v2 = vshll.u32 %v5348_v42, 16  ;;  %v4900_v45 = vld [vmem:[%s6575_s1 + $0xe] sm:$0x3] }
  0x5a   : > { %v350_v57 = vrot.slane %v348_v51, 4  ;;  %v353_v58 = vrot.slane %v351_v52, 5  ;;  %v361_v59 = vshrl.u32 %v5348_v42, 16  ;;  %v367_v60 = vshll.u32 %v5352_v48, 16  ;;  %v4969_v51 = vld [vmem:[%s5185_s29] sm:$0xff] }
  0x5b   : > { %v704_v62 = vpack.c.b16 %v684_v53, %v683_v44  ;;  %v648_v3 = vsel %vm5197_vm3, %v643_v54, %v647_v41  ;;  %v653_v4 = vrot.slane %v652_v55, 4  ;;  %v359_v5 = vrot.slane %v357_v2, 5  ;;  %v4949_v2 = vld [vmem:[%s6575_s1 + $0x10] sm:$0x3] }
  0x5c   : > { %v691_v7 = vunpack.c.l.b16 %v648_v3  ;;  %v354_v8 = vor.u32 %v353_v58, %v350_v57  ;;  %v363_v9 = vrot.slane %v361_v59, 4  ;;  %v369_v10 = vrot.slane %v367_v60, 5 }
  0x5d   : > { %4394 = vmatmul.msk.bf16.gmra.mxu2 %vm709_vm4, %v704_v62  ;;  %v658_v13 = vsel %vm5197_vm3, %v653_v4, %v657_v50  ;;  %v4479_v14 = vrot.slane %v1071_v61, 9  ;;  %v1124_v19 = vrot.slane %v5210_v1, 5  ;;  %v2959_v22 = vsel %vm758_vm0, %v4771_v11, 0  ;;  %v4722_v50 = vld [vmem:[%s6575_s1 + $0xa] sm:$0x3] }
  0x5e   : > { %v692_v15 = vunpack.c.l.b16 %v658_v13  ;;  %v355_v16 = vrot.slane %v354_v8, 4  ;;  %v364_v17 = vor.u32 %v363_v9, %v359_v5  ;;  %v1792_v23 = vshrl.u32 %v4625_v6, 16  ;;  %2968 = vmatpush.bf16.msra.mxu2 %v2959_v22  ;;  %v1072_v8 = vld [vmem:[%s5185_s29 + $0xc] sm:$0xe] }
  0x5f   : > { %v1795_v24 = vshll.u32 %v4625_v6, 16  ;;  %v1801_v26 = vshll.u32 %v4626_v12, 16  ;;  %v1125_v33 = vsel %vm5371_vm7, %v4479_v14, %v1124_v19  ;;  %v1126_v35 = vrot.slane %v1124_v19, 4  ;;  %v4629_v6 = vld [vmem:[%s5185_s29 + $0x1c] sm:$0xf] }
  0x60   : > { %v708_v29 = vpack.c.b16 %v692_v15, %v691_v7  ;;  %v360_v30 = vsel %vm5197_vm3, %v355_v16, %v359_v5  ;;  %v365_v31 = vrot.slane %v364_v17, 4  ;;  %v1236_v37 = vunpack.c.l.b16 %v1125_v33  ;;  %v4628_v5 = vld [vmem:[%s5185_s29 + $0x18] sm:$0xf]  ;;  %v4985_v15 = vld [vmem:[%s5185_s29 + $0xc] sm:$0xff] }
  0x61   : > { %v667_v34 = vunpack.c.l.b16 %v360_v30  ;;  %v1794_v1 = vrot.slane %v1792_v23, 4  ;;  %v1797_v40 = vrot.slane %v1795_v24, 5  ;;  %v1803_v41 = vrot.slane %v1801_v26, 5  ;;  %v4630_v30 = vld [vmem:[%s5185_s29 + $0x20] sm:$0x1] }
  0x62   : > { %4398 = vmatmul.msk.bf16.gmra.mxu3 %vm709_vm4, %v708_v29  ;;  %v370_v39 = vsel %vm5197_vm3, %v365_v31, %v369_v10  ;;  %v1805_v44 = vshrl.u32 %v4626_v12, 16  ;;  %v1128_v49 = vsel %vm5371_vm7, %v1126_v35, %v1127_v43  ;;  %v1811_v55 = vshll.u32 %v4627_v38, 16  ;;  %v4970_v35 = vld [vmem:[%s5185_s29 + $0xc] sm:$0xff] }
  0x63   : > { %v668_v46 = vunpack.c.l.b16 %v370_v39  ;;  %v1237_v52 = vunpack.c.l.b16 %v1128_v49  ;;  %v1798_v53 = vor.u32 %v1797_v40, %v1794_v1  ;;  %v3613_v58 = vsel %vm758_vm0, %v4900_v45, 0 }
  0x64   : > { %v1807_v54 = vrot.slane %v1805_v44, 4  ;;  %3622 = vmatpush.bf16.msra.mxu3 %v3613_v58  ;;  %v2672_v60 = vsel %vm758_vm0, %v4722_v50, 0  ;;  %v4011_v61 = vsel %vm758_vm0, %v4949_v2, 0  ;;  %v1813_v4 = vrot.slane %v1811_v55, 5  ;;  %v1073_v50 = vld [vmem:[%s5185_s29 + $0x18] sm:$0xe] }
  0x65   : > { %v696_v57 = vpack.c.b16 %v668_v46, %v667_v34  ;;  %v1268_v43 = vpack.c.b16 %v1237_v52, %v1236_v37  ;;  %2681 = vmatpush.bf16.msra.mxu1 %v2672_v60  ;;  %v1799_v62 = vrot.slane %v1798_v53, 4  ;;  %4020 = vmatpush.bf16.msra.mxu0 %v4011_v61  ;;  %v1131_v7 = vrot.slane %v5256_v28, 5  ;;  %v4632_v46 = vld [vmem:[%s5185_s29 + $0x28] sm:$0xf] }
  0x66   : > { %v1808_v59 = vor.u32 %v1807_v54, %v1803_v41  ;;  %v1816_v9 = vshrl.u32 %v4628_v5, 16  ;;  %v1819_v10 = vshll.u32 %v4628_v5, 16  ;;  %v1825_v13 = vshll.u32 %v4629_v6, 16 }
  0x67   : > { %4386 = vmatmul.msk.bf16.gmra.mxu0 %vm709_vm4, %v696_v57  ;;  %v1804_v11 = vsel %vm5197_vm3, %v1799_v62, %v1803_v41  ;;  %v1829_v14 = vshrl.u32 %v4629_v6, 16  ;;  %v4480_v16 = vrot.slane %v1072_v8, 9  ;;  %v1133_v17 = vrot.slane %v1131_v7, 4  ;;  %v4631_v41 = vld [vmem:[%s5185_s29 + $0x24] sm:$0xf] }
  0x68   : > { %4463 = vmatmul.msk.bf16.vlgmr.msrb.gmra.mxu1 %vm709_vm4, %v4969_v51  ;;  %v1809_v3 = vrot.slane %v1808_v59, 4  ;;  %v1134_v28 = vrot.slane %v5259_v32, 5  ;;  %v2177_v19 = vunpack.c.l.b16 %v1804_v11  ;;  %v1818_v23 = vrot.slane %v1816_v9, 4  ;;  %v4633_v6 = vld [vmem:[%s5185_s29 + $0x2c] sm:$0x1] }
  0x69   : > { %v1821_v24 = vrot.slane %v1819_v10, 5  ;;  %v1827_v26 = vrot.slane %v1825_v13, 5  ;;  %v1831_v29 = vrot.slane %v1829_v14, 4  ;;  %v1132_v31 = vsel %vm5371_vm7, %v4480_v16, %v1131_v7 }
  0x6a   : > { %v1814_v12 = vsel %vm5197_vm3, %v1809_v3, %v1813_v4  ;;  %v1135_v33 = vsel %vm5371_vm7, %v1133_v17, %v1134_v28  ;;  %v1835_v38 = vshll.u32 %v4630_v30, 16  ;;  %v1238_v1 = vunpack.c.l.b16 %v1132_v31 }
  0x6b   : > { %v2178_v22 = vunpack.c.l.b16 %v1814_v12  ;;  %v1822_v32 = vor.u32 %v1821_v24, %v1818_v23  ;;  %v1832_v37 = vor.u32 %v1831_v29, %v1827_v26  ;;  %v1239_v39 = vunpack.c.l.b16 %v1135_v33  ;;  %v4971_v12 = vld [vmem:[%s5185_s29 + $0x18] sm:$0xff]  ;;  %v1074_v29 = vld [vmem:[%s5185_s29 + $0x24] sm:$0xe] }
  0x6c   : > { %v1837_v45 = vrot.slane %v1835_v38, 5  ;;  %v1138_v51 = vrot.slane %v5302_v63, 5  ;;  %v1840_v52 = vshrl.u32 %v4631_v41, 16  ;;  %v1843_v54 = vshll.u32 %v4631_v41, 16 }
  0x6d   : > { %4496 = vmatmul.msk.bf16.vlgmr.msrb.gmra.mxu2 %vm709_vm4, %v1268_v43  ;;  %v2209_v34 = vpack.c.b16 %v2178_v22, %v2177_v19  ;;  %v1823_v40 = vrot.slane %v1822_v32, 4  ;;  %v1833_v44 = vrot.slane %v1832_v37, 4  ;;  %v1269_v49 = vpack.c.b16 %v1239_v39, %v1238_v1  ;;  %v4986_v43 = vld [vmem:[%s5185_s29 + $0x18] sm:$0xff]  ;;  %v4634_v19 = vld [vmem:[%s5185_s29 + $0x30] sm:$0xf]  ;;  %v4987_v32 = vld [vmem:[%s5185_s29 + $0x24] sm:$0xff] }
  0x6e   : > { %v1849_v55 = vshll.u32 %v4632_v46, 16  ;;  %v1853_v2 = vshrl.u32 %v4632_v46, 16  ;;  %v4481_v58 = vrot.slane %v1073_v50, 9  ;;  %v1140_v60 = vrot.slane %v1138_v51, 4  ;;  %v4635_v22 = vld [vmem:[%s5185_s29 + $0x34] sm:$0xf] }
  0x6f   : > { %v1828_v53 = vsel %vm5197_vm3, %v1823_v40, %v1827_v26  ;;  %v1838_v57 = vsel %vm5197_vm3, %v1833_v44, %v1837_v45  ;;  %v1141_v63 = vrot.slane %v5305_v0, 5  ;;  %v1842_v61 = vrot.slane %v1840_v52, 4  ;;  %v4636_v45 = vld [vmem:[%s5185_s29 + $0x38] sm:$0x1] }
  0x70   : > { %v2179_v59 = vunpack.c.l.b16 %v1828_v53  ;;  %v2180_v62 = vunpack.c.l.b16 %v1838_v57  ;;  %v1845_v3 = vrot.slane %v1843_v54, 5  ;;  %v1851_v4 = vrot.slane %v1849_v55, 5  ;;  %v4638_v57 = vld [vmem:[%s5185_s29 + $0x40] sm:$0xf] }
  0x71   : > { %v1855_v5 = vrot.slane %v1853_v2, 4  ;;  %v1139_v7 = vsel %vm5371_vm7, %v4481_v58, %v1138_v51  ;;  %v1142_v8 = vsel %vm5371_vm7, %v1140_v60, %v1141_v63  ;;  %v1859_v0 = vshll.u32 %v4633_v6, 16  ;;  %v4637_v2 = vld [vmem:[%s5185_s29 + $0x3c] sm:$0xf]  ;;  %v5046_v63 = vld [vmem:[%s5185_s29 + $0x34] sm:$0xf] }
  0x72   : > { %4609 = vmatmul.msk.bf16.vlgmr.msrb.gmra.mxu3 %vm709_vm4, %v4985_v15  ;;  %v2210_v9 = vpack.c.b16 %v2180_v62, %v2179_v59  ;;  %v1846_v10 = vor.u32 %v1845_v3, %v1842_v61  ;;  %v1240_v13 = vunpack.c.l.b16 %v1139_v7  ;;  %v1241_v14 = vunpack.c.l.b16 %v1142_v8  ;;  %v1075_v62 = vld [vmem:[%s5185_s29 + $0x30] sm:$0xe] }
  0x73   : > { %v1856_v11 = vor.u32 %v1855_v5, %v1851_v4  ;;  %v1861_v17 = vrot.slane %v1859_v0, 5  ;;  %v1145_v23 = vrot.slane %v5348_v42, 5  ;;  %v1864_v30 = vshrl.u32 %v4634_v19, 16  ;;  %v5047_v0 = vld [vmem:[%s5185_s29 + $0x38] sm:$0x1] }
  0x74   : > { %v1847_v15 = vrot.slane %v1846_v10, 4  ;;  %v1270_v28 = vpack.c.b16 %v1241_v14, %v1240_v13  ;;  %v1867_v31 = vshll.u32 %v4634_v19, 16  ;;  %v1873_v33 = vshll.u32 %v4635_v22, 16  ;;  %v4988_v13 = vld [vmem:[%s5185_s29 + $0x30] sm:$0xff] }
  0x75   : > { %v1857_v16 = vrot.slane %v1856_v11, 4  ;;  %v1147_v37 = vrot.slane %v1145_v23, 4  ;;  %v1148_v42 = vrot.slane %v5352_v48, 5  ;;  %v1866_v39 = vrot.slane %v1864_v30, 4  ;;  %v4972_v48 = vld [vmem:[%s5185_s29 + $0x24] sm:$0xff] }
  0x76   : > { %v1852_v24 = vsel %vm5197_vm3, %v1847_v15, %v1851_v4  ;;  %v1869_v40 = vrot.slane %v1867_v31, 5  ;;  %v1875_v41 = vrot.slane %v1873_v33, 5  ;;  %v1883_v53 = vshll.u32 %v4636_v45, 16  ;;  %v4973_v33 = vld [vmem:[%s5185_s29 + $0x30] sm:$0xff] }
  0x77   : > { %4674 = vmatmul.msk.bf16.vlgmr.msrb.gmra.mxu0 %vm709_vm4, %v2209_v34  ;;  %v1862_v26 = vsel %vm5197_vm3, %v1857_v16, %v1861_v17  ;;  %v1877_v34 = vshrl.u32 %v4635_v22, 16  ;;  %v2181_v38 = vunpack.c.l.b16 %v1852_v24  ;;  %v1152_v61 = vrot.slane %v5046_v63, 5  ;;  %v4639_v22 = vld [vmem:[%s5185_s29 + $0x44] sm:$0x1] }
  0x78   : > { %4464 = vmatmul.msk.bf16.gmra.mxu1 %vm709_vm4, %v4970_v35  ;;  %v4482_v35 = vrot.slane %v1074_v29, 9  ;;  %v2182_v1 = vunpack.c.l.b16 %v1862_v26  ;;  %v1870_v51 = vor.u32 %v1869_v40, %v1866_v39  ;;  %v1885_v59 = vrot.slane %v1883_v53, 5  ;;  %v4640_v39 = vld [vmem:[%s5185_s29 + $0x48] sm:$0xf]  ;;  %v4641_v40 = vld [vmem:[%s5185_s29 + $0x4c] sm:$0xf] }
  0x79   : > { %v1879_v44 = vrot.slane %v1877_v34, 4  ;;  %v1888_v3 = vshrl.u32 %v4637_v2, 16  ;;  %v1891_v4 = vshll.u32 %v4637_v2, 16  ;;  %v1897_v5 = vshll.u32 %v4638_v57, 16  ;;  %v4989_v2 = vld [vmem:[%s5185_s29 + $0x3c] sm:$0xff] }
  0x7a   : > { %v1146_v46 = vsel %vm5371_vm7, %v4482_v35, %v1145_v23  ;;  %v2211_v50 = vpack.c.b16 %v2182_v1, %v2181_v38  ;;  %v1871_v58 = vrot.slane %v1870_v51, 4  ;;  %v1901_v6 = vshrl.u32 %v4638_v57, 16 }
  0x7b   : > { %v1880_v52 = vor.u32 %v1879_v44, %v1875_v41  ;;  %v1242_v54 = vunpack.c.l.b16 %v1146_v46  ;;  %v4483_v10 = vrot.slane %v1075_v62, 9  ;;  %v1154_v11 = vrot.slane %v1152_v61, 4 }
  0x7c   : > { %v1876_v8 = vsel %vm5197_vm3, %v1871_v58, %v1875_v41  ;;  %v1890_v14 = vrot.slane %v1888_v3, 4  ;;  %v1893_v15 = vrot.slane %v1891_v4, 5  ;;  %v1899_v16 = vrot.slane %v1897_v5, 5  ;;  %v4642_v4 = vld [vmem:[%s5185_s29 + $0x50] sm:$0x1] }
  0x7d   : > { %4497 = vmatmul.msk.bf16.gmra.mxu2 %vm709_vm4, %v1269_v49  ;;  %v1149_v49 = vsel %vm5371_vm7, %v1147_v37, %v1148_v42  ;;  %v1903_v17 = vrot.slane %v1901_v6, 4  ;;  %v1153_v23 = vsel %vm5371_vm7, %v4483_v10, %v1152_v61  ;;  %v1907_v30 = vshll.u32 %v4639_v22, 16 }
  0x7e   : > { %v1243_v55 = vunpack.c.l.b16 %v1149_v49  ;;  %v1894_v26 = vor.u32 %v1893_v15, %v1890_v14  ;;  %v1912_v51 = vshrl.u32 %v4640_v39, 16  ;;  %v1921_v53 = vshll.u32 %v4641_v40, 16 }
  0x7f   : > { %v1904_v29 = vor.u32 %v1903_v17, %v1899_v16  ;;  %v1909_v1 = vrot.slane %v1907_v30, 5 }
  0x80   : > { %v1271_v60 = vpack.c.b16 %v1243_v55, %v1242_v54  ;;  %v1895_v42 = vrot.slane %v1894_v26, 4  ;;  %v1925_v54 = vshrl.u32 %v4641_v40, 16  ;;  %v1923_v62 = vrot.slane %v1921_v53, 5 }
  0x81   : > { %v1905_v38 = vrot.slane %v1904_v29, 4  ;;  %v1166_v26 = vrot.slane %v5269_v47, 5 }
  0x82   : > { %4610 = vmatmul.msk.bf16.gmra.mxu3 %vm709_vm4, %v4986_v43  ;;  %v1881_v43 = vrot.slane %v1880_v52, 4  ;;  %v1900_v45 = vsel %vm5197_vm3, %v1895_v42, %v1899_v16  ;;  %v1915_v52 = vshll.u32 %v4640_v39, 16  ;;  %v1927_v3 = vrot.slane %v1925_v54, 4  ;;  %v4645_v54 = vld [vmem:[%s5185_s29 + $0x5c] sm:$0x1] }
  0x83   : > { %v1910_v46 = vsel %vm5197_vm3, %v1905_v38, %v1909_v1  ;;  %v2185_v55 = vunpack.c.l.b16 %v1900_v45  ;;  %v4990_v1 = vld [vmem:[%s5185_s29 + $0x48] sm:$0xff]  ;;  %v1168_v40 = vrot.slane %v1166_v26, 4 }
  0x84   : > { %v2186_v57 = vunpack.c.l.b16 %v1910_v46  ;;  %v1917_v61 = vrot.slane %v1915_v52, 5  ;;  %v1928_v10 = vor.u32 %v1927_v3, %v1923_v62 }
  0x86   : > { %v1929_v16 = vrot.slane %v1928_v10, 4 }
  0x87   : > { %4675 = vmatmul.msk.bf16.gmra.mxu0 %vm709_vm4, %v2210_v9  ;;  %v1886_v9 = vsel %vm5197_vm3, %v1881_v43, %v1885_v59 }
  0x88   : > { %4465 = vmatmul.msk.bf16.gmra.mxu1 %vm709_vm4, %v4971_v12  ;;  %v1155_v12 = vrot.slane %v5047_v0, 5  ;;  %v2184_v19 = vunpack.c.l.b16 %v1886_v9 }
  0x8a   : > { %v1156_v24 = vsel %vm5371_vm7, %v1154_v11, %v1155_v12  ;;  %v1931_v11 = vshll.u32 %v4642_v4, 16  ;;  %v4974_v12 = vld [vmem:[%s5185_s29 + $0x3c] sm:$0xff] }
  0x8b   : > { %v1245_v35 = vunpack.c.l.b16 %v1156_v24  ;;  %v4644_v24 = vld [vmem:[%s5185_s29 + $0x58] sm:$0xf]  ;;  %v4646_v4 = vld [vmem:[%s5185_s29 + $0x60] sm:$0xf] }
  0x8c   : > { %v1933_v17 = vrot.slane %v1931_v11, 5  ;;  %v1949_v42 = vshrl.u32 %v4644_v24, 16 }
  0x8d   : > { %4498 = vmatmul.msk.bf16.gmra.mxu2 %vm709_vm4, %v1270_v28  ;;  %v2183_v28 = vunpack.c.l.b16 %v1876_v8  ;;  %v2213_v8 = vpack.c.b16 %v2186_v57, %v2185_v55 }
  0x8e   : > { %v1934_v30 = vsel %vm5197_vm3, %v1929_v16, %v1933_v17  ;;  %v1951_v52 = vrot.slane %v1949_v42, 4 }
  0x8f   : > { %v2212_v31 = vpack.c.b16 %v2184_v19, %v2183_v28  ;;  %v2188_v46 = vunpack.c.l.b16 %v1934_v30 }
  0x92   : > { %4611 = vmatmul.msk.bf16.gmra.mxu3 %vm709_vm4, %v4987_v32  ;;  %v1244_v32 = vunpack.c.l.b16 %v1153_v23  ;;  %v4643_v23 = vld [vmem:[%s5185_s29 + $0x54] sm:$0xf] }
  0x94   : > { %v1272_v44 = vpack.c.b16 %v1245_v35, %v1244_v32  ;;  %v1939_v32 = vshll.u32 %v4643_v23, 16  ;;  %v1945_v35 = vshll.u32 %v4644_v24, 16 }
  0x97   : > { %4676 = vmatmul.msk.bf16.gmra.mxu0 %vm709_vm4, %v2211_v50  ;;  %v1159_v50 = vrot.slane %v5225_v20, 5  ;;  %v1914_v20 = vrot.slane %v1912_v51, 4  ;;  %v1947_v51 = vrot.slane %v1945_v35, 5  ;;  %v1176_v35 = vrot.slane %v5320_v27, 5 }
  0x98   : > { %4466 = vmatmul.msk.bf16.gmra.mxu1 %vm709_vm4, %v4972_v48  ;;  %v1076_v48 = vld [vmem:[%s5185_s29 + $0x3c] sm:$0xe] }
  0x99   : > { %v4484_v43 = vrot.slane %v1076_v48, 9  ;;  %v1161_v59 = vrot.slane %v1159_v50, 4  ;;  %v1941_v48 = vrot.slane %v1939_v32, 5 }
  0x9b   : > { %v1160_v5 = vsel %vm5371_vm7, %v4484_v43, %v1159_v50  ;;  %v4975_v43 = vld [vmem:[%s5185_s29 + $0x48] sm:$0xff] }
  0x9d   : > { %v5466_v7 = vpop.f32.mrf.mxu1  ;;  %4499 = vmatmul.msk.bf16.gmra.mxu2 %vm709_vm4, %v1271_v60  ;;  %v1162_v60 = vrot.slane %v5230_v25, 5  ;;  %v1918_v25 = vor.u32 %v1917_v61, %v1914_v20  ;;  %v1955_v20 = vshll.u32 %v4645_v54, 16  ;;  %v4976_v54 = vld [vmem:[%s5185_s29 + $0x54] sm:$0xff] }
  0x9f   : > { %v1163_v6 = vsel %vm5371_vm7, %v1161_v59, %v1162_v60  ;;  %v1919_v15 = vrot.slane %v1918_v25, 4  ;;  %v1952_v60 = vor.u32 %v1951_v52, %v1947_v51  ;;  %v1957_v10 = vrot.slane %v1955_v20, 5 }
  0xa0   : > { %v1247_v14 = vunpack.c.l.b16 %v1163_v6 }
  0xa1   : > { %v1924_v29 = vsel %vm5197_vm3, %v1919_v15, %v1923_v62  ;;  %v1953_v25 = vrot.slane %v1952_v60, 4  ;;  %v1173_v15 = vrot.slane %v5315_v21, 5 }
  0xa2   : > { %4612 = vmatmul.msk.bf16.gmra.mxu3 %vm709_vm4, %v4988_v13  ;;  %v1246_v13 = vunpack.c.l.b16 %v1160_v5  ;;  %v2187_v45 = vunpack.c.l.b16 %v1924_v29  ;;  %v4647_v5 = vld [vmem:[%s5185_s29 + $0x64] sm:$0xf] }
  0xa3   : > { %v1973_v16 = vshrl.u32 %v4647_v5, 16  ;;  %v1958_v24 = vsel %vm5197_vm3, %v1953_v25, %v1957_v10  ;;  %v1175_v32 = vrot.slane %v1173_v15, 4  ;;  %v5048_v10 = vld [vmem:[%s5185_s29 + $0x64] sm:$0xf] }
  0xa4   : > { %v1273_v19 = vpack.c.b16 %v1247_v14, %v1246_v13  ;;  %v2214_v57 = vpack.c.b16 %v2188_v46, %v2187_v45  ;;  %v1963_v13 = vshll.u32 %v4646_v4, 16  ;;  %v1969_v14 = vshll.u32 %v4647_v5, 16 }
  0xa5   : > { %v5482_v34 = vpop.f32.mrf.mxu1  ;;  %v1975_v42 = vrot.slane %v1973_v16, 4 }
  0xa6   : > { %v1965_v30 = vrot.slane %v1963_v13, 5  ;;  %v1079_v13 = vld [vmem:[%s5185_s29 + $0x60] sm:$0xe] }
  0xa7   : > { %v5484_v37 = vpop.f32.mrf.mxu2  ;;  %4677 = vmatmul.msk.bf16.gmra.mxu0 %vm709_vm4, %v2212_v31  ;;  %v1077_v31 = vld [vmem:[%s5185_s29 + $0x48] sm:$0xe] }
  0xa8   : > { %4467 = vmatmul.msk.bf16.gmra.mxu1 %vm709_vm4, %v4973_v33  ;;  %v1936_v33 = vshrl.u32 %v4643_v23, 16  ;;  %v4485_v47 = vrot.slane %v1077_v31, 9  ;;  %v1971_v31 = vrot.slane %v1969_v14, 5 }
  0xaa   : > { %v5490_v41 = vpop.f32.mrf.mxu0  ;;  %v1938_v50 = vrot.slane %v1936_v33, 4  ;;  %v4991_v33 = vld [vmem:[%s5185_s29 + $0x54] sm:$0xff]  ;;  %v1976_v27 = vor.u32 %v1975_v42, %v1971_v31 }
  0xab   : > { %v5496_v49 = vpop.f32.mrf.mxu3 }
  0xac   : > { %v1942_v59 = vor.u32 %v1941_v48, %v1938_v50  ;;  %v1177_v48 = vsel %vm5371_vm7, %v1175_v32, %v1176_v35  ;;  %v1977_v60 = vrot.slane %v1976_v27, 4 }
  0xad   : > { %4500 = vmatmul.msk.bf16.gmra.mxu2 %vm709_vm4, %v1272_v44  ;;  %v1169_v44 = vrot.slane %v5274_v56, 5 }
  0xaf   : > { %v5502_v58 = vpop.f32.mrf.mxu1  ;;  %v5505_v63 = vpop.f32.mrf.mxu2  ;;  %v1170_v56 = vsel %vm5371_vm7, %v1168_v40, %v1169_v44  ;;  %v4648_v40 = vld [vmem:[%s5185_s29 + $0x68] sm:$0x1] }
  0xb0   : > { %v1249_v62 = vunpack.c.l.b16 %v1170_v56 }
  0xb2   : > { %4613 = vmatmul.msk.bf16.gmra.mxu3 %vm709_vm4, %v4989_v2  ;;  %v5513_v9 = vpop.f32.mrf.mxu0  ;;  %v1167_v2 = vsel %vm5371_vm7, %v4485_v47, %v1166_v26  ;;  %v2190_v47 = vunpack.c.l.b16 %v1958_v24 }
  0xb3   : > { %v5515_v0 = vpop.f32.mrf.mxu3  ;;  %v1248_v61 = vunpack.c.l.b16 %v1167_v2 }
  0xb5   : > { %v1274_v11 = vpack.c.b16 %v1249_v62, %v1248_v61  ;;  %v4649_v61 = vld [vmem:[%s5185_s29 + $0x6c] sm:$0xf]  ;;  %v4650_v62 = vld [vmem:[%s5185_s29 + $0x70] sm:$0xf] }
  0xb6   : > { %v1984_v14 = vshrl.u32 %v4649_v61, 16  ;;  %v1993_v16 = vshll.u32 %v4650_v62, 16 }
  0xb7   : > { %4678 = vmatmul.msk.bf16.gmra.mxu0 %vm709_vm4, %v2213_v8  ;;  %v5519_v28 = vpop.f32.mrf.mxu1  ;;  %v1943_v8 = vrot.slane %v1942_v59, 4 }
  0xb8   : > { %4468 = vmatmul.msk.bf16.gmra.mxu1 %vm709_vm4, %v4974_v12  ;;  %v1960_v12 = vshrl.u32 %v4646_v4, 16  ;;  %v1986_v35 = vrot.slane %v1984_v14, 4  ;;  %v4653_v14 = vld [vmem:[%s5185_s29 + $0x7c] sm:$0xf] }
  0xb9   : > { %v1948_v23 = vsel %vm5197_vm3, %v1943_v8, %v1947_v51  ;;  %v1979_v51 = vshll.u32 %v4648_v40, 16 }
  0xba   : > { %v5522_v22 = vpop.f32.mrf.mxu2  ;;  %v1962_v29 = vrot.slane %v1960_v12, 4 }
  0xbb   : > { %v1981_v20 = vrot.slane %v1979_v51, 5 }
  0xbc   : > { %v1966_v46 = vor.u32 %v1965_v30, %v1962_v29  ;;  %v4992_v30 = vld [vmem:[%s5185_s29 + $0x60] sm:$0xff] }
  0xbd   : > { %4501 = vmatmul.msk.bf16.gmra.mxu2 %vm709_vm4, %v1273_v19  ;;  %v1078_v19 = vld [vmem:[%s5185_s29 + $0x54] sm:$0xe]  ;;  %v1982_v25 = vsel %vm5197_vm3, %v1977_v60, %v1981_v20 }
  0xbe   : > { %v5532_v38 = vpop.f32.mrf.mxu0  ;;  %v4486_v21 = vrot.slane %v1078_v19, 9  ;;  %v1967_v59 = vrot.slane %v1966_v46, 4  ;;  %v1997_v19 = vshrl.u32 %v4650_v62, 16  ;;  %v4651_v46 = vld [vmem:[%s5185_s29 + $0x74] sm:$0x1] }
  0xbf   : > { %v5536_v39 = vpop.f32.mrf.mxu3 }
  0xc0   : > { %v1174_v50 = vsel %vm5371_vm7, %v4486_v21, %v1173_v15  ;;  %v1972_v8 = vsel %vm5197_vm3, %v1967_v59, %v1971_v31  ;;  %v1987_v15 = vshll.u32 %v4649_v61, 16  ;;  %v4487_v21 = vrot.slane %v1079_v13, 9  ;;  %v4652_v13 = vld [vmem:[%s5185_s29 + $0x78] sm:$0xf] }
  0xc1   : > { %v5539_v53 = vpop.f32.mrf.mxu1  ;;  %v1250_v56 = vunpack.c.l.b16 %v1174_v50  ;;  %v2191_v31 = vunpack.c.l.b16 %v1972_v8 }
  0xc2   : > { %4614 = vmatmul.msk.bf16.gmra.mxu3 %vm709_vm4, %v4990_v1  ;;  %v5543_v55 = vpop.f32.mrf.mxu2  ;;  %v2189_v1 = vunpack.c.l.b16 %v1948_v23  ;;  %v5049_v23 = vld [vmem:[%s5185_s29 + $0x68] sm:$0x1]  ;;  %v1989_v42 = vrot.slane %v1987_v15, 5  ;;  %v5050_v15 = vld [vmem:[%s5185_s29 + $0x70] sm:$0xf] }
  0xc3   : > { %v1183_v24 = vrot.slane %v5049_v23, 5  ;;  %v1080_v23 = vld [vmem:[%s5185_s29 + $0x6c] sm:$0xe] }
  0xc4   : > { %v2215_v52 = vpack.c.b16 %v2190_v47, %v2189_v1  ;;  %v1995_v1 = vrot.slane %v1993_v16, 5  ;;  %v1999_v47 = vrot.slane %v1997_v19, 4  ;;  %v1990_v51 = vor.u32 %v1989_v42, %v1986_v35  ;;  %v5051_v42 = vld [vmem:[%s5185_s29 + $0x74] sm:$0x1] }
  0xc5   : > { %v1187_v16 = vrot.slane %v5050_v15, 5 }
  0xc6   : > { %v5550_v3 = vpop.f32.mrf.mxu0 }
  0xc7   : > { %4679 = vmatmul.msk.bf16.gmra.mxu0 %vm709_vm4, %v2214_v57  ;;  %v5555_v6 = vpop.f32.mrf.mxu3  ;;  %v1251_v57 = vunpack.c.l.b16 %v1177_v48 }
  0xc8   : > { %4469 = vmatmul.msk.bf16.gmra.mxu1 %vm709_vm4, %v4975_v43 }
  0xc9   : > { %v5559_v17 = vpop.f32.mrf.mxu1  ;;  %v1275_v4 = vpack.c.b16 %v1251_v57, %v1250_v56  ;;  %v4977_v57 = vld [vmem:[%s5185_s29 + $0x60] sm:$0xff] }
  0xcd   : > { %v5566_v26 = vpop.f32.mrf.mxu2  ;;  %4502 = vmatmul.msk.bf16.gmra.mxu2 %vm709_vm4, %v1274_v11  ;;  %v1180_v11 = vrot.slane %v5048_v10, 5 }
  0xcf   : > { %v1182_v32 = vrot.slane %v1180_v11, 4  ;;  %v1181_v50 = vsel %vm5371_vm7, %v4487_v21, %v1180_v11  ;;  %v2021_v21 = vshrl.u32 %v4653_v14, 16 }
  0xd0   : > { %v5572_v44 = vpop.f32.mrf.mxu0  ;;  %v1252_v20 = vunpack.c.l.b16 %v1181_v50  ;;  %v4488_v50 = vrot.slane %v1080_v23, 9 }
  0xd1   : > { %v5574_v45 = vpop.f32.mrf.mxu3  ;;  %v1184_v48 = vsel %vm5371_vm7, %v1182_v32, %v1183_v24 }
  0xd2   : > { %4615 = vmatmul.msk.bf16.gmra.mxu3 %vm709_vm4, %v4991_v33  ;;  %v2192_v33 = vunpack.c.l.b16 %v1982_v25  ;;  %v1253_v61 = vunpack.c.l.b16 %v1184_v48  ;;  %v1189_v48 = vrot.slane %v1187_v16, 4 }
  0xd4   : > { %v2216_v27 = vpack.c.b16 %v2192_v33, %v2191_v31  ;;  %v1276_v11 = vpack.c.b16 %v1253_v61, %v1252_v20  ;;  %v2011_v31 = vshll.u32 %v4652_v13, 16  ;;  %v2017_v33 = vshll.u32 %v4653_v14, 16 }
  0xd5   : > { %v5582_v2 = vpop.f32.mrf.mxu1  ;;  %v5584_v43 = vpop.f32.mrf.mxu2  ;;  %v2023_v20 = vrot.slane %v2021_v21, 4 }
  0xd7   : > { %4680 = vmatmul.msk.bf16.gmra.mxu0 %vm709_vm4, %v2215_v52  ;;  %v2000_v52 = vor.u32 %v1999_v47, %v1995_v1  ;;  %v1190_v47 = vrot.slane %v5051_v42, 5 }
  0xd8   : > { %4470 = vmatmul.msk.bf16.gmra.mxu1 %vm709_vm4, %v4976_v54  ;;  %v5590_v5 = vpop.f32.mrf.mxu0  ;;  %v2003_v54 = vshll.u32 %v4651_v46, 16  ;;  %v4993_v46 = vld [vmem:[%s5185_s29 + $0x6c] sm:$0xff] }
  0xd9   : > { %v5597_v12 = vpop.f32.mrf.mxu3  ;;  %v2001_v8 = vrot.slane %v2000_v52, 4 }
  0xda   : > { %v2005_v25 = vrot.slane %v2003_v54, 5 }
  0xdd   : > { %4503 = vmatmul.msk.bf16.gmra.mxu2 %vm709_vm4, %v1275_v4  ;;  %v5602_v29 = vpop.f32.mrf.mxu1  ;;  %v1991_v4 = vrot.slane %v1990_v51, 4 }
  0xdf   : > { %v1996_v19 = vsel %vm5197_vm3, %v1991_v4, %v1995_v1  ;;  %v4654_v4 = vld [vmem:[%s5185_s29 + $0x80] sm:$0x1] }
  0xe0   : > { %v5605_v40 = vpop.f32.mrf.mxu2 }
  0xe2   : > { %4616 = vmatmul.msk.bf16.gmra.mxu3 %vm709_vm4, %v4992_v30  ;;  %v2008_v30 = vshrl.u32 %v4652_v13, 16  ;;  %v4978_v13 = vld [vmem:[%s5185_s29 + $0x6c] sm:$0xff] }
  0xe4   : > { %v5613_v56 = vpop.f32.mrf.mxu0  ;;  %v2010_v54 = vrot.slane %v2008_v30, 4 }
  0xe5   : > { %v5616_v59 = vpop.f32.mrf.mxu3  ;;  %v991_v60 = vpop.f32.mrf.mxu1 }
  0xe6   : > { %v992_v62 = vadd.f32 %v991_v60, %v5490_v41  ;;  %v2006_v41 = vsel %vm5197_vm3, %v2001_v8, %v2005_v25  ;;  %v2019_v60 = vrot.slane %v2017_v33, 5  ;;  %v1188_v8 = vsel %vm5371_vm7, %v4488_v50, %v1187_v16 }
  0xe7   : > { %4681 = vmatmul.msk.bf16.gmra.mxu0 %vm709_vm4, %v2216_v27  ;;  %v2193_v27 = vunpack.c.l.b16 %v1996_v19  ;;  %v2194_v51 = vunpack.c.l.b16 %v2006_v41  ;;  %v2027_v19 = vshll.u32 %v4654_v4, 16 }
  0xe8   : > { %v5620_v10 = vpop.f32.mrf.mxu2  ;;  %4471 = vmatmul.msk.bf16.gmra.mxu1 %vm709_vm4, %v4977_v57  ;;  %v2013_v57 = vrot.slane %v2011_v31, 5  ;;  %v2024_v15 = vor.u32 %v2023_v20, %v2019_v60 }
  0xe9   : > { %v2217_v25 = vpack.c.b16 %v2194_v51, %v2193_v27  ;;  %v2029_v42 = vrot.slane %v2027_v19, 5  ;;  %v4656_v27 = vld [vmem:[%s5185_s29 + $0x88] sm:$0xf]  ;;  %v5052_v51 = vld [vmem:[%s5185_s29 + $0x7c] sm:$0xf] }
  0xea   : > { %v2014_v14 = vor.u32 %v2013_v57, %v2010_v54  ;;  %v1081_v54 = vld [vmem:[%s5185_s29 + $0x78] sm:$0xe] }
  0xec   : > { %v5631_v24 = vpop.f32.mrf.mxu0  ;;  %v2015_v21 = vrot.slane %v2014_v14, 4 }
  0xed   : > { %v5633_v32 = vpop.f32.mrf.mxu3  ;;  %4504 = vmatmul.msk.bf16.gmra.mxu2 %vm709_vm4, %v1276_v11  ;;  %v993_v35 = vpop.f32.mrf.mxu1 }
  0xee   : > { %v994_v1 = vadd.f32 %v993_v35, %v5513_v9  ;;  %v1191_v9 = vsel %vm5371_vm7, %v1189_v48, %v1190_v47  ;;  %v2025_v35 = vrot.slane %v2024_v15, 4  ;;  %v4655_v47 = vld [vmem:[%s5185_s29 + $0x84] sm:$0xf]  ;;  %v4994_v15 = vld [vmem:[%s5185_s29 + $0x78] sm:$0xff] }
  0xef   : > { %v1255_v30 = vunpack.c.l.b16 %v1191_v9  ;;  %v2035_v57 = vshll.u32 %v4655_v47, 16  ;;  %v2045_v9 = vshrl.u32 %v4656_v27, 16 }
  0xf0   : > { %v1344_v52 = vpop.f32.mrf.mxu2  ;;  %v2030_v4 = vsel %vm5197_vm3, %v2025_v35, %v2029_v42 }
  0xf1   : > { %v1424_v61 = vadd.f32 %v1344_v52, %v992_v62  ;;  %v1254_v62 = vunpack.c.l.b16 %v1188_v8  ;;  %v1194_v52 = vrot.slane %v5052_v51, 5  ;;  %v2041_v8 = vshll.u32 %v4656_v27, 16 }
  0xf2   : > { %4617 = vmatmul.msk.bf16.gmra.mxu3 %vm709_vm4, %v4993_v46  ;;  %v2047_v35 = vrot.slane %v2045_v9, 4 }
  0xf3   : > { %v1277_v48 = vpack.c.b16 %v1255_v30, %v1254_v62 }
  0xf4   : > { %v2285_v11 = vpop.f32.mrf.mxu0 }
  0xf5   : > { %v1631_v41 = vpop.f32.mrf.mxu3  ;;  %v996_v23 = vpop.f32.mrf.mxu1 }
  0xf6   : > { %v1711_v31 = vadd.f32 %v1631_v41, %v1424_v61  ;;  %v997_v16 = vadd.f32 %v996_v23, %v5532_v38  ;;  %v2032_v38 = vshrl.u32 %v4655_v47, 16  ;;  %v2020_v61 = vsel %vm5197_vm3, %v2015_v21, %v2019_v60 }
  0xf7   : > { %4682 = vmatmul.msk.bf16.gmra.mxu0 %vm709_vm4, %v2217_v25  ;;  %v5053_v25 = vld [vmem:[%s5185_s29 + $0x80] sm:$0x1]  ;;  %v4489_v41 = vrot.slane %v1081_v54, 9  ;;  %v1196_v23 = vrot.slane %v1194_v52, 4  ;;  %v2195_v62 = vunpack.c.l.b16 %v2020_v61  ;;  %v2196_v60 = vunpack.c.l.b16 %v2030_v4 }
  0xf8   : > { %v1346_v33 = vpop.f32.mrf.mxu2  ;;  %4472 = vmatmul.msk.bf16.gmra.mxu1 %vm709_vm4, %v4978_v13  ;;  %v5650_v46 = vadd.f32 %v2285_v11, %v1711_v31  ;;  %v1197_v11 = vrot.slane %v5053_v25, 5  ;;  %v2034_v30 = vrot.slane %v2032_v38, 4  ;;  %v2037_v31 = vrot.slane %v2035_v57, 5  ;;  %v4979_v38 = vld [vmem:[%s5185_s29 + $0x78] sm:$0xff] }
  0xf9   : > { %v1425_v50 = vadd.f32 %v1346_v33, %v994_v1  ;;  %v2043_v21 = vrot.slane %v2041_v8, 5  ;;  %v2218_v27 = vpack.c.b16 %v2196_v60, %v2195_v62  ;;  %v4659_v62 = vld [vmem:[%s5185_s29 + $0x94] sm:$0xf]  ;;  %v5054_v60 = vld [vmem:[%s5185_s29 + $0x88] sm:$0xf] }
  0xfa   : > { %v2038_v51 = vor.u32 %v2037_v31, %v2034_v30  ;;  %v1201_v30 = vrot.slane %v5054_v60, 5  ;;  %v1082_v31 = vld [vmem:[%s5185_s29 + $0x84] sm:$0xe] }
  0xfb   : > { %v2048_v57 = vor.u32 %v2047_v35, %v2043_v21 }
  0xfc   : > { %v2287_v20 = vpop.f32.mrf.mxu0  ;;  %v2039_v25 = vrot.slane %v2038_v51, 4 }
  0xfd   : > { %v1633_v1 = vpop.f32.mrf.mxu3  ;;  %4505 = vmatmul.msk.bf16.gmra.mxu2 %vm709_vm4, %v1277_v48  ;;  %v998_v13 = vpop.f32.mrf.mxu1  ;;  %v4657_v48 = vld [vmem:[%s5185_s29 + $0x8c] sm:$0x1] }
  0xfe   : > { %v1712_v14 = vadd.f32 %v1633_v1, %v1425_v50  ;;  %v999_v19 = vadd.f32 %v998_v13, %v5550_v3  ;;  %v1195_v50 = vsel %vm5371_vm7, %v4489_v41, %v1194_v52  ;;  %v1198_v3 = vsel %vm5371_vm7, %v1196_v23, %v1197_v11 }
  0xff   : > { %v2051_v61 = vshll.u32 %v4657_v48, 16  ;;  %v1257_v8 = vunpack.c.l.b16 %v1198_v3  ;;  %v2049_v1 = vrot.slane %v2048_v57, 4  ;;  %v2069_v3 = vshrl.u32 %v4659_v62, 16  ;;  %v4995_v57 = vld [vmem:[%s5185_s29 + $0x84] sm:$0xff] }
 0x100   : > { %v1349_v33 = vpop.f32.mrf.mxu2  ;;  %v5663_v42 = vadd.f32 %v2287_v20, %v1712_v14  ;;  %v4658_v14 = vld [vmem:[%s5185_s29 + $0x90] sm:$0xf] }
 0x101   : > { %v1426_v47 = vadd.f32 %v1349_v33, %v997_v16  ;;  %v1256_v16 = vunpack.c.l.b16 %v1195_v50  ;;  %v2053_v13 = vrot.slane %v2051_v61, 5  ;;  %v2056_v33 = vshrl.u32 %v4658_v14, 16 }
 0x102   : > { %4618 = vmatmul.msk.bf16.gmra.mxu3 %vm709_vm4, %v4994_v15  ;;  %v2059_v48 = vshll.u32 %v4658_v14, 16  ;;  %v2065_v50 = vshll.u32 %v4659_v62, 16  ;;  %v4490_v61 = vrot.slane %v1082_v31, 9 }
 0x103   : > { %v1278_v23 = vpack.c.b16 %v1257_v8, %v1256_v16  ;;  %v2058_v8 = vrot.slane %v2056_v33, 4 }
 0x104   : > { %v2290_v54 = vpop.f32.mrf.mxu0 }
 0x105   : > { %v1636_v4 = vpop.f32.mrf.mxu3  ;;  %v1001_v20 = vpop.f32.mrf.mxu1 }
 0x106   : > { %v1713_v9 = vadd.f32 %v1636_v4, %v1426_v47  ;;  %v1002_v52 = vadd.f32 %v1001_v20, %v5572_v44  ;;  %v2044_v44 = vsel %vm5197_vm3, %v2039_v25, %v2043_v21  ;;  %v2054_v47 = vsel %vm5197_vm3, %v2049_v1, %v2053_v13 }
 0x107   : > { %4683 = vmatmul.msk.bf16.gmra.mxu0 %vm709_vm4, %v2218_v27  ;;  %v5055_v27 = vld [vmem:[%s5185_s29 + $0x8c] sm:$0x1]  ;;  %v1203_v4 = vrot.slane %v1201_v30, 4  ;;  %v2197_v20 = vunpack.c.l.b16 %v2044_v44  ;;  %v2198_v16 = vunpack.c.l.b16 %v2054_v47  ;;  %v2061_v25 = vrot.slane %v2059_v48, 5  ;;  %v4980_v44 = vld [vmem:[%s5185_s29 + $0x84] sm:$0xff] }
 0x108   : > { %v1351_v11 = vpop.f32.mrf.mxu2  ;;  %4473 = vmatmul.msk.bf16.gmra.mxu1 %vm709_vm4, %v4979_v38  ;;  %v5676_v15 = vadd.f32 %v2290_v54, %v1713_v9  ;;  %v1204_v51 = vrot.slane %v5055_v27, 5  ;;  %v2071_v1 = vrot.slane %v2069_v3, 4 }
 0x109   : > { %v1427_v41 = vadd.f32 %v1351_v11, %v999_v19  ;;  %v2067_v11 = vrot.slane %v2065_v50, 5  ;;  %v2219_v62 = vpack.c.b16 %v2198_v16, %v2197_v20  ;;  %v2062_v31 = vor.u32 %v2061_v25, %v2058_v8  ;;  %v4662_v20 = vld [vmem:[%s5185_s29 + $0xa0] sm:$0xf]  ;;  %v1083_v25 = vld [vmem:[%s5185_s29 + $0x90] sm:$0xe] }
 0x10b   : > { %v2072_v33 = vor.u32 %v2071_v1, %v2067_v11 }
 0x10c   : > { %v2292_v35 = vpop.f32.mrf.mxu0 }
 0x10d   : > { %v1638_v19 = vpop.f32.mrf.mxu3  ;;  %4506 = vmatmul.msk.bf16.gmra.mxu2 %vm709_vm4, %v1278_v23  ;;  %v1003_v54 = vpop.f32.mrf.mxu1  ;;  %v4660_v23 = vld [vmem:[%s5185_s29 + $0x98] sm:$0x1] }
 0x10e   : > { %v1714_v38 = vadd.f32 %v1638_v19, %v1427_v41  ;;  %v1004_v21 = vadd.f32 %v1003_v54, %v5590_v5  ;;  %v1202_v5 = vsel %vm5371_vm7, %v4490_v61, %v1201_v30  ;;  %v1205_v41 = vsel %vm5371_vm7, %v1203_v4, %v1204_v51  ;;  %v4661_v30 = vld [vmem:[%s5185_s29 + $0x9c] sm:$0xf] }
 0x10f   : > { %v2075_v47 = vshll.u32 %v4660_v23, 16  ;;  %v1259_v50 = vunpack.c.l.b16 %v1205_v41  ;;  %v2063_v19 = vrot.slane %v2062_v31, 4  ;;  %v2073_v54 = vrot.slane %v2072_v33, 4 }
 0x110   : > { %v1354_v9 = vpop.f32.mrf.mxu2  ;;  %v5689_v13 = vadd.f32 %v2292_v35, %v1714_v38  ;;  %v2080_v16 = vshrl.u32 %v4661_v30, 16  ;;  %v2083_v8 = vshll.u32 %v4661_v30, 16  ;;  %v2093_v41 = vshrl.u32 %v4662_v20, 16 }
 0x111   : > { %v1428_v14 = vadd.f32 %v1354_v9, %v1002_v52  ;;  %v1258_v52 = vunpack.c.l.b16 %v1202_v5  ;;  %v2077_v38 = vrot.slane %v2075_v47, 5  ;;  %v5056_v9 = vld [vmem:[%s5185_s29 + $0x94] sm:$0xf]  ;;  %v2089_v5 = vshll.u32 %v4662_v20, 16 }
 0x112   : > { %4619 = vmatmul.msk.bf16.gmra.mxu3 %vm709_vm4, %v4995_v57  ;;  %v2082_v31 = vrot.slane %v2080_v16, 4  ;;  %v2085_v33 = vrot.slane %v2083_v8, 5 }
 0x113   : > { %v1279_v4 = vpack.c.b16 %v1259_v50, %v1258_v52  ;;  %v2078_v23 = vsel %vm5197_vm3, %v2073_v54, %v2077_v38  ;;  %v4491_v52 = vrot.slane %v1083_v25, 9 }
 0x114   : > { %v2295_v60 = vpop.f32.mrf.mxu0  ;;  %v2086_v20 = vor.u32 %v2085_v33, %v2082_v31  ;;  %v4665_v31 = vld [vmem:[%s5185_s29 + $0xac] sm:$0xf] }
 0x115   : > { %v1641_v48 = vpop.f32.mrf.mxu3  ;;  %v1006_v35 = vpop.f32.mrf.mxu1 }
 0x116   : > { %v1715_v3 = vadd.f32 %v1641_v48, %v1428_v14  ;;  %v1007_v27 = vadd.f32 %v1006_v35, %v5613_v56  ;;  %v1208_v56 = vrot.slane %v5056_v9, 5  ;;  %v2068_v14 = vsel %vm5197_vm3, %v2063_v19, %v2067_v11  ;;  %v4996_v48 = vld [vmem:[%s5185_s29 + $0x90] sm:$0xff] }
 0x117   : > { %4684 = vmatmul.msk.bf16.gmra.mxu0 %vm709_vm4, %v2219_v62  ;;  %v5057_v62 = vld [vmem:[%s5185_s29 + $0x98] sm:$0x1]  ;;  %v2199_v50 = vunpack.c.l.b16 %v2068_v14  ;;  %v2095_v19 = vrot.slane %v2093_v41, 4  ;;  %v4981_v9 = vld [vmem:[%s5185_s29 + $0x90] sm:$0xff] }
 0x118   : > { %v1356_v51 = vpop.f32.mrf.mxu2  ;;  %4474 = vmatmul.msk.bf16.gmra.mxu1 %vm709_vm4, %v4980_v44  ;;  %v5702_v57 = vadd.f32 %v2295_v60, %v1715_v3  ;;  %v1211_v60 = vrot.slane %v5057_v62, 5  ;;  %v1210_v11 = vrot.slane %v1208_v56, 4  ;;  %v2200_v3 = vunpack.c.l.b16 %v2078_v23 }
 0x119   : > { %v1429_v61 = vadd.f32 %v1356_v51, %v1004_v21  ;;  %v2091_v51 = vrot.slane %v2089_v5, 5  ;;  %v2087_v62 = vrot.slane %v2086_v20, 4  ;;  %v5059_v20 = vld [vmem:[%s5185_s29 + $0xa4] sm:$0x1] }
 0x11a   : > { %v2220_v16 = vpack.c.b16 %v2200_v3, %v2199_v50  ;;  %v5058_v50 = vld [vmem:[%s5185_s29 + $0xa0] sm:$0xf] }
 0x11b   : > { %v2096_v25 = vor.u32 %v2095_v19, %v2091_v51  ;;  %v1215_v3 = vrot.slane %v5058_v50, 5  ;;  %v1084_v19 = vld [vmem:[%s5185_s29 + $0x9c] sm:$0xe] }
 0x11c   : > { %v2297_v1 = vpop.f32.mrf.mxu0 }
 0x11d   : > { %v1643_v21 = vpop.f32.mrf.mxu3  ;;  %4507 = vmatmul.msk.bf16.gmra.mxu2 %vm709_vm4, %v1279_v4  ;;  %v1008_v44 = vpop.f32.mrf.mxu1  ;;  %v4663_v4 = vld [vmem:[%s5185_s29 + $0xa4] sm:$0x1] }
 0x11e   : > { %v1716_v47 = vadd.f32 %v1643_v21, %v1429_v61  ;;  %v1009_v35 = vadd.f32 %v1008_v44, %v5631_v24  ;;  %v1209_v61 = vsel %vm5371_vm7, %v4491_v52, %v1208_v56  ;;  %v1212_v24 = vsel %vm5371_vm7, %v1210_v11, %v1211_v60  ;;  %v4664_v21 = vld [vmem:[%s5185_s29 + $0xa8] sm:$0xf] }
 0x11f   : > { %v2099_v14 = vshll.u32 %v4663_v4, 16  ;;  %v1261_v5 = vunpack.c.l.b16 %v1212_v24  ;;  %v2097_v60 = vrot.slane %v2096_v25, 4  ;;  %v2104_v52 = vshrl.u32 %v4664_v21, 16 }
 0x120   : > { %v1359_v30 = vpop.f32.mrf.mxu2  ;;  %v5715_v54 = vadd.f32 %v2297_v1, %v1716_v47  ;;  %v2092_v11 = vsel %vm5197_vm3, %v2087_v62, %v2091_v51  ;;  %v2117_v4 = vshrl.u32 %v4665_v31, 16 }
 0x121   : > { %v1430_v38 = vadd.f32 %v1359_v30, %v1007_v27  ;;  %v1260_v27 = vunpack.c.l.b16 %v1209_v61  ;;  %v2101_v44 = vrot.slane %v2099_v14, 5  ;;  %v2107_v30 = vshll.u32 %v4664_v21, 16  ;;  %v4997_v14 = vld [vmem:[%s5185_s29 + $0x9c] sm:$0xff] }
 0x122   : > { %4620 = vmatmul.msk.bf16.gmra.mxu3 %vm709_vm4, %v4996_v48  ;;  %v2106_v51 = vrot.slane %v2104_v52, 4 }
 0x123   : > { %v1280_v48 = vpack.c.b16 %v1261_v5, %v1260_v27  ;;  %v2102_v24 = vsel %vm5197_vm3, %v2097_v60, %v2101_v44  ;;  %v1217_v27 = vrot.slane %v1215_v3, 4  ;;  %v2109_v5 = vrot.slane %v2107_v30, 5  ;;  %v4666_v44 = vld [vmem:[%s5185_s29 + $0xb0] sm:$0x1] }
 0x124   : > { %v2300_v8 = vpop.f32.mrf.mxu0  ;;  %v2202_v62 = vunpack.c.l.b16 %v2102_v24 }
 0x125   : > { %v1646_v1 = vpop.f32.mrf.mxu3  ;;  %v1011_v23 = vpop.f32.mrf.mxu1  ;;  %v2110_v52 = vor.u32 %v2109_v5, %v2106_v51 }
 0x126   : > { %v1717_v41 = vadd.f32 %v1646_v1, %v1430_v38  ;;  %v2113_v38 = vshll.u32 %v4665_v31, 16  ;;  %v4492_v1 = vrot.slane %v1084_v19, 9  ;;  %v4982_v19 = vld [vmem:[%s5185_s29 + $0x9c] sm:$0xff] }
 0x127   : > { %4685 = vmatmul.msk.bf16.gmra.mxu0 %vm709_vm4, %v2220_v16  ;;  %v1218_v16 = vrot.slane %v5059_v20, 5 }
 0x128   : > { %v1361_v56 = vpop.f32.mrf.mxu2  ;;  %4475 = vmatmul.msk.bf16.gmra.mxu1 %vm709_vm4, %v4981_v9  ;;  %v5728_v33 = vadd.f32 %v2300_v8, %v1717_v41  ;;  %v2201_v8 = vunpack.c.l.b16 %v2092_v11  ;;  %v1012_v41 = vadd.f32 %v1011_v23, %v5466_v7  ;;  %v2115_v21 = vrot.slane %v2113_v38, 5 }
 0x129   : > { %v1431_v47 = vadd.f32 %v1361_v56, %v1009_v35  ;;  %v2119_v56 = vrot.slane %v2117_v4, 4  ;;  %v2123_v11 = vshll.u32 %v4666_v44, 16 }
 0x12a   : > { %v2221_v7 = vpack.c.b16 %v2202_v62, %v2201_v8  ;;  %v4667_v8 = vld [vmem:[%s5185_s29 + $0xb4] sm:$0xf] }
 0x12b   : > { %v2120_v23 = vor.u32 %v2119_v56, %v2115_v21  ;;  %v2125_v51 = vrot.slane %v2123_v11, 5  ;;  %v2131_v44 = vshll.u32 %v4667_v8, 16 }
 0x12c   : > { %v2302_v61 = vpop.f32.mrf.mxu0 }
 0x12d   : > { %v1648_v35 = vpop.f32.mrf.mxu3  ;;  %4508 = vmatmul.msk.bf16.gmra.mxu2 %vm709_vm4, %v1280_v48  ;;  %v1013_v9 = vpop.f32.mrf.mxu1  ;;  %v1219_v48 = vsel %vm5371_vm7, %v1217_v27, %v1218_v16  ;;  %v2121_v16 = vrot.slane %v2120_v23, 4 }
 0x12e   : > { %v1718_v25 = vadd.f32 %v1648_v35, %v1431_v47  ;;  %v1216_v47 = vsel %vm5371_vm7, %v4492_v1, %v1215_v3  ;;  %v1263_v24 = vunpack.c.l.b16 %v1219_v48  ;;  %v2111_v35 = vrot.slane %v2110_v52, 4  ;;  %v5061_v52 = vld [vmem:[%s5185_s29 + $0xb0] sm:$0x1] }
 0x12f   : > { %v1014_v3 = vadd.f32 %v1013_v9, %v5482_v34  ;;  %v2128_v34 = vshrl.u32 %v4667_v8, 16  ;;  %v2126_v9 = vsel %vm5197_vm3, %v2121_v16, %v2125_v51 }
 0x130   : > { %v1364_v60 = vpop.f32.mrf.mxu2  ;;  %v5741_v31 = vadd.f32 %v2302_v61, %v1718_v25  ;;  %v1262_v61 = vunpack.c.l.b16 %v1216_v47  ;;  %v2116_v56 = vsel %vm5197_vm3, %v2111_v35, %v2115_v21 }
 0x131   : > { %v1432_v50 = vadd.f32 %v1364_v60, %v1012_v41  ;;  %v5060_v41 = vld [vmem:[%s5185_s29 + $0xac] sm:$0xf]  ;;  %v1085_v60 = vld [vmem:[%s5185_s29 + $0xa8] sm:$0xe] }
 0x132   : > { %4621 = vmatmul.msk.bf16.gmra.mxu3 %vm709_vm4, %v4997_v14  ;;  %v4668_v14 = vld [vmem:[%s5185_s29 + $0xb8] sm:$0xf]  ;;  %v1281_v5 = vpack.c.b16 %v1263_v24, %v1262_v61  ;;  %v1222_v62 = vrot.slane %v5060_v41, 5  ;;  %v2203_v61 = vunpack.c.l.b16 %v2116_v56  ;;  %v2204_v24 = vunpack.c.l.b16 %v2126_v9  ;;  %v4669_v41 = vld [vmem:[%s5185_s29 + $0xbc] sm:$0x1] }
 0x133   : > { %v2141_v47 = vshrl.u32 %v4668_v14, 16 }
 0x134   : > { %v2305_v30 = vpop.f32.mrf.mxu0 }
 0x135   : > { %v1651_v38 = vpop.f32.mrf.mxu3  ;;  %v1016_v4 = vpop.f32.mrf.mxu1  ;;  %v2143_v51 = vrot.slane %v2141_v47, 4 }
 0x136   : > { %v1719_v20 = vadd.f32 %v1651_v38, %v1432_v50  ;;  %v2137_v50 = vshll.u32 %v4668_v14, 16  ;;  %v4998_v38 = vld [vmem:[%s5185_s29 + $0xa8] sm:$0xff]  ;;  %v1017_v35 = vadd.f32 %v1016_v4, %v5502_v58  ;;  %v2222_v58 = vpack.c.b16 %v2204_v24, %v2203_v61 }
 0x137   : > { %4686 = vmatmul.msk.bf16.gmra.mxu0 %vm709_vm4, %v2221_v7  ;;  %v1225_v7 = vrot.slane %v5061_v52, 5 }
 0x138   : > { %v1366_v25 = vpop.f32.mrf.mxu2  ;;  %4476 = vmatmul.msk.bf16.gmra.mxu1 %vm709_vm4, %v4982_v19  ;;  %v5754_v1 = vadd.f32 %v2305_v30, %v1719_v20  ;;  %v4493_v30 = vrot.slane %v1085_v60, 9  ;;  %v1224_v19 = vrot.slane %v1222_v62, 4  ;;  %v2130_v20 = vrot.slane %v2128_v34, 4  ;;  %v4983_v34 = vld [vmem:[%s5185_s29 + $0xa8] sm:$0xff] }
 0x139   : > { %v1433_v27 = vadd.f32 %v1366_v25, %v1014_v3  ;;  %v2133_v3 = vrot.slane %v2131_v44, 5  ;;  %v5766_v16 = vrot.slane %v2137_v50, 5  ;;  %v2147_v50 = vshll.u32 %v4669_v41, 16 }
 0x13b   : > { %v2134_v4 = vor.u32 %v2133_v3, %v2130_v20  ;;  %v2144_v56 = vor.u32 %v2143_v51, %v5766_v16  ;;  %v2149_v20 = vrot.slane %v2147_v50, 5 }
 0x13c   : > { %v2307_v48 = vpop.f32.mrf.mxu0 }
 0x13d   : > { %v1653_v23 = vpop.f32.mrf.mxu3  ;;  %4509 = vmatmul.msk.bf16.gmra.mxu2 %vm709_vm4, %v1281_v5  ;;  %v1018_v11 = vpop.f32.mrf.mxu1  ;;  %v1223_v5 = vsel %vm5371_vm7, %v4493_v30, %v1222_v62  ;;  %v4670_v62 = vld [vmem:[%s5185_s29 + $0xc0] sm:$0xf]  ;;  %v5062_v30 = vld [vmem:[%s5185_s29 + $0x10] sm:$0xf] }
 0x13e   : > { %v1720_v21 = vadd.f32 %v1653_v23, %v1433_v27  ;;  %v1226_v27 = vsel %vm5371_vm7, %v1224_v19, %v1225_v7  ;;  %v1264_v9 = vunpack.c.l.b16 %v1223_v5  ;;  %v4671_v23 = vld [vmem:[%s5185_s29 + $0xc4] sm:$0xf]  ;;  %v2463_v7 = vrot.slane %v5062_v30, 5 }
 0x13f   : > { %v1265_v44 = vunpack.c.l.b16 %v1226_v27  ;;  %v1019_v19 = vadd.f32 %v1018_v11, %v5519_v28  ;;  %v2155_v3 = vshll.u32 %v4670_v62, 16  ;;  %v5063_v27 = vld [vmem:[%s5185_s29 + $0xb8] sm:$0xf]  ;;  %v1086_v11 = vld [vmem:[%s5185_s29 + $0xb4] sm:$0xe] }
 0x140   : > { %v1369_v8 = vpop.f32.mrf.mxu2  ;;  %v5768_v25 = vadd.f32 %v2307_v48, %v1720_v21  ;;  %v2135_v21 = vrot.slane %v2134_v4, 4  ;;  %v1229_v41 = vrot.slane %v5063_v27, 5  ;;  %v2465_v4 = vrot.slane %v2463_v7, 4  ;;  %v4999_v27 = vld [vmem:[%s5185_s29 + $0xb4] sm:$0xff] }
 0x141   : > { %v1434_v14 = vadd.f32 %v1369_v8, %v1017_v35  ;;  %v1282_v24 = vpack.c.b16 %v1265_v44, %v1264_v9  ;;  %v2152_v35 = vshrl.u32 %v4670_v62, 16  ;;  %v2161_v8 = vshll.u32 %v4671_v23, 16 }
 0x142   : > { %6582 = vst [vmem:[#allocation2_spill] sm:$0xff] %v5768_v25  ;;  %4622 = vmatmul.msk.bf16.gmra.mxu3 %vm709_vm4, %v4998_v38  ;;  %v2145_v38 = vrot.slane %v2144_v56, 4  ;;  %v5065_v56 = vld [vmem:[%s5185_s29 + $0x14] sm:$0x1]  ;;  %v2140_v9 = vsel %vm5197_vm3, %v2135_v21, %v5766_v16 }
 0x143   : > { %v2154_v62 = vrot.slane %v2152_v35, 4  ;;  %v2205_v21 = vunpack.c.l.b16 %v2140_v9 }
 0x144   : > { %v2310_v60 = vpop.f32.mrf.mxu0  ;;  %v2150_v44 = vsel %vm5197_vm3, %v2145_v38, %v2149_v20  ;;  %v4672_v20 = vld [vmem:[%s5185_s29 + $0xc8] sm:$0x1] }
 0x145   : > { %v1656_v47 = vpop.f32.mrf.mxu3  ;;  %v1021_v48 = vpop.f32.mrf.mxu1  ;;  %v2206_v38 = vunpack.c.l.b16 %v2150_v44  ;;  %v4984_v44 = vld [vmem:[%s5185_s29 + $0xb4] sm:$0xff] }
 0x146   : > { %v1721_v52 = vadd.f32 %v1656_v47, %v1434_v14  ;;  %v2165_v14 = vshrl.u32 %v4671_v23, 16  ;;  %v2466_v47 = vrot.slane %v5065_v56, 5  ;;  %v5796_v23 = vrot.slane %v2161_v8, 5 }
 0x147   : > { %4687 = vmatmul.msk.bf16.gmra.mxu0 %vm709_vm4, %v2222_v58  ;;  %v5064_v58 = vld [vmem:[%s5185_s29 + $0xbc] sm:$0x1]  ;;  %v1231_v56 = vrot.slane %v1229_v41, 4  ;;  %v1022_v16 = vadd.f32 %v1021_v48, %v5539_v53 }
 0x148   : > { %v1371_v61 = vpop.f32.mrf.mxu2  ;;  %4477 = vmatmul.msk.bf16.gmra.mxu1 %vm709_vm4, %v4983_v34  ;;  %v5784_v5 = vadd.f32 %v2310_v60, %v1721_v52  ;;  %v1232_v28 = vrot.slane %v5064_v58, 5  ;;  %v2157_v52 = vrot.slane %v2155_v3, 5  ;;  %v2167_v30 = vrot.slane %v2165_v14, 4 }
 0x149   : > { %v1435_v51 = vadd.f32 %v1371_v61, %v1019_v19  ;;  %v4690_v19 = vld [vmem:[%s5185_s29 + $0xc] sm:$0xe]  ;;  %v4494_v58 = vrot.slane %v1086_v11, 9  ;;  %v2467_v35 = vsel %vm5371_vm7, %v2465_v4, %v2466_v47  ;;  %v4852_v4 = vld [vmem:[%s5185_s29 + $0x18] sm:$0xf] }
 0x14a   : > { %6583 = vst [vmem:[#allocation3_spill] sm:$0xff] %v5784_v5  ;;  %v4706_v5 = vrot.slane %v4690_v19, 9  ;;  %v2576_v14 = vunpack.c.l.b16 %v2467_v35  ;;  %v1233_v48 = vsel %vm5371_vm7, %v1231_v56, %v1232_v28  ;;  %v2168_v11 = vor.u32 %v2167_v30, %v5796_v23 }
 0x14b   : > { %v1230_v53 = vsel %vm5371_vm7, %v4494_v58, %v1229_v41  ;;  %v1267_v41 = vunpack.c.l.b16 %v1233_v48  ;;  %v3131_v30 = vshrl.u32 %v4852_v4, 16  ;;  %v4854_v48 = vld [vmem:[%s5185_s29 + $0x20] sm:$0x1] }
 0x14c   : > { %v2312_v34 = vpop.f32.mrf.mxu0  ;;  %v1266_v19 = vunpack.c.l.b16 %v1230_v53  ;;  %v2169_v28 = vrot.slane %v2168_v11, 4 }
 0x14d   : > { %v1658_v60 = vpop.f32.mrf.mxu3  ;;  %4510 = vmatmul.msk.bf16.gmra.mxu2 %vm709_vm4, %v1282_v24  ;;  %v1023_v50 = vpop.f32.mrf.mxu1  ;;  %v2464_v24 = vsel %vm5371_vm7, %v4706_v5, %v2463_v7  ;;  %v2171_v7 = vshll.u32 %v4672_v20, 16  ;;  %v2223_v5 = vpack.c.b16 %v2206_v38, %v2205_v21 }
 0x14e   : > { %v1722_v61 = vadd.f32 %v1658_v60, %v1435_v51  ;;  %v2158_v51 = vor.u32 %v2157_v52, %v2154_v62  ;;  %v2575_v8 = vunpack.c.l.b16 %v2464_v24  ;;  %v5819_v60 = vld [vmem:[%s5185_s29 + $0x1c] sm:$0xf]  ;;  %v1283_v24 = vpack.c.b16 %v1267_v41, %v1266_v19 }
 0x14f   : > { %v2173_v56 = vrot.slane %v2171_v7, 5  ;;  %v3144_v21 = vshrl.u32 %v5819_v60, 16  ;;  %v3150_v41 = vshll.u32 %v4854_v48, 16 }
 0x150   : > { %v1374_v25 = vpop.f32.mrf.mxu2  ;;  %v5812_v9 = vpack.c.b16 %v2576_v14, %v2575_v8  ;;  %v5815_v47 = vadd.f32 %v2312_v34, %v1722_v61  ;;  %v3134_v34 = vshll.u32 %v4852_v4, 16  ;;  %v3140_v61 = vshll.u32 %v5819_v60, 16  ;;  %v5000_v4 = vld [vmem:[%s5185_s29 + $0xc0] sm:$0xff] }
 0x151   : > { %v1436_v3 = vadd.f32 %v1374_v25, %v1022_v16  ;;  %v1024_v16 = vadd.f32 %v1023_v50, %v5559_v17  ;;  %v2174_v17 = vsel %vm5197_vm3, %v2169_v28, %v2173_v56  ;;  %v3133_v50 = vrot.slane %v3131_v30, 4  ;;  %v4855_v28 = vld [vmem:[%s5185_s29 + $0x24] sm:$0xf] }
 0x152   : > { %4623 = vmatmul.msk.bf16.gmra.mxu3 %vm709_vm4, %v4999_v27  ;;  %v2159_v27 = vrot.slane %v2158_v51, 4  ;;  %v3136_v51 = vrot.slane %v3134_v34, 5  ;;  %v3142_v8 = vrot.slane %v3140_v61, 5  ;;  %v3146_v14 = vrot.slane %v3144_v21, 4  ;;  %v5840_v61 = vld [vmem:[%s5185_s29 + $0x28] sm:$0xf] }
 0x153   : > { %v3152_v34 = vrot.slane %v3150_v41, 5 }
 0x154   : > { %v2315_v25 = vpop.f32.mrf.mxu0  ;;  %v3147_v19 = vor.u32 %v3146_v14, %v3142_v8  ;;  %v5067_v14 = vld [vmem:[%s5185_s29 + $0x20] sm:$0x1] }
 0x155   : > { %v1661_v62 = vpop.f32.mrf.mxu3  ;;  %v1026_v52 = vpop.f32.mrf.mxu1 }
 0x156   : > { %v1723_v58 = vadd.f32 %v1661_v62, %v1436_v3  ;;  %v2164_v3 = vsel %vm5197_vm3, %v2159_v27, %v5796_v23  ;;  %v1027_v23 = vadd.f32 %v1026_v52, %v5582_v2  ;;  %v3137_v62 = vor.u32 %v3136_v51, %v3133_v50  ;;  %v4917_v52 = vld [vmem:[%s5185_s29 + $0x18] sm:$0xe]  ;;  %v5066_v50 = vld [vmem:[%s5185_s29 + $0x1c] sm:$0xf] }
 0x157   : > { %4688 = vmatmul.msk.bf16.gmra.mxu0 %vm709_vm4, %v2223_v5  ;;  %v2470_v51 = vrot.slane %v5066_v50, 5 }
 0x158   : > { %v1376_v38 = vpop.f32.mrf.mxu2  ;;  %4478 = vmatmul.msk.bf16.gmra.mxu1 %vm709_vm4, %v4984_v44  ;;  %v5826_v35 = vadd.f32 %v2315_v25, %v1723_v58  ;;  %v2207_v25 = vunpack.c.l.b16 %v2164_v3  ;;  %v2208_v44 = vunpack.c.l.b16 %v2174_v17  ;;  %v3138_v30 = vrot.slane %v3137_v62, 4 }
 0x159   : > { %v1437_v20 = vadd.f32 %v1376_v38, %v1024_v16  ;;  %v3148_v16 = vrot.slane %v3147_v19, 4  ;;  %v3802_v38 = vrot.slane %v5819_v60, 5  ;;  %v4933_v62 = vrot.slane %v4917_v52, 9 }
 0x15a   : > { %v2224_v56 = vpack.c.b16 %v2208_v44, %v2207_v25  ;;  %v4691_v25 = vld [vmem:[%s5185_s29 + $0x18] sm:$0xe]  ;;  %v3164_v44 = vshll.u32 %v5840_v61, 16  ;;  %v3143_v60 = vsel %vm5197_vm3, %v3138_v30, %v3142_v8 }
 0x15b   : > { %v3804_v41 = vrot.slane %v3802_v38, 4  ;;  %v4707_v50 = vrot.slane %v4691_v25, 9  ;;  %v3516_v8 = vunpack.c.l.b16 %v3143_v60 }
 0x15c   : > { %v2317_v53 = vpop.f32.mrf.mxu0 }
 0x15d   : > { %v1663_v11 = vpop.f32.mrf.mxu3  ;;  %4511 = vmatmul.msk.bf16.gmra.mxu2 %vm709_vm4, %v1283_v24  ;;  %v1028_v7 = vpop.f32.mrf.mxu1  ;;  %v3158_v24 = vshll.u32 %v4855_v28, 16 }
 0x15e   : > { %v1724_v5 = vadd.f32 %v1663_v11, %v1437_v20  ;;  %v3155_v20 = vshrl.u32 %v4855_v28, 16  ;;  %v2473_v11 = vrot.slane %v5067_v14, 5  ;;  %v3166_v14 = vrot.slane %v3164_v44, 5 }
 0x15f   : > { %v3160_v28 = vrot.slane %v3158_v24, 5 }
 0x160   : > { %v1379_v27 = vpop.f32.mrf.mxu2  ;;  %v5842_v21 = vadd.f32 %v2317_v53, %v1724_v5  ;;  %v3168_v53 = vshrl.u32 %v5840_v61, 16  ;;  %v1029_v5 = vadd.f32 %v1028_v7, %v5602_v29  ;;  %v2472_v29 = vrot.slane %v2470_v51, 4 }
 0x161   : > { %v1438_v58 = vadd.f32 %v1379_v27, %v1027_v23  ;;  %v3153_v23 = vsel %vm5197_vm3, %v3148_v16, %v3152_v34  ;;  %v3805_v27 = vrot.slane %v4854_v48, 5  ;;  %v5863_v34 = vld [vmem:[%s5185_s29 + $0x2c] sm:$0x1] }
 0x162   : > { %4624 = vmatmul.msk.bf16.gmra.mxu3 %vm709_vm4, %v5000_v4  ;;  %v3517_v30 = vunpack.c.l.b16 %v3153_v23  ;;  %v3170_v16 = vrot.slane %v3168_v53, 4 }
 0x163   : > { %v3806_v48 = vsel %vm5371_vm7, %v3804_v41, %v3805_v27 }
 0x164   : > { %v2320_v2 = vpop.f32.mrf.mxu0  ;;  %v3548_v53 = vpack.c.b16 %v3517_v30, %v3516_v8  ;;  %v5883_v30 = vld [vmem:[%s5185_s29 + $0x34] sm:$0xf] }
 0x165   : > { %v1666_v3 = vpop.f32.mrf.mxu3  ;;  %v1031_v17 = vpop.f32.mrf.mxu1 }
 0x166   : > { %v1725_v4 = vadd.f32 %v1666_v3, %v1438_v58  ;;  %v3157_v58 = vrot.slane %v3155_v20, 4  ;;  %v1032_v60 = vadd.f32 %v1031_v17, %v5484_v37 }
 0x167   : > { %4689 = vmatmul.msk.bf16.gmra.mxu0 %vm709_vm4, %v2224_v56  ;;  %v5001_v56 = vld [vmem:[%s5185_s29 + $0x18] sm:$0xff] }
 0x168   : > { %v1381_v19 = vpop.f32.mrf.mxu2  ;;  %4723 = vmatmul.msk.bf16.vlgmr.msra.gmra.mxu1 %vm709_vm4, %v5812_v9  ;;  %v5860_v7 = vadd.f32 %v2320_v2, %v1725_v4  ;;  %v3803_v9 = vsel %vm5371_vm7, %v4933_v62, %v3802_v38  ;;  %v2471_v2 = vsel %vm5371_vm7, %v4707_v50, %v2470_v51  ;;  %v2474_v4 = vsel %vm5371_vm7, %v2472_v29, %v2473_v11  ;;  %v4858_v29 = vld [vmem:[%s5185_s29 + $0x30] sm:$0xf] }
 0x169   : > { %v1439_v3 = vadd.f32 %v1381_v19, %v1029_v5  ;;  %v3161_v25 = vor.u32 %v3160_v28, %v3157_v58  ;;  %v3171_v5 = vor.u32 %v3170_v16, %v3166_v14  ;;  %v3174_v38 = vshll.u32 %v5863_v34, 16  ;;  %v4918_v28 = vld [vmem:[%s5185_s29 + $0x24] sm:$0xe] }
 0x16a   : > { %v3914_v23 = vunpack.c.l.b16 %v3803_v9  ;;  %v3915_v62 = vunpack.c.l.b16 %v3806_v48  ;;  %v2577_v41 = vunpack.c.l.b16 %v2471_v2  ;;  %v2578_v27 = vunpack.c.l.b16 %v2474_v4  ;;  %v5068_v4 = vld [vmem:[%s5185_s29 + $0x28] sm:$0xf] }
 0x16b   : > { %v3172_v11 = vrot.slane %v3171_v5, 4  ;;  %v3176_v58 = vrot.slane %v3174_v38, 5  ;;  %v3812_v2 = vrot.slane %v5863_v34, 5  ;;  %v3179_v5 = vshrl.u32 %v4858_v29, 16  ;;  %v5069_v34 = vld [vmem:[%s5185_s29 + $0x2c] sm:$0x1] }
 0x16c   : > { %v2322_v52 = vpop.f32.mrf.mxu0  ;;  %v3946_v50 = vpack.c.b16 %v3915_v62, %v3914_v23  ;;  %v2608_v8 = vpack.c.b16 %v2578_v27, %v2577_v41  ;;  %v3192_v23 = vshrl.u32 %v5883_v30, 16  ;;  %v2480_v62 = vrot.slane %v5069_v34, 5  ;;  %v5002_v27 = vld [vmem:[%s5185_s29 + $0x24] sm:$0xff] }
 0x16d   : > { %v1668_v20 = vpop.f32.mrf.mxu3  ;;  %4836 = vmatmul.msk.bf16.vlgmr.msra.gmra.mxu2 %vm709_vm4, %v5001_v56  ;;  %v1033_v24 = vpop.f32.mrf.mxu1  ;;  %v3162_v56 = vrot.slane %v3161_v25, 4 }
 0x16e   : > { %v1726_v44 = vadd.f32 %v1668_v20, %v1439_v3  ;;  %v3809_v3 = vrot.slane %v5840_v61, 5  ;;  %v4934_v20 = vrot.slane %v4918_v28, 9  ;;  %v2477_v61 = vrot.slane %v5068_v4, 5 }
 0x16f   : > { %v3167_v48 = vsel %vm5197_vm3, %v3162_v56, %v3166_v14  ;;  %v1034_v38 = vadd.f32 %v1033_v24, %v5505_v63  ;;  %v3188_v14 = vshll.u32 %v5883_v30, 16  ;;  %v3194_v4 = vrot.slane %v3192_v23, 4 }
 0x170   : > { %v1384_v19 = vpop.f32.mrf.mxu2  ;;  %v5880_v37 = vadd.f32 %v2322_v52, %v1726_v44  ;;  %v3177_v52 = vsel %vm5197_vm3, %v3172_v11, %v3176_v58  ;;  %v3811_v44 = vrot.slane %v3809_v3, 4  ;;  %v2479_v56 = vrot.slane %v2477_v61, 4 }
 0x171   : > { %v1440_v51 = vadd.f32 %v1384_v19, %v1032_v60  ;;  %v3182_v60 = vshll.u32 %v4858_v29, 16  ;;  %v3518_v58 = vunpack.c.l.b16 %v3167_v48  ;;  %v3519_v28 = vunpack.c.l.b16 %v3177_v52 }
 0x172   : > { %4901 = vmatmul.msk.bf16.vlgmr.msra.gmra.mxu3 %vm709_vm4, %v3548_v53  ;;  %v4692_v53 = vld [vmem:[%s5185_s29 + $0x24] sm:$0xe]  ;;  %v3810_v63 = vsel %vm5371_vm7, %v4934_v20, %v3809_v3  ;;  %v3813_v24 = vsel %vm5371_vm7, %v3811_v44, %v3812_v2  ;;  %v2481_v3 = vsel %vm5371_vm7, %v2479_v56, %v2480_v62 }
 0x173   : > { %v3184_v29 = vrot.slane %v3182_v60, 5  ;;  %v3549_v2 = vpack.c.b16 %v3519_v28, %v3518_v58  ;;  %v3917_v52 = vunpack.c.l.b16 %v3813_v24  ;;  %v3816_v24 = vrot.slane %v5883_v30, 5 }
 0x174   : > { %v2325_v17 = vpop.f32.mrf.mxu0 }
 0x175   : > { %v1671_v16 = vpop.f32.mrf.mxu3  ;;  %v1036_v9 = vpop.f32.mrf.mxu1 }
 0x176   : > { %v1727_v25 = vadd.f32 %v1671_v16, %v1440_v51  ;;  %v4708_v51 = vrot.slane %v4692_v53, 9  ;;  %v3190_v16 = vrot.slane %v3188_v14, 5  ;;  %v1037_v44 = vadd.f32 %v1036_v9, %v5522_v22  ;;  %v5918_v22 = vld [vmem:[%s5185_s29 + $0x40] sm:$0xf] }
 0x177   : > { %4950 = vmatmul.msk.bf16.vlgmr.msra.gmra.mxu0 %vm709_vm4, %v3946_v50  ;;  %v3181_v50 = vrot.slane %v3179_v5, 4 }
 0x178   : > { %v1386_v19 = vpop.f32.mrf.mxu2  ;;  %4724 = vmatmul.msk.bf16.gmra.mxu1 %vm709_vm4, %v2608_v8  ;;  %v5899_v11 = vadd.f32 %v2325_v17, %v1727_v25  ;;  %v5906_v8 = vld [vmem:[%s5185_s29 + $0x38] sm:$0x1]  ;;  %v2478_v48 = vsel %vm5371_vm7, %v4708_v51, %v2477_v61  ;;  %v3916_v25 = vunpack.c.l.b16 %v3810_v63  ;;  %v3195_v5 = vor.u32 %v3194_v4, %v3190_v16  ;;  %v4861_v61 = vld [vmem:[%s5185_s29 + $0x3c] sm:$0xf]  ;;  %v4919_v63 = vld [vmem:[%s5185_s29 + $0x30] sm:$0xe] }
 0x179   : > { %v1441_v41 = vadd.f32 %v1386_v19, %v1034_v38  ;;  %v3185_v53 = vor.u32 %v3184_v29, %v3181_v50  ;;  %v3198_v60 = vshll.u32 %v5906_v8, 16  ;;  %v2579_v23 = vunpack.c.l.b16 %v2478_v48  ;;  %v5070_v48 = vld [vmem:[%s5185_s29 + $0x34] sm:$0xf] }
 0x17a   : > { %v2580_v19 = vunpack.c.l.b16 %v2481_v3  ;;  %v3947_v62 = vpack.c.b16 %v3917_v52, %v3916_v25  ;;  %v3196_v51 = vrot.slane %v3195_v5, 4  ;;  %v3203_v50 = vshrl.u32 %v4861_v61, 16 }
 0x17b   : > { %v3200_v56 = vrot.slane %v3198_v60, 5  ;;  %v3206_v29 = vshll.u32 %v4861_v61, 16  ;;  %v2484_v3 = vrot.slane %v5070_v48, 5  ;;  %v4935_v60 = vrot.slane %v4919_v63, 9 }
 0x17c   : > { %v2327_v34 = vpop.f32.mrf.mxu0  ;;  %v2609_v28 = vpack.c.b16 %v2580_v19, %v2579_v23  ;;  %v3818_v23 = vrot.slane %v3816_v24, 4  ;;  %v3819_v19 = vrot.slane %v5906_v8, 5 }
 0x17d   : > { %v1673_v38 = vpop.f32.mrf.mxu3  ;;  %4837 = vmatmul.msk.bf16.gmra.mxu2 %vm709_vm4, %v5002_v27  ;;  %v1038_v17 = vpop.f32.mrf.mxu1  ;;  %v3201_v5 = vsel %vm5197_vm3, %v3196_v51, %v3200_v56  ;;  %v3208_v61 = vrot.slane %v3206_v29, 5  ;;  %v5941_v56 = vld [vmem:[%s5185_s29 + $0x44] sm:$0x1] }
 0x17e   : > { %v1728_v20 = vadd.f32 %v1673_v38, %v1441_v41  ;;  %v3186_v41 = vrot.slane %v3185_v53, 4  ;;  %v3212_v53 = vshll.u32 %v5918_v22, 16  ;;  %v3820_v8 = vsel %vm5371_vm7, %v3818_v23, %v3819_v19 }
 0x180   : > { %v1389_v14 = vpop.f32.mrf.mxu2  ;;  %v5920_v9 = vadd.f32 %v2327_v34, %v1728_v20  ;;  %v3216_v34 = vshrl.u32 %v5918_v22, 16  ;;  %v1039_v20 = vadd.f32 %v1038_v17, %v5543_v55  ;;  %v3191_v30 = vsel %vm5197_vm3, %v3186_v41, %v3190_v16 }
 0x181   : > { %v1442_v27 = vadd.f32 %v1389_v14, %v1037_v44  ;;  %v4693_v44 = vld [vmem:[%s5185_s29 + $0x30] sm:$0xe]  ;;  %v2486_v55 = vrot.slane %v2484_v3, 4  ;;  %v3520_v16 = vunpack.c.l.b16 %v3191_v30  ;;  %v3521_v41 = vunpack.c.l.b16 %v3201_v5 }
 0x182   : > { %4902 = vmatmul.msk.bf16.gmra.mxu3 %vm709_vm4, %v3549_v2  ;;  %v5071_v2 = vld [vmem:[%s5185_s29 + $0x38] sm:$0x1]  ;;  %v4709_v48 = vrot.slane %v4693_v44, 9  ;;  %v3218_v51 = vrot.slane %v3216_v34, 4 }
 0x183   : > { %v2487_v25 = vrot.slane %v5071_v2, 5  ;;  %v3214_v2 = vrot.slane %v3212_v53, 5  ;;  %v3550_v34 = vpack.c.b16 %v3521_v41, %v3520_v16  ;;  %v5961_v41 = vld [vmem:[%s5185_s29 + $0x4c] sm:$0xf] }
 0x184   : > { %v2330_v58 = vpop.f32.mrf.mxu0 }
 0x185   : > { %v1676_v4 = vpop.f32.mrf.mxu3  ;;  %v1041_v38 = vpop.f32.mrf.mxu1 }
 0x186   : > { %v1729_v52 = vadd.f32 %v1676_v4, %v1442_v27  ;;  %v3205_v27 = vrot.slane %v3203_v50, 4  ;;  %v1042_v30 = vadd.f32 %v1041_v38, %v5566_v26 }
 0x187   : > { %4951 = vmatmul.msk.bf16.gmra.mxu0 %vm709_vm4, %v3947_v62  ;;  %v5003_v62 = vld [vmem:[%s5185_s29 + $0x30] sm:$0xff] }
 0x188   : > { %v1391_v14 = vpop.f32.mrf.mxu2  ;;  %4725 = vmatmul.msk.bf16.gmra.mxu1 %vm709_vm4, %v2609_v28  ;;  %v5938_v17 = vadd.f32 %v2330_v58, %v1729_v52  ;;  %v3817_v28 = vsel %vm5371_vm7, %v4935_v60, %v3816_v24  ;;  %v2485_v58 = vsel %vm5371_vm7, %v4709_v48, %v2484_v3  ;;  %v2488_v52 = vsel %vm5371_vm7, %v2486_v55, %v2487_v25  ;;  %v4864_v55 = vld [vmem:[%s5185_s29 + $0x48] sm:$0xf] }
 0x189   : > { %v1443_v4 = vadd.f32 %v1391_v14, %v1039_v20  ;;  %v3209_v44 = vor.u32 %v3208_v61, %v3205_v27  ;;  %v3219_v20 = vor.u32 %v3218_v51, %v3214_v2  ;;  %v3222_v24 = vshll.u32 %v5941_v56, 16  ;;  %v4920_v61 = vld [vmem:[%s5185_s29 + $0x3c] sm:$0xe] }
 0x18a   : > { %v3918_v5 = vunpack.c.l.b16 %v3817_v28  ;;  %v3919_v60 = vunpack.c.l.b16 %v3820_v8  ;;  %v2581_v23 = vunpack.c.l.b16 %v2485_v58  ;;  %v2582_v19 = vunpack.c.l.b16 %v2488_v52  ;;  %v5072_v52 = vld [vmem:[%s5185_s29 + $0x40] sm:$0xf] }
 0x18b   : > { %v3220_v25 = vrot.slane %v3219_v20, 4  ;;  %v3224_v27 = vrot.slane %v3222_v24, 5  ;;  %v3826_v58 = vrot.slane %v5941_v56, 5  ;;  %v3227_v20 = vshrl.u32 %v4864_v55, 16  ;;  %v5073_v56 = vld [vmem:[%s5185_s29 + $0x44] sm:$0x1] }
 0x18c   : > { %v2332_v63 = vpop.f32.mrf.mxu0  ;;  %v3948_v48 = vpack.c.b16 %v3919_v60, %v3918_v5  ;;  %v2610_v16 = vpack.c.b16 %v2582_v19, %v2581_v23  ;;  %v3240_v5 = vshrl.u32 %v5961_v41, 16  ;;  %v2494_v60 = vrot.slane %v5073_v56, 5  ;;  %v5004_v19 = vld [vmem:[%s5185_s29 + $0x3c] sm:$0xff] }
 0x18d   : > { %v1678_v50 = vpop.f32.mrf.mxu3  ;;  %4838 = vmatmul.msk.bf16.gmra.mxu2 %vm709_vm4, %v5003_v62  ;;  %v1043_v29 = vpop.f32.mrf.mxu1  ;;  %v3210_v62 = vrot.slane %v3209_v44, 4 }
 0x18e   : > { %v1730_v53 = vadd.f32 %v1678_v50, %v1443_v4  ;;  %v3823_v4 = vrot.slane %v5918_v22, 5  ;;  %v4936_v50 = vrot.slane %v4920_v61, 9  ;;  %v2491_v22 = vrot.slane %v5072_v52, 5 }
 0x18f   : > { %v3215_v8 = vsel %vm5197_vm3, %v3210_v62, %v3214_v2  ;;  %v1044_v24 = vadd.f32 %v1043_v29, %v5584_v43  ;;  %v3236_v2 = vshll.u32 %v5961_v41, 16  ;;  %v3242_v52 = vrot.slane %v3240_v5, 4 }
 0x190   : > { %v1394_v14 = vpop.f32.mrf.mxu2  ;;  %v5958_v26 = vadd.f32 %v2332_v63, %v1730_v53  ;;  %v3225_v63 = vsel %vm5197_vm3, %v3220_v25, %v3224_v27  ;;  %v3825_v53 = vrot.slane %v3823_v4, 4  ;;  %v2493_v62 = vrot.slane %v2491_v22, 4 }
 0x191   : > { %v1444_v3 = vadd.f32 %v1394_v14, %v1042_v30  ;;  %v3230_v30 = vshll.u32 %v4864_v55, 16  ;;  %v3522_v27 = vunpack.c.l.b16 %v3215_v8  ;;  %v3523_v61 = vunpack.c.l.b16 %v3225_v63 }
 0x192   : > { %4903 = vmatmul.msk.bf16.gmra.mxu3 %vm709_vm4, %v3550_v34  ;;  %v4694_v34 = vld [vmem:[%s5185_s29 + $0x3c] sm:$0xe]  ;;  %v3824_v43 = vsel %vm5371_vm7, %v4936_v50, %v3823_v4  ;;  %v3827_v29 = vsel %vm5371_vm7, %v3825_v53, %v3826_v58  ;;  %v2495_v4 = vsel %vm5371_vm7, %v2493_v62, %v2494_v60 }
 0x193   : > { %v3232_v55 = vrot.slane %v3230_v30, 5  ;;  %v3551_v58 = vpack.c.b16 %v3523_v61, %v3522_v27  ;;  %v3921_v63 = vunpack.c.l.b16 %v3827_v29  ;;  %v3830_v29 = vrot.slane %v5961_v41, 5 }
 0x194   : > { %v2335_v38 = vpop.f32.mrf.mxu0 }
 0x195   : > { %v1681_v51 = vpop.f32.mrf.mxu3  ;;  %v1046_v28 = vpop.f32.mrf.mxu1 }
 0x196   : > { %v1731_v44 = vadd.f32 %v1681_v51, %v1444_v3  ;;  %v4710_v3 = vrot.slane %v4694_v34, 9  ;;  %v3238_v51 = vrot.slane %v3236_v2, 5  ;;  %v1047_v53 = vadd.f32 %v1046_v28, %v5605_v40  ;;  %v5996_v40 = vld [vmem:[%s5185_s29 + $0x58] sm:$0xf] }
 0x197   : > { %4952 = vmatmul.msk.bf16.gmra.mxu0 %vm709_vm4, %v3948_v48  ;;  %v3229_v48 = vrot.slane %v3227_v20, 4 }
 0x198   : > { %v1396_v14 = vpop.f32.mrf.mxu2  ;;  %4726 = vmatmul.msk.bf16.gmra.mxu1 %vm709_vm4, %v2610_v16  ;;  %v5977_v25 = vadd.f32 %v2335_v38, %v1731_v44  ;;  %v5984_v16 = vld [vmem:[%s5185_s29 + $0x50] sm:$0x1]  ;;  %v2492_v8 = vsel %vm5371_vm7, %v4710_v3, %v2491_v22  ;;  %v3920_v44 = vunpack.c.l.b16 %v3824_v43  ;;  %v3243_v20 = vor.u32 %v3242_v52, %v3238_v51  ;;  %v4867_v22 = vld [vmem:[%s5185_s29 + $0x54] sm:$0xf]  ;;  %v4921_v43 = vld [vmem:[%s5185_s29 + $0x48] sm:$0xe] }
 0x199   : > { %v1445_v23 = vadd.f32 %v1396_v14, %v1044_v24  ;;  %v3233_v34 = vor.u32 %v3232_v55, %v3229_v48  ;;  %v3246_v30 = vshll.u32 %v5984_v16, 16  ;;  %v2583_v5 = vunpack.c.l.b16 %v2492_v8  ;;  %v5074_v8 = vld [vmem:[%s5185_s29 + $0x4c] sm:$0xf] }
 0x19a   : > { %v2584_v14 = vunpack.c.l.b16 %v2495_v4  ;;  %v3949_v60 = vpack.c.b16 %v3921_v63, %v3920_v44  ;;  %v3244_v3 = vrot.slane %v3243_v20, 4  ;;  %v3251_v48 = vshrl.u32 %v4867_v22, 16 }
 0x19b   : > { %v3248_v62 = vrot.slane %v3246_v30, 5  ;;  %v3254_v55 = vshll.u32 %v4867_v22, 16  ;;  %v2498_v4 = vrot.slane %v5074_v8, 5  ;;  %v4937_v30 = vrot.slane %v4921_v43, 9 }
 0x19c   : > { %v2337_v56 = vpop.f32.mrf.mxu0  ;;  %v2611_v61 = vpack.c.b16 %v2584_v14, %v2583_v5  ;;  %v3832_v5 = vrot.slane %v3830_v29, 4  ;;  %v3833_v14 = vrot.slane %v5984_v16, 5 }
 0x19d   : > { %v1683_v24 = vpop.f32.mrf.mxu3  ;;  %4839 = vmatmul.msk.bf16.gmra.mxu2 %vm709_vm4, %v5004_v19  ;;  %v1048_v38 = vpop.f32.mrf.mxu1  ;;  %v3249_v20 = vsel %vm5197_vm3, %v3244_v3, %v3248_v62  ;;  %v3256_v22 = vrot.slane %v3254_v55, 5  ;;  %v6019_v62 = vld [vmem:[%s5185_s29 + $0x5c] sm:$0x1] }
 0x19e   : > { %v1732_v50 = vadd.f32 %v1683_v24, %v1445_v23  ;;  %v3234_v23 = vrot.slane %v3233_v34, 4  ;;  %v3260_v34 = vshll.u32 %v5996_v40, 16  ;;  %v3834_v16 = vsel %vm5371_vm7, %v3832_v5, %v3833_v14 }
 0x1a0   : > { %v1399_v2 = vpop.f32.mrf.mxu2  ;;  %v5998_v28 = vadd.f32 %v2337_v56, %v1732_v50  ;;  %v3264_v56 = vshrl.u32 %v5996_v40, 16  ;;  %v1049_v50 = vadd.f32 %v1048_v38, %v5620_v10  ;;  %v3239_v41 = vsel %vm5197_vm3, %v3234_v23, %v3238_v51 }
 0x1a1   : > { %v1446_v19 = vadd.f32 %v1399_v2, %v1047_v53  ;;  %v4695_v53 = vld [vmem:[%s5185_s29 + $0x48] sm:$0xe]  ;;  %v2500_v10 = vrot.slane %v2498_v4, 4  ;;  %v3524_v51 = vunpack.c.l.b16 %v3239_v41  ;;  %v3525_v23 = vunpack.c.l.b16 %v3249_v20 }
 0x1a2   : > { %4904 = vmatmul.msk.bf16.gmra.mxu3 %vm709_vm4, %v3551_v58  ;;  %v5075_v58 = vld [vmem:[%s5185_s29 + $0x50] sm:$0x1]  ;;  %v4711_v8 = vrot.slane %v4695_v53, 9  ;;  %v3266_v3 = vrot.slane %v3264_v56, 4 }
 0x1a3   : > { %v2501_v44 = vrot.slane %v5075_v58, 5  ;;  %v3262_v58 = vrot.slane %v3260_v34, 5  ;;  %v3552_v56 = vpack.c.b16 %v3525_v23, %v3524_v51  ;;  %v6039_v23 = vld [vmem:[%s5185_s29 + $0x64] sm:$0xf] }
 0x1a4   : > { %v2340_v27 = vpop.f32.mrf.mxu0 }
 0x1a5   : > { %v1686_v52 = vpop.f32.mrf.mxu3  ;;  %v1051_v24 = vpop.f32.mrf.mxu1 }
 0x1a6   : > { %v1733_v63 = vadd.f32 %v1686_v52, %v1446_v19  ;;  %v3253_v19 = vrot.slane %v3251_v48, 4  ;;  %v1052_v41 = vadd.f32 %v1051_v24, %v5496_v49 }
 0x1a7   : > { %4953 = vmatmul.msk.bf16.gmra.mxu0 %vm709_vm4, %v3949_v60  ;;  %v5005_v60 = vld [vmem:[%s5185_s29 + $0x48] sm:$0xff] }
 0x1a8   : > { %v1401_v2 = vpop.f32.mrf.mxu2  ;;  %4727 = vmatmul.msk.bf16.gmra.mxu1 %vm709_vm4, %v2611_v61  ;;  %v6016_v38 = vadd.f32 %v2340_v27, %v1733_v63  ;;  %v3831_v61 = vsel %vm5371_vm7, %v4937_v30, %v3830_v29  ;;  %v2499_v27 = vsel %vm5371_vm7, %v4711_v8, %v2498_v4  ;;  %v2502_v63 = vsel %vm5371_vm7, %v2500_v10, %v2501_v44  ;;  %v4870_v10 = vld [vmem:[%s5185_s29 + $0x60] sm:$0xf] }
 0x1a9   : > { %v1447_v52 = vadd.f32 %v1401_v2, %v1049_v50  ;;  %v3257_v53 = vor.u32 %v3256_v22, %v3253_v19  ;;  %v3267_v50 = vor.u32 %v3266_v3, %v3262_v58  ;;  %v3270_v29 = vshll.u32 %v6019_v62, 16  ;;  %v4922_v22 = vld [vmem:[%s5185_s29 + $0x54] sm:$0xe] }
 0x1aa   : > { %v3922_v20 = vunpack.c.l.b16 %v3831_v61  ;;  %v3923_v30 = vunpack.c.l.b16 %v3834_v16  ;;  %v2585_v5 = vunpack.c.l.b16 %v2499_v27  ;;  %v2586_v14 = vunpack.c.l.b16 %v2502_v63  ;;  %v5076_v63 = vld [vmem:[%s5185_s29 + $0x58] sm:$0xf] }
 0x1ab   : > { %v3268_v44 = vrot.slane %v3267_v50, 4  ;;  %v3272_v19 = vrot.slane %v3270_v29, 5  ;;  %v3840_v27 = vrot.slane %v6019_v62, 5  ;;  %v3275_v50 = vshrl.u32 %v4870_v10, 16  ;;  %v5077_v62 = vld [vmem:[%s5185_s29 + $0x5c] sm:$0x1] }
 0x1ac   : > { %v2342_v43 = vpop.f32.mrf.mxu0  ;;  %v3950_v8 = vpack.c.b16 %v3923_v30, %v3922_v20  ;;  %v2612_v51 = vpack.c.b16 %v2586_v14, %v2585_v5  ;;  %v3288_v20 = vshrl.u32 %v6039_v23, 16  ;;  %v2508_v30 = vrot.slane %v5077_v62, 5  ;;  %v5006_v14 = vld [vmem:[%s5185_s29 + $0x54] sm:$0xff] }
 0x1ad   : > { %v1688_v48 = vpop.f32.mrf.mxu3  ;;  %4840 = vmatmul.msk.bf16.gmra.mxu2 %vm709_vm4, %v5005_v60  ;;  %v1053_v55 = vpop.f32.mrf.mxu1  ;;  %v3258_v60 = vrot.slane %v3257_v53, 4 }
 0x1ae   : > { %v1734_v34 = vadd.f32 %v1688_v48, %v1447_v52  ;;  %v3837_v52 = vrot.slane %v5996_v40, 5  ;;  %v4938_v48 = vrot.slane %v4922_v22, 9  ;;  %v2505_v40 = vrot.slane %v5076_v63, 5 }
 0x1af   : > { %v3263_v16 = vsel %vm5197_vm3, %v3258_v60, %v3262_v58  ;;  %v1054_v29 = vadd.f32 %v1053_v55, %v5515_v0  ;;  %v3284_v58 = vshll.u32 %v6039_v23, 16  ;;  %v3290_v63 = vrot.slane %v3288_v20, 4 }
 0x1b0   : > { %v1404_v2 = vpop.f32.mrf.mxu2  ;;  %v6036_v49 = vadd.f32 %v2342_v43, %v1734_v34  ;;  %v3273_v43 = vsel %vm5197_vm3, %v3268_v44, %v3272_v19  ;;  %v3839_v34 = vrot.slane %v3837_v52, 4  ;;  %v2507_v60 = vrot.slane %v2505_v40, 4 }
 0x1b1   : > { %v1448_v4 = vadd.f32 %v1404_v2, %v1052_v41  ;;  %v3278_v41 = vshll.u32 %v4870_v10, 16  ;;  %v3526_v19 = vunpack.c.l.b16 %v3263_v16  ;;  %v3527_v22 = vunpack.c.l.b16 %v3273_v43 }
 0x1b2   : > { %4905 = vmatmul.msk.bf16.gmra.mxu3 %vm709_vm4, %v3552_v56  ;;  %v4696_v56 = vld [vmem:[%s5185_s29 + $0x54] sm:$0xe]  ;;  %v3838_v0 = vsel %vm5371_vm7, %v4938_v48, %v3837_v52  ;;  %v3841_v55 = vsel %vm5371_vm7, %v3839_v34, %v3840_v27  ;;  %v2509_v52 = vsel %vm5371_vm7, %v2507_v60, %v2508_v30 }
 0x1b3   : > { %v3280_v10 = vrot.slane %v3278_v41, 5  ;;  %v3553_v27 = vpack.c.b16 %v3527_v22, %v3526_v19  ;;  %v3925_v43 = vunpack.c.l.b16 %v3841_v55  ;;  %v3844_v55 = vrot.slane %v6039_v23, 5 }
 0x1b4   : > { %v2345_v24 = vpop.f32.mrf.mxu0 }
 0x1b5   : > { %v1691_v3 = vpop.f32.mrf.mxu3  ;;  %v1056_v61 = vpop.f32.mrf.mxu1 }
 0x1b6   : > { %v1735_v53 = vadd.f32 %v1691_v3, %v1448_v4  ;;  %v4712_v4 = vrot.slane %v4696_v56, 9  ;;  %v3286_v3 = vrot.slane %v3284_v58, 5  ;;  %v1057_v34 = vadd.f32 %v1056_v61, %v5536_v39  ;;  %v6074_v39 = vld [vmem:[%s5185_s29 + $0x70] sm:$0xf] }
 0x1b7   : > { %4954 = vmatmul.msk.bf16.gmra.mxu0 %vm709_vm4, %v3950_v8  ;;  %v3277_v8 = vrot.slane %v3275_v50, 4 }
 0x1b8   : > { %v1406_v2 = vpop.f32.mrf.mxu2  ;;  %4728 = vmatmul.msk.bf16.gmra.mxu1 %vm709_vm4, %v2612_v51  ;;  %v6055_v44 = vadd.f32 %v2345_v24, %v1735_v53  ;;  %v6062_v51 = vld [vmem:[%s5185_s29 + $0x68] sm:$0x1]  ;;  %v2506_v16 = vsel %vm5371_vm7, %v4712_v4, %v2505_v40  ;;  %v3924_v53 = vunpack.c.l.b16 %v3838_v0  ;;  %v3291_v50 = vor.u32 %v3290_v63, %v3286_v3  ;;  %v4873_v40 = vld [vmem:[%s5185_s29 + $0x6c] sm:$0xf]  ;;  %v4923_v0 = vld [vmem:[%s5185_s29 + $0x60] sm:$0xe] }
 0x1b9   : > { %v1449_v5 = vadd.f32 %v1406_v2, %v1054_v29  ;;  %v3281_v56 = vor.u32 %v3280_v10, %v3277_v8  ;;  %v3294_v41 = vshll.u32 %v6062_v51, 16  ;;  %v2587_v20 = vunpack.c.l.b16 %v2506_v16  ;;  %v5078_v16 = vld [vmem:[%s5185_s29 + $0x64] sm:$0xf] }
 0x1ba   : > { %v2588_v2 = vunpack.c.l.b16 %v2509_v52  ;;  %v3951_v30 = vpack.c.b16 %v3925_v43, %v3924_v53  ;;  %v3292_v4 = vrot.slane %v3291_v50, 4  ;;  %v3299_v8 = vshrl.u32 %v4873_v40, 16 }
 0x1bb   : > { %v3296_v60 = vrot.slane %v3294_v41, 5  ;;  %v3302_v10 = vshll.u32 %v4873_v40, 16  ;;  %v2512_v52 = vrot.slane %v5078_v16, 5  ;;  %v4939_v41 = vrot.slane %v4923_v0, 9 }
 0x1bc   : > { %v2347_v62 = vpop.f32.mrf.mxu0  ;;  %v2613_v22 = vpack.c.b16 %v2588_v2, %v2587_v20  ;;  %v3846_v20 = vrot.slane %v3844_v55, 4  ;;  %v3847_v2 = vrot.slane %v6062_v51, 5 }
 0x1bd   : > { %v1693_v29 = vpop.f32.mrf.mxu3  ;;  %4841 = vmatmul.msk.bf16.gmra.mxu2 %vm709_vm4, %v5006_v14  ;;  %v1058_v24 = vpop.f32.mrf.mxu1  ;;  %v3297_v50 = vsel %vm5197_vm3, %v3292_v4, %v3296_v60  ;;  %v3304_v40 = vrot.slane %v3302_v10, 5  ;;  %v6099_v60 = vld [vmem:[%s5185_s29 + $0x74] sm:$0x1] }
 0x1be   : > { %v1736_v48 = vadd.f32 %v1693_v29, %v1449_v5  ;;  %v3282_v5 = vrot.slane %v3281_v56, 4  ;;  %v3308_v56 = vshll.u32 %v6074_v39, 16  ;;  %v3848_v51 = vsel %vm5371_vm7, %v3846_v20, %v3847_v2 }
 0x1c0   : > { %v1409_v58 = vpop.f32.mrf.mxu2  ;;  %v6076_v61 = vadd.f32 %v2347_v62, %v1736_v48  ;;  %v3312_v62 = vshrl.u32 %v6074_v39, 16  ;;  %v1059_v48 = vadd.f32 %v1058_v24, %v5555_v6  ;;  %v3287_v23 = vsel %vm5197_vm3, %v3282_v5, %v3286_v3 }
 0x1c1   : > { %v1450_v14 = vadd.f32 %v1409_v58, %v1057_v34  ;;  %v4697_v34 = vld [vmem:[%s5185_s29 + $0x60] sm:$0xe]  ;;  %v2514_v6 = vrot.slane %v2512_v52, 4  ;;  %v3528_v3 = vunpack.c.l.b16 %v3287_v23  ;;  %v3529_v5 = vunpack.c.l.b16 %v3297_v50 }
 0x1c2   : > { %4906 = vmatmul.msk.bf16.gmra.mxu3 %vm709_vm4, %v3553_v27  ;;  %v5079_v27 = vld [vmem:[%s5185_s29 + $0x68] sm:$0x1]  ;;  %v4713_v16 = vrot.slane %v4697_v34, 9  ;;  %v3314_v4 = vrot.slane %v3312_v62, 4 }
 0x1c3   : > { %v2515_v53 = vrot.slane %v5079_v27, 5  ;;  %v6096_v27 = vrot.slane %v3308_v56, 5  ;;  %v3554_v62 = vpack.c.b16 %v3529_v5, %v3528_v3  ;;  %v6118_v3 = vld [vmem:[%s5185_s29 + $0x7c] sm:$0xf] }
 0x1c4   : > { %v2350_v19 = vpop.f32.mrf.mxu0  ;;  %v2513_v10 = vsel %vm5371_vm7, %v4713_v16, %v2512_v52  ;;  %v4876_v52 = vld [vmem:[%s5185_s29 + $0x78] sm:$0xf] }
 0x1c5   : > { %v1696_v63 = vpop.f32.mrf.mxu3  ;;  %v1061_v29 = vpop.f32.mrf.mxu1  ;;  %v2589_v20 = vunpack.c.l.b16 %v2513_v10 }
 0x1c6   : > { %v1737_v43 = vadd.f32 %v1696_v63, %v1450_v14  ;;  %v3301_v14 = vrot.slane %v3299_v8, 4  ;;  %v1062_v23 = vadd.f32 %v1061_v29, %v5574_v45  ;;  %v3323_v45 = vshrl.u32 %v4876_v52, 16 }
 0x1c7   : > { %4955 = vmatmul.msk.bf16.gmra.mxu0 %vm709_vm4, %v3951_v30  ;;  %v5007_v30 = vld [vmem:[%s5185_s29 + $0x60] sm:$0xff]  ;;  %v3326_v29 = vshll.u32 %v4876_v52, 16  ;;  %v5008_v52 = vld [vmem:[%s5185_s29 + $0x6c] sm:$0xff] }
 0x1c8   : > { %v1411_v58 = vpop.f32.mrf.mxu2  ;;  %4729 = vmatmul.msk.bf16.gmra.mxu1 %vm709_vm4, %v2613_v22  ;;  %v6094_v24 = vadd.f32 %v2350_v19, %v1737_v43  ;;  %v3845_v22 = vsel %vm5371_vm7, %v4939_v41, %v3844_v55  ;;  %v2516_v43 = vsel %vm5371_vm7, %v2514_v6, %v2515_v53  ;;  %v3305_v34 = vor.u32 %v3304_v40, %v3301_v14  ;;  %v4924_v40 = vld [vmem:[%s5185_s29 + $0x6c] sm:$0xe] }
 0x1c9   : > { %v1451_v63 = vadd.f32 %v1411_v58, %v1059_v48  ;;  %v3315_v55 = vor.u32 %v3314_v4, %v6096_v27  ;;  %v3318_v48 = vshll.u32 %v6099_v60, 16  ;;  %v3926_v50 = vunpack.c.l.b16 %v3845_v22 }
 0x1ca   : > { %v3927_v41 = vunpack.c.l.b16 %v3848_v51  ;;  %v2590_v2 = vunpack.c.l.b16 %v2516_v43  ;;  %v3306_v16 = vrot.slane %v3305_v34, 4  ;;  %v4940_v43 = vrot.slane %v4924_v40, 9 }
 0x1cb   : > { %v3316_v53 = vrot.slane %v3315_v55, 4  ;;  %v3320_v14 = vrot.slane %v3318_v48, 5  ;;  %v3854_v34 = vrot.slane %v6099_v60, 5  ;;  %v3336_v60 = vshrl.u32 %v6118_v3, 16 }
 0x1cc   : > { %v2352_v0 = vpop.f32.mrf.mxu0  ;;  %v3952_v6 = vpack.c.b16 %v3927_v41, %v3926_v50  ;;  %v2614_v22 = vpack.c.b16 %v2590_v2, %v2589_v20  ;;  %v3311_v10 = vsel %vm5197_vm3, %v3306_v16, %v6096_v27  ;;  %v3325_v27 = vrot.slane %v3323_v45, 4  ;;  %v5081_v16 = vld [vmem:[%s5185_s29 + $0x74] sm:$0x1] }
 0x1cd   : > { %v1698_v8 = vpop.f32.mrf.mxu3  ;;  %4842 = vmatmul.msk.bf16.gmra.mxu2 %vm709_vm4, %v5007_v30  ;;  %v1063_v19 = vpop.f32.mrf.mxu1  ;;  %v3328_v41 = vrot.slane %v3326_v29, 5  ;;  %v3530_v40 = vunpack.c.l.b16 %v3311_v10 }
 0x1ce   : > { %v1738_v56 = vadd.f32 %v1698_v8, %v1451_v63  ;;  %v3851_v63 = vrot.slane %v6074_v39, 5  ;;  %v5080_v39 = vld [vmem:[%s5185_s29 + $0x70] sm:$0xf]  ;;  %v1064_v50 = vadd.f32 %v1063_v19, %v5597_v12 }
 0x1cf   : > { %v2519_v55 = vrot.slane %v5080_v39, 5  ;;  %v3329_v45 = vor.u32 %v3328_v41, %v3325_v27 }
 0x1d0   : > { %v1414_v58 = vpop.f32.mrf.mxu2  ;;  %v6120_v5 = vadd.f32 %v2352_v0, %v1738_v56  ;;  %v3321_v0 = vsel %vm5197_vm3, %v3316_v53, %v3320_v14  ;;  %v3853_v56 = vrot.slane %v3851_v63, 4  ;;  %v2522_v53 = vrot.slane %v5081_v16, 5 }
 0x1d1   : > { %v1452_v30 = vadd.f32 %v1414_v58, %v1062_v23  ;;  %v3332_v23 = vshll.u32 %v6118_v3, 16  ;;  %v3852_v12 = vsel %vm5371_vm7, %v4940_v43, %v3851_v63 }
 0x1d2   : > { %4907 = vmatmul.msk.bf16.gmra.mxu3 %vm709_vm4, %v3554_v62  ;;  %v4698_v62 = vld [vmem:[%s5185_s29 + $0x6c] sm:$0xe]  ;;  %v3855_v19 = vsel %vm5371_vm7, %v3853_v56, %v3854_v34  ;;  %v3928_v34 = vunpack.c.l.b16 %v3852_v12  ;;  %v3330_v56 = vrot.slane %v3329_v45, 4 }
 0x1d3   : > { %v4714_v20 = vrot.slane %v4698_v62, 9  ;;  %v3334_v29 = vrot.slane %v3332_v23, 5  ;;  %v4878_v62 = vld [vmem:[%s5185_s29 + $0x80] sm:$0x1] }
 0x1d4   : > { %v2355_v4 = vpop.f32.mrf.mxu0  ;;  %v3342_v27 = vshll.u32 %v4878_v62, 16 }
 0x1d5   : > { %v1701_v51 = vpop.f32.mrf.mxu3  ;;  %v1066_v8 = vpop.f32.mrf.mxu1 }
 0x1d6   : > { %v1739_v48 = vadd.f32 %v1701_v51, %v1452_v30  ;;  %v2521_v30 = vrot.slane %v2519_v55, 4 }
 0x1d7   : > { %4956 = vmatmul.msk.bf16.gmra.mxu0 %vm709_vm4, %v3952_v6  ;;  %v3531_v6 = vunpack.c.l.b16 %v3321_v0  ;;  %v1067_v0 = vadd.f32 %v1066_v8, %v5616_v59  ;;  %v3335_v59 = vsel %vm5197_vm3, %v3330_v56, %v3334_v29 }
 0x1d8   : > { %v1416_v58 = vpop.f32.mrf.mxu2  ;;  %4730 = vmatmul.msk.bf16.gmra.mxu1 %vm709_vm4, %v2614_v22  ;;  %v6137_v14 = vadd.f32 %v2355_v4, %v1739_v48  ;;  %v3338_v22 = vrot.slane %v3336_v60, 4  ;;  %v2520_v4 = vsel %vm5371_vm7, %v4714_v20, %v2519_v55  ;;  %v2523_v63 = vsel %vm5371_vm7, %v2521_v30, %v2522_v53  ;;  %v6157_v53 = vld [vmem:[%s5185_s29 + $0x88] sm:$0xf] }
 0x1d9   : > { %v1453_v2 = vadd.f32 %v1416_v58, %v1064_v50  ;;  %v3555_v43 = vpack.c.b16 %v3531_v6, %v3530_v40  ;;  %v3929_v48 = vunpack.c.l.b16 %v3855_v19  ;;  %v2591_v60 = vunpack.c.l.b16 %v2520_v4 }
 0x1da   : > { %6584 = vst [vmem:[#allocation4_spill] sm:$0xff] %v6137_v14  ;;  %v3339_v23 = vor.u32 %v3338_v22, %v3334_v29  ;;  %v2592_v58 = vunpack.c.l.b16 %v2523_v63  ;;  %v4879_v14 = vld [vmem:[%s5185_s29 + $0x84] sm:$0xf]  ;;  %v3858_v20 = vrot.slane %v6118_v3, 5  ;;  %v3861_v4 = vrot.slane %v4878_v62, 5 }
 0x1db   : > { %v3953_v55 = vpack.c.b16 %v3929_v48, %v3928_v34  ;;  %v3347_v12 = vshrl.u32 %v4879_v14, 16  ;;  %v3350_v19 = vshll.u32 %v4879_v14, 16  ;;  %v4699_v63 = vld [vmem:[%s5185_s29 + $0x78] sm:$0xe]  ;;  %v3356_v48 = vshll.u32 %v6157_v53, 16 }
 0x1dc   : > { %v2357_v51 = vpop.f32.mrf.mxu0  ;;  %v3340_v8 = vrot.slane %v3339_v23, 4  ;;  %v2615_v6 = vpack.c.b16 %v2592_v58, %v2591_v60  ;;  %v3860_v29 = vrot.slane %v3858_v20, 4  ;;  %v4715_v23 = vrot.slane %v4699_v63, 9  ;;  %v5009_v58 = vld [vmem:[%s5185_s29 + $0x78] sm:$0xff] }
 0x1dd   : > { %v1703_v39 = vpop.f32.mrf.mxu3  ;;  %4843 = vmatmul.msk.bf16.gmra.mxu2 %vm709_vm4, %v5008_v52  ;;  %v1068_v50 = vpop.f32.mrf.mxu1  ;;  %v4925_v52 = vld [vmem:[%s5185_s29 + $0x78] sm:$0xe] }
 0x1de   : > { %v1740_v10 = vadd.f32 %v1703_v39, %v1453_v2  ;;  %v3344_v2 = vrot.slane %v3342_v27, 5  ;;  %v4941_v30 = vrot.slane %v4925_v52, 9  ;;  %v1069_v14 = vadd.f32 %v1068_v50, %v5633_v32 }
 0x1df   : > { %v3349_v27 = vrot.slane %v3347_v12, 4 }
 0x1e0   : > { %v1419_v41 = vpop.f32.mrf.mxu2  ;;  %v6159_v45 = vadd.f32 %v2357_v51, %v1740_v10  ;;  %v3345_v51 = vsel %vm5197_vm3, %v3340_v8, %v3344_v2  ;;  %v3532_v10 = vunpack.c.l.b16 %v3335_v59  ;;  %v3859_v56 = vsel %vm5371_vm7, %v4941_v30, %v3858_v20 }
 0x1e1   : > { %v1454_v16 = vadd.f32 %v1419_v41, %v1067_v0  ;;  %v3360_v0 = vshrl.u32 %v6157_v53, 16  ;;  %v3352_v41 = vrot.slane %v3350_v19, 5  ;;  %v3533_v50 = vunpack.c.l.b16 %v3345_v51 }
 0x1e2   : > { %4908 = vmatmul.msk.bf16.gmra.mxu3 %vm709_vm4, %v3555_v43  ;;  %v5082_v43 = vld [vmem:[%s5185_s29 + $0x7c] sm:$0xf]  ;;  %v3862_v59 = vsel %vm5371_vm7, %v3860_v29, %v3861_v4  ;;  %v6178_v8 = vrot.slane %v3356_v48, 5  ;;  %v3930_v30 = vunpack.c.l.b16 %v3859_v56 }
 0x1e3   : > { %v2526_v3 = vrot.slane %v5082_v43, 5  ;;  %v3362_v2 = vrot.slane %v3360_v0, 4  ;;  %v3931_v19 = vunpack.c.l.b16 %v3862_v59  ;;  %v3353_v63 = vor.u32 %v3352_v41, %v3349_v27  ;;  %v4926_v0 = vld [vmem:[%s5185_s29 + $0x84] sm:$0xe]  ;;  %v6192_v59 = vld [vmem:[%s5185_s29 + $0x94] sm:$0xf] }
 0x1e4   : > { %v2360_v40 = vpop.f32.mrf.mxu0 }
 0x1e5   : > { %v1706_v22 = vpop.f32.mrf.mxu3  ;;  %v2683_v39 = vpop.f32.mrf.mxu1  ;;  %v2528_v52 = vrot.slane %v2526_v3, 4  ;;  %v3363_v29 = vor.u32 %v3362_v2, %v6178_v8 }
 0x1e6   : > { %v1741_v34 = vadd.f32 %v1706_v22, %v1454_v16  ;;  %v5083_v16 = vld [vmem:[%s5185_s29 + $0x80] sm:$0x1]  ;;  %v2763_v51 = vadd.f32 %v2683_v39, %v5650_v46 }
 0x1e7   : > { %4957 = vmatmul.msk.bf16.gmra.mxu0 %vm709_vm4, %v3953_v55  ;;  %v2529_v55 = vrot.slane %v5083_v16, 5  ;;  %v4882_v16 = vld [vmem:[%s5185_s29 + $0x90] sm:$0xf]  ;;  %v3364_v27 = vrot.slane %v3363_v29, 4 }
 0x1e8   : > { %v1421_v62 = vpop.f32.mrf.mxu2  ;;  %4731 = vmatmul.msk.bf16.gmra.mxu1 %vm709_vm4, %v2615_v6  ;;  %v6174_v32 = vadd.f32 %v2360_v40, %v1741_v34  ;;  %v4881_v6 = vld [vmem:[%s5185_s29 + $0x8c] sm:$0x1]  ;;  %v2527_v40 = vsel %vm5371_vm7, %v4715_v23, %v2526_v3  ;;  %v3556_v34 = vpack.c.b16 %v3533_v50, %v3532_v10  ;;  %v3954_v3 = vpack.c.b16 %v3931_v19, %v3930_v30 }
 0x1e9   : > { %v1455_v60 = vadd.f32 %v1421_v62, %v1069_v14  ;;  %v2530_v4 = vsel %vm5371_vm7, %v2528_v52, %v2529_v55  ;;  %v3366_v48 = vshll.u32 %v4881_v6, 16  ;;  %v3865_v14 = vrot.slane %v6157_v53, 5 }
 0x1ea   : > { %v2593_v56 = vunpack.c.l.b16 %v2527_v40  ;;  %v3354_v23 = vrot.slane %v3353_v63, 4  ;;  %v3868_v53 = vrot.slane %v4881_v6, 5  ;;  %v3371_v55 = vshrl.u32 %v4882_v16, 16  ;;  %v5084_v40 = vld [vmem:[%s5185_s29 + $0x88] sm:$0xf] }
 0x1eb   : > { %v3368_v41 = vrot.slane %v3366_v48, 5  ;;  %v3867_v52 = vrot.slane %v3865_v14, 4  ;;  %v3374_v2 = vshll.u32 %v4882_v16, 16  ;;  %v3380_v30 = vshll.u32 %v6192_v59, 16  ;;  %v6203_v6 = vld [vmem:[%s6576_s2] ss:$0 sm:$0xff] }
 0x1ec   : > { %v2362_v20 = vpop.f32.mrf.mxu0  ;;  %v3384_v63 = vshrl.u32 %v6192_v59, 16 }
 0x1ed   : > { %v1708_v12 = vpop.f32.mrf.mxu3  ;;  %4844 = vmatmul.msk.bf16.gmra.mxu2 %vm709_vm4, %v5009_v58  ;;  %v2685_v22 = vpop.f32.mrf.mxu1  ;;  %v2594_v58 = vunpack.c.l.b16 %v2530_v4  ;;  %v2533_v4 = vrot.slane %v5084_v40, 5  ;;  %v3369_v29 = vsel %vm5197_vm3, %v3364_v27, %v3368_v41  ;;  %v6218_v16 = vrot.slane %v3380_v30, 5  ;;  %v5085_v27 = vld [vmem:[%s5185_s29 + $0x8c] sm:$0x1] }
 0x1ee   : > { %v1742_v43 = vadd.f32 %v1708_v12, %v1455_v60  ;;  %v4942_v60 = vrot.slane %v4926_v0, 9  ;;  %v3869_v0 = vsel %vm5371_vm7, %v3867_v52, %v3868_v53  ;;  %v2536_v41 = vrot.slane %v5085_v27, 5  ;;  %v6244_v27 = vld [vmem:[%s5185_s29 + $0xa0] sm:$0xf] }
 0x1ef   : > { %v2616_v50 = vpack.c.b16 %v2594_v58, %v2593_v56  ;;  %v2764_v56 = vadd.f32 %v2685_v22, %v5663_v42  ;;  %v3376_v58 = vrot.slane %v3374_v2, 5  ;;  %v6225_v42 = vld [vmem:[%s5185_s29 + $0x98] sm:$0x1]  ;;  %v3933_v2 = vunpack.c.l.b16 %v3869_v0 }
 0x1f0   : > { %v2970_v62 = vpop.f32.mrf.mxu2  ;;  %v6195_v46 = vadd.f32 %v2362_v20, %v1742_v43  ;;  %v3359_v20 = vsel %vm5197_vm3, %v3354_v23, %v6178_v8  ;;  %v4700_v43 = vld [vmem:[%s5185_s29 + $0x84] sm:$0xe]  ;;  %v3866_v48 = vsel %vm5371_vm7, %v4942_v60, %v3865_v14  ;;  %v3386_v14 = vrot.slane %v3384_v63, 4 }
 0x1f1   : > { %v3050_v10 = vadd.f32 %v2970_v62, %v2763_v51  ;;  %v3373_v51 = vrot.slane %v3371_v55, 4  ;;  %v4716_v23 = vrot.slane %v4700_v43, 9  ;;  %v3534_v53 = vunpack.c.l.b16 %v3359_v20 }
 0x1f2   : > { %4909 = vmatmul.msk.bf16.gmra.mxu3 %vm709_vm4, %v3556_v34  ;;  %v3535_v55 = vunpack.c.l.b16 %v3369_v29  ;;  %v3387_v20 = vor.u32 %v3386_v14, %v6218_v16  ;;  %v3390_v0 = vshll.u32 %v6225_v42, 16 }
 0x1f3   : > { %v2534_v40 = vsel %vm5371_vm7, %v4716_v23, %v2533_v4  ;;  %v4885_v23 = vld [vmem:[%s5185_s29 + $0x9c] sm:$0xf] }
 0x1f4   : > { %v4022_v39 = vpop.f32.mrf.mxu0 }
 0x1f5   : > { %v3624_v12 = vpop.f32.mrf.mxu3  ;;  %v2688_v19 = vpop.f32.mrf.mxu1 }
 0x1f6   : > { %v3704_v34 = vadd.f32 %v3624_v12, %v3050_v10  ;;  %v2535_v10 = vrot.slane %v2533_v4, 4 }
 0x1f7   : > { %4958 = vmatmul.msk.bf16.gmra.mxu0 %vm709_vm4, %v3954_v3  ;;  %v5010_v3 = vld [vmem:[%s5185_s29 + $0x84] sm:$0xff] }
 0x1f8   : > { %v4102_v62 = vadd.f32 %v4022_v39, %v3704_v34  ;;  %v2972_v8 = vpop.f32.mrf.mxu2  ;;  %4732 = vmatmul.msk.bf16.gmra.mxu1 %vm709_vm4, %v2616_v50  ;;  %v3932_v50 = vunpack.c.l.b16 %v3866_v48  ;;  %v2537_v63 = vsel %vm5371_vm7, %v2535_v10, %v2536_v41  ;;  %v3377_v34 = vor.u32 %v3376_v58, %v3373_v51 }
 0x1f9   : > { %v3051_v52 = vadd.f32 %v2972_v8, %v2764_v56  ;;  %v3557_v48 = vpack.c.b16 %v3535_v55, %v3534_v53  ;;  %v2765_v56 = vadd.f32 %v2688_v19, %v5676_v15  ;;  %v2596_v4 = vunpack.c.l.b16 %v2537_v63 }
 0x1fa   : > { %v4138_v60 = vadd.f32 %v6203_v6, %v4102_v62  ;;  %v3955_v51 = vpack.c.b16 %v3933_v2, %v3932_v50  ;;  %v3378_v58 = vrot.slane %v3377_v34, 4  ;;  %v3388_v10 = vrot.slane %v3387_v20, 4 }
 0x1fb   : > { %v3872_v15 = vrot.slane %v6192_v59, 5  ;;  %v3395_v19 = vshrl.u32 %v4885_v23, 16  ;;  %v3398_v53 = vshll.u32 %v4885_v23, 16  ;;  %v3404_v55 = vshll.u32 %v6244_v27, 16  ;;  %v4701_v59 = vld [vmem:[%s5185_s29 + $0x90] sm:$0xe] }
 0x1fc   : > { %v4170_v22 = vmax.f32 %v4138_v60, 0.0  ;;  %v4024_v39 = vpop.f32.mrf.mxu0  ;;  %v3392_v60 = vrot.slane %v3390_v0, 5  ;;  %v3383_v63 = vsel %vm5197_vm3, %v3378_v58, %v6218_v16  ;;  %v3875_v20 = vrot.slane %v6225_v42, 5 }
 0x1fd   : > { %v3626_v30 = vpop.f32.mrf.mxu3  ;;  %4845 = vmatmul.msk.bf16.gmra.mxu2 %vm709_vm4, %v5010_v3  ;;  %v2690_v12 = vpop.f32.mrf.mxu1  ;;  %v2595_v3 = vunpack.c.l.b16 %v2534_v40  ;;  %v6261_v16 = vrot.slane %v3404_v55, 5 }
 0x1fe   : > { %v4202_v43 = vpack.c.bf16 %v4170_v22, %v4170_v22  ;;  %v3705_v29 = vadd.f32 %v3626_v30, %v3051_v52  ;;  %v4927_v52 = vld [vmem:[%s5185_s29 + $0x90] sm:$0xe]  ;;  %v3408_v22 = vshrl.u32 %v6244_v27, 16  ;;  %v2766_v23 = vadd.f32 %v2690_v12, %v5689_v13 }
 0x1ff   : > { %v2617_v2 = vpack.c.b16 %v2596_v4, %v2595_v3  ;;  %v4943_v34 = vrot.slane %v4927_v52, 9  ;;  %v3400_v3 = vrot.slane %v3398_v53, 5 }
 0x200   : > { %4235 = vst.msk [vmem:[%s6230_s20] sm:$0xf] %vm4234_vm8, %v4202_v43  ;;  %v4103_v62 = vadd.f32 %v4024_v39, %v3705_v29  ;;  %v2975_v8 = vpop.f32.mrf.mxu2  ;;  %v5086_v43 = vld [vmem:[%s5185_s29 + $0x94] sm:$0xf]  ;;  %v3410_v4 = vrot.slane %v3408_v22, 4 }
 0x201   : > { %v3052_v14 = vadd.f32 %v2975_v8, %v2765_v56  ;;  %v2540_v29 = vrot.slane %v5086_v43, 5  ;;  %v3874_v56 = vrot.slane %v3872_v15, 4  ;;  %v3397_v8 = vrot.slane %v3395_v19, 4 }
 0x202   : > { %v4139_v41 = vadd.f32 %v6203_v6, %v4103_v62  ;;  %4910 = vmatmul.msk.bf16.gmra.mxu3 %vm709_vm4, %v3557_v48  ;;  %v3393_v62 = vsel %vm5197_vm3, %v3388_v10, %v3392_v60  ;;  %v5011_v10 = vld [vmem:[%s5185_s29 + $0x90] sm:$0xff]  ;;  %v3536_v60 = vunpack.c.l.b16 %v3383_v63 }
 0x203   : > { %v2542_v52 = vrot.slane %v2540_v29, 4  ;;  %v3537_v22 = vunpack.c.l.b16 %v3393_v62  ;;  %v3876_v13 = vsel %vm5371_vm7, %v3874_v56, %v3875_v20  ;;  %v3401_v12 = vor.u32 %v3400_v3, %v3397_v8 }
 0x204   : > { %v4171_v39 = vmax.f32 %v4139_v41, 0.0  ;;  %v4027_v50 = vpop.f32.mrf.mxu0  ;;  %v4717_v41 = vrot.slane %v4701_v59, 9  ;;  %v3935_v56 = vunpack.c.l.b16 %v3876_v13 }
 0x205   : > { %v3629_v30 = vpop.f32.mrf.mxu3  ;;  %v2693_v40 = vpop.f32.mrf.mxu1  ;;  %v3558_v62 = vpack.c.b16 %v3537_v22, %v3536_v60  ;;  %v3402_v3 = vrot.slane %v3401_v12, 4 }
 0x206   : > { %v4203_v48 = vpack.c.bf16 %v4171_v39, %v4171_v39  ;;  %v3706_v0 = vadd.f32 %v3629_v30, %v3052_v14  ;;  %v6268_v14 = vld [vmem:[%s5185_s29 + $0xa4] sm:$0x1]  ;;  %v3873_v39 = vsel %vm5371_vm7, %v4943_v34, %v3872_v15  ;;  %v2541_v59 = vsel %vm5371_vm7, %v4717_v41, %v2540_v29 }
 0x207   : > { %4959 = vmatmul.msk.bf16.gmra.mxu0 %vm709_vm4, %v3955_v51  ;;  %v5087_v51 = vld [vmem:[%s5185_s29 + $0x98] sm:$0x1]  ;;  %v2597_v8 = vunpack.c.l.b16 %v2541_v59  ;;  %v3882_v22 = vrot.slane %v6268_v14, 5  ;;  %v5088_v59 = vld [vmem:[%s5185_s29 + $0xa0] sm:$0xf] }
 0x208   : > { %4236 = vst.msk [vmem:[%s6230_s20 + $0x4] sm:$0xf] %vm4234_vm8, %v4203_v48  ;;  %v4104_v42 = vadd.f32 %v4027_v50, %v3706_v0  ;;  %v2977_v58 = vpop.f32.mrf.mxu2  ;;  %4733 = vmatmul.msk.bf16.gmra.mxu1 %vm709_vm4, %v2617_v2  ;;  %v2543_v19 = vrot.slane %v5087_v51, 5  ;;  %v3411_v50 = vor.u32 %v3410_v4, %v6261_v16  ;;  %v3414_v2 = vshll.u32 %v6268_v14, 16  ;;  %v4888_v51 = vld [vmem:[%s5185_s29 + $0xa8] sm:$0xf] }
 0x209   : > { %v3053_v55 = vadd.f32 %v2977_v58, %v2766_v23  ;;  %v3934_v48 = vunpack.c.l.b16 %v3873_v39  ;;  %v2767_v23 = vadd.f32 %v2693_v40, %v5702_v57 }
 0x20a   : > { %v4140_v53 = vadd.f32 %v6203_v6, %v4104_v42  ;;  %v2544_v34 = vsel %vm5371_vm7, %v2542_v52, %v2543_v19  ;;  %v3412_v4 = vrot.slane %v3411_v50, 4  ;;  %v3416_v42 = vrot.slane %v3414_v2, 5 }
 0x20b   : > { %v2598_v41 = vunpack.c.l.b16 %v2544_v34  ;;  %v3879_v52 = vrot.slane %v6244_v27, 5  ;;  %v3956_v60 = vpack.c.b16 %v3935_v56, %v3934_v48  ;;  %v6299_v27 = vld [vmem:[%s5185_s29 + $0xac] sm:$0xf]  ;;  %v3419_v2 = vshrl.u32 %v4888_v51, 16 }
 0x20c   : > { %v4172_v30 = vmax.f32 %v4140_v53, 0.0  ;;  %v4029_v63 = vpop.f32.mrf.mxu0  ;;  %v3417_v57 = vsel %vm5197_vm3, %v3412_v4, %v3416_v42  ;;  %v3432_v14 = vshrl.u32 %v6299_v27, 16 }
 0x20d   : > { %v3631_v43 = vpop.f32.mrf.mxu3  ;;  %4846 = vmatmul.msk.bf16.gmra.mxu2 %vm709_vm4, %v5011_v10  ;;  %v2695_v15 = vpop.f32.mrf.mxu1  ;;  %v4928_v10 = vld [vmem:[%s5185_s29 + $0x9c] sm:$0xe]  ;;  %v2618_v12 = vpack.c.b16 %v2598_v41, %v2597_v8  ;;  %v3881_v50 = vrot.slane %v3879_v52, 4  ;;  %v3539_v56 = vunpack.c.l.b16 %v3417_v57 }
 0x20e   : > { %v4204_v20 = vpack.c.bf16 %v4172_v30, %v4172_v30  ;;  %v3707_v0 = vadd.f32 %v3631_v43, %v3053_v55  ;;  %v3407_v55 = vsel %vm5197_vm3, %v3402_v3, %v6261_v16  ;;  %v4944_v40 = vrot.slane %v4928_v10, 9 }
 0x20f   : > { %v2547_v43 = vrot.slane %v5088_v59, 5  ;;  %v3422_v16 = vshll.u32 %v4888_v51, 16  ;;  %v2768_v4 = vadd.f32 %v2695_v15, %v5715_v54  ;;  %v5089_v51 = vld [vmem:[%s5185_s29 + $0xa4] sm:$0x1]  ;;  %v3434_v57 = vrot.slane %v3432_v14, 4 }
 0x210   : > { %4237 = vst.msk [vmem:[%s6230_s20 + $0x8] sm:$0xf] %vm4234_vm8, %v4204_v20  ;;  %v4105_v29 = vadd.f32 %v4029_v63, %v3707_v0  ;;  %v2980_v58 = vpop.f32.mrf.mxu2  ;;  %v4702_v20 = vld [vmem:[%s5185_s29 + $0x9c] sm:$0xe]  ;;  %v3428_v0 = vshll.u32 %v6299_v27, 16  ;;  %v3880_v8 = vsel %vm5371_vm7, %v4944_v40, %v3879_v52 }
 0x211   : > { %v3054_v53 = vadd.f32 %v2980_v58, %v2767_v23  ;;  %v3421_v23 = vrot.slane %v3419_v2, 4  ;;  %v5012_v58 = vld [vmem:[%s5185_s29 + $0x9c] sm:$0xff]  ;;  %v4718_v41 = vrot.slane %v4702_v20, 9  ;;  %v2549_v10 = vrot.slane %v2547_v43, 4  ;;  %v6320_v54 = vld [vmem:[%s5185_s29 + $0xb0] sm:$0x1] }
 0x212   : > { %v4141_v19 = vadd.f32 %v6203_v6, %v4105_v29  ;;  %4911 = vmatmul.msk.bf16.gmra.mxu3 %vm709_vm4, %v3558_v62  ;;  %v3538_v62 = vunpack.c.l.b16 %v3407_v55  ;;  %v3883_v29 = vsel %vm5371_vm7, %v3881_v50, %v3882_v22  ;;  %v6317_v55 = vrot.slane %v3428_v0, 5 }
 0x213   : > { %v3936_v22 = vunpack.c.l.b16 %v3880_v8  ;;  %v2548_v2 = vsel %vm5371_vm7, %v4718_v41, %v2547_v43  ;;  %v3438_v20 = vshll.u32 %v6320_v54, 16  ;;  %v4891_v43 = vld [vmem:[%s5185_s29 + $0xb4] sm:$0xf] }
 0x214   : > { %v4173_v39 = vmax.f32 %v4141_v19, 0.0  ;;  %v4032_v13 = vpop.f32.mrf.mxu0  ;;  %v2550_v19 = vrot.slane %v5089_v51, 5  ;;  %v3443_v51 = vshrl.u32 %v4891_v43, 16 }
 0x215   : > { %v3634_v30 = vpop.f32.mrf.mxu3  ;;  %v2698_v63 = vpop.f32.mrf.mxu1  ;;  %v3440_v41 = vrot.slane %v3438_v20, 5 }
 0x216   : > { %v4205_v48 = vpack.c.bf16 %v4173_v39, %v4173_v39  ;;  %v3708_v34 = vadd.f32 %v3634_v30, %v3054_v53  ;;  %v3559_v39 = vpack.c.b16 %v3539_v56, %v3538_v62  ;;  %v2551_v30 = vsel %vm5371_vm7, %v2549_v10, %v2550_v19  ;;  %v4929_v10 = vld [vmem:[%s5185_s29 + $0xa8] sm:$0xe] }
 0x217   : > { %4960 = vmatmul.msk.bf16.gmra.mxu0 %vm709_vm4, %v3956_v60  ;;  %v3424_v60 = vrot.slane %v3422_v16, 5  ;;  %v2769_v14 = vadd.f32 %v2698_v63, %v5728_v33  ;;  %v2599_v56 = vunpack.c.l.b16 %v2548_v2  ;;  %v2600_v8 = vunpack.c.l.b16 %v2551_v30 }
 0x218   : > { %4238 = vst.msk [vmem:[%s6230_s20 + $0xc] sm:$0xf] %vm4234_vm8, %v4205_v48  ;;  %v4106_v3 = vadd.f32 %v4032_v13, %v3708_v34  ;;  %v2982_v42 = vpop.f32.mrf.mxu2  ;;  %4734 = vmatmul.msk.bf16.gmra.mxu1 %vm709_vm4, %v2618_v12  ;;  %v3937_v12 = vunpack.c.l.b16 %v3883_v29  ;;  %v3435_v34 = vor.u32 %v3434_v57, %v6317_v55  ;;  %v3446_v19 = vshll.u32 %v4891_v43, 16  ;;  %v5013_v43 = vld [vmem:[%s5185_s29 + $0xa8] sm:$0xff] }
 0x219   : > { %v3055_v53 = vadd.f32 %v2982_v42, %v2768_v4  ;;  %v3425_v59 = vor.u32 %v3424_v60, %v3421_v23  ;;  %v3886_v57 = vrot.slane %v6299_v27, 5  ;;  %v3445_v27 = vrot.slane %v3443_v51, 4 }
 0x21a   : > { %v4142_v52 = vadd.f32 %v6203_v6, %v4106_v3  ;;  %v6334_v3 = vld [vmem:[%s5185_s29 + $0xb8] sm:$0xf]  ;;  %v3957_v4 = vpack.c.b16 %v3937_v12, %v3936_v22  ;;  %v5090_v22 = vld [vmem:[%s5185_s29 + $0xac] sm:$0xf] }
 0x21b   : > { %v3426_v42 = vrot.slane %v3425_v59, 4  ;;  %v3452_v33 = vshll.u32 %v6334_v3, 16  ;;  %v3456_v63 = vshrl.u32 %v6334_v3, 16 }
 0x21c   : > { %v4174_v15 = vmax.f32 %v4142_v52, 0.0  ;;  %v4034_v40 = vpop.f32.mrf.mxu0 }
 0x21d   : > { %v3636_v13 = vpop.f32.mrf.mxu3  ;;  %4847 = vmatmul.msk.bf16.gmra.mxu2 %vm709_vm4, %v5012_v58  ;;  %v2700_v50 = vpop.f32.mrf.mxu1  ;;  %v3436_v58 = vrot.slane %v3435_v34, 4  ;;  %v3431_v30 = vsel %vm5197_vm3, %v3426_v42, %v6317_v55  ;;  %v6350_v34 = vrot.slane %v3452_v33, 5  ;;  %v3458_v20 = vrot.slane %v3456_v63, 4 }
 0x21e   : > { %v4206_v16 = vpack.c.bf16 %v4174_v15, %v4174_v15  ;;  %v3709_v48 = vadd.f32 %v3636_v13, %v3055_v53  ;;  %v2619_v53 = vpack.c.b16 %v2600_v8, %v2599_v56  ;;  %v2554_v13 = vrot.slane %v5090_v22, 5  ;;  %v6358_v8 = vld [vmem:[%s5185_s29 + $0xbc] sm:$0x1] }
 0x21f   : > { %v3441_v59 = vsel %vm5197_vm3, %v3436_v58, %v3440_v41  ;;  %v3888_v55 = vrot.slane %v3886_v57, 4  ;;  %v3889_v56 = vrot.slane %v6320_v54, 5  ;;  %v3462_v54 = vshll.u32 %v6358_v8, 16 }
 0x220   : > { %4239 = vst.msk [vmem:[%s6230_s20 + $0x10] sm:$0xf] %vm4234_vm8, %v4206_v16  ;;  %v4107_v0 = vadd.f32 %v4034_v40, %v3709_v48  ;;  %v2985_v62 = vpop.f32.mrf.mxu2  ;;  %v4703_v16 = vld [vmem:[%s5185_s29 + $0xa8] sm:$0xe]  ;;  %v3448_v48 = vrot.slane %v3446_v19, 5  ;;  %v2556_v42 = vrot.slane %v2554_v13, 4  ;;  %v3541_v51 = vunpack.c.l.b16 %v3441_v59 }
 0x221   : > { %v3056_v23 = vadd.f32 %v2985_v62, %v2769_v14  ;;  %v2770_v14 = vadd.f32 %v2700_v50, %v5741_v31  ;;  %v3459_v19 = vor.u32 %v3458_v20, %v6350_v34 }
 0x222   : > { %v4143_v29 = vadd.f32 %v6203_v6, %v4107_v0  ;;  %4912 = vmatmul.msk.bf16.gmra.mxu3 %vm709_vm4, %v3559_v39  ;;  %v4945_v39 = vrot.slane %v4929_v10, 9  ;;  %v3540_v10 = vunpack.c.l.b16 %v3431_v30  ;;  %v3449_v50 = vor.u32 %v3448_v48, %v3445_v27 }
 0x223   : > { %v3464_v27 = vrot.slane %v3462_v54, 5 }
 0x224   : > { %v4175_v60 = vmax.f32 %v4143_v29, 0.0  ;;  %v4037_v52 = vpop.f32.mrf.mxu0  ;;  %v5091_v29 = vld [vmem:[%s5185_s29 + $0xb0] sm:$0x1]  ;;  %v3887_v31 = vsel %vm5371_vm7, %v4945_v39, %v3886_v57  ;;  %v3450_v59 = vrot.slane %v3449_v50, 4  ;;  %v5092_v50 = vld [vmem:[%s5185_s29 + $0xb8] sm:$0xf] }
 0x225   : > { %v3639_v15 = vpop.f32.mrf.mxu3  ;;  %v2703_v40 = vpop.f32.mrf.mxu1 }
 0x226   : > { %v4207_v12 = vpack.c.bf16 %v4175_v60, %v4175_v60  ;;  %v3710_v2 = vadd.f32 %v3639_v15, %v3056_v23  ;;  %v2557_v23 = vrot.slane %v5091_v29, 5  ;;  %v3890_v60 = vsel %vm5371_vm7, %v3888_v55, %v3889_v56 }
 0x227   : > { %4961 = vmatmul.msk.bf16.gmra.mxu0 %vm709_vm4, %v3957_v4  ;;  %v4719_v4 = vrot.slane %v4703_v16, 9  ;;  %v3939_v30 = vunpack.c.l.b16 %v3890_v60  ;;  %v3460_v16 = vrot.slane %v3459_v19, 4  ;;  %v2771_v20 = vadd.f32 %v2703_v40, %v5754_v1  ;;  %v6386_v1 = vld [vmem:[%s5185_s29 + $0xc4] sm:$0xf] }
 0x228   : > { %4240 = vst.msk [vmem:[%s6230_s20 + $0x14] sm:$0xf] %vm4234_vm8, %v4207_v12  ;;  %v4108_v0 = vadd.f32 %v4037_v52, %v3710_v2  ;;  %v2987_v62 = vpop.f32.mrf.mxu2  ;;  %4735 = vmatmul.msk.bf16.gmra.mxu1 %vm709_vm4, %v2619_v53  ;;  %v2558_v57 = vsel %vm5371_vm7, %v2556_v42, %v2557_v23  ;;  %v3560_v12 = vpack.c.b16 %v3541_v51, %v3540_v10  ;;  %v3938_v2 = vunpack.c.l.b16 %v3887_v31 }
 0x229   : > { %v3057_v41 = vadd.f32 %v2987_v62, %v2770_v14  ;;  %v2555_v15 = vsel %vm5371_vm7, %v4719_v4, %v2554_v13  ;;  %v2602_v14 = vunpack.c.l.b16 %v2558_v57  ;;  %v4894_v62 = vld [vmem:[%s5185_s29 + $0xc0] sm:$0xf]  ;;  %v3455_v4 = vsel %vm5197_vm3, %v3450_v59, %v6350_v34 }
 0x22a   : > { %v4144_v58 = vadd.f32 %v6203_v6, %v4108_v0  ;;  %v2601_v0 = vunpack.c.l.b16 %v2555_v15  ;;  %v3465_v42 = vsel %vm5197_vm3, %v3460_v16, %v3464_v27  ;;  %v3467_v10 = vshrl.u32 %v4894_v62, 16  ;;  %v5014_v27 = vld [vmem:[%s5185_s29 + $0xb4] sm:$0xff] }
 0x22b   : > { %v2561_v19 = vrot.slane %v5092_v50, 5  ;;  %v3470_v54 = vshll.u32 %v4894_v62, 16  ;;  %v3476_v60 = vshll.u32 %v6386_v1, 16  ;;  %v3542_v15 = vunpack.c.l.b16 %v3455_v4 }
 0x22c   : > { %v4176_v33 = vmax.f32 %v4144_v58, 0.0  ;;  %v4039_v63 = vpop.f32.mrf.mxu0  ;;  %v2620_v23 = vpack.c.b16 %v2602_v14, %v2601_v0  ;;  %v4930_v58 = vld [vmem:[%s5185_s29 + $0xb4] sm:$0xe]  ;;  %v3469_v16 = vrot.slane %v3467_v10, 4 }
 0x22d   : > { %v3641_v52 = vpop.f32.mrf.mxu3  ;;  %4848 = vmatmul.msk.bf16.gmra.mxu2 %vm709_vm4, %v5013_v43  ;;  %v2705_v53 = vpop.f32.mrf.mxu1  ;;  %v3958_v43 = vpack.c.b16 %v3939_v30, %v3938_v2  ;;  %v4946_v57 = vrot.slane %v4930_v58, 9  ;;  %v3472_v14 = vrot.slane %v3470_v54, 5 }
 0x22e   : > { %v4208_v39 = vpack.c.bf16 %v4176_v33, %v4176_v33  ;;  %v3711_v22 = vadd.f32 %v3641_v52, %v3057_v41  ;;  %v3893_v41 = vrot.slane %v6334_v3, 5  ;;  %v3480_v52 = vshrl.u32 %v6386_v1, 16 }
 0x22f   : > { %v3543_v3 = vunpack.c.l.b16 %v3465_v42  ;;  %v3473_v50 = vor.u32 %v3472_v14, %v3469_v16  ;;  %v4931_v16 = vld [vmem:[%s5185_s29 + $0xc0] sm:$0xe]  ;;  %v6428_v14 = vld [vmem:[%s5185_s29 + $0xd0] sm:$0xf] }
 0x230   : > { %4241 = vst.msk [vmem:[%s6230_s20 + $0x18] sm:$0xf] %vm4234_vm8, %v4208_v39  ;;  %v4109_v48 = vadd.f32 %v4039_v63, %v3711_v22  ;;  %v2990_v13 = vpop.f32.mrf.mxu2  ;;  %v4704_v63 = vld [vmem:[%s5185_s29 + $0xb4] sm:$0xe]  ;;  %v3896_v39 = vrot.slane %v6358_v8, 5  ;;  %v3895_v59 = vrot.slane %v3893_v41, 4  ;;  %v3894_v42 = vsel %vm5371_vm7, %v4946_v57, %v3893_v41 }
 0x231   : > { %v3058_v56 = vadd.f32 %v2990_v13, %v2771_v20  ;;  %v2563_v20 = vrot.slane %v2561_v19, 4  ;;  %v5093_v13 = vld [vmem:[%s5185_s29 + $0xbc] sm:$0x1] }
 0x232   : > { %v4145_v55 = vadd.f32 %v6203_v6, %v4109_v48  ;;  %4913 = vmatmul.msk.bf16.gmra.mxu3 %vm709_vm4, %v3560_v12  ;;  %v6585_v12 = vld [vmem:[#allocation2_spill] sm:$0xff]  ;;  %v4720_v48 = vrot.slane %v4704_v63, 9  ;;  %v2564_v0 = vrot.slane %v5093_v13, 5  ;;  %v3940_v63 = vunpack.c.l.b16 %v3894_v42 }
 0x233   : > { %v2772_v2 = vadd.f32 %v2705_v53, %v6585_v12  ;;  %v3900_v13 = vrot.slane %v6386_v1, 5  ;;  %v4705_v1 = vld [vmem:[%s5185_s29 + $0xc0] sm:$0xe] }
 0x234   : > { %v4177_v40 = vmax.f32 %v4145_v55, 0.0  ;;  %v4042_v29 = vpop.f32.mrf.mxu0  ;;  %v6403_v55 = vrot.slane %v3476_v60, 5  ;;  %v2562_v10 = vsel %vm5371_vm7, %v4720_v48, %v2561_v19 }
 0x235   : > { %v3644_v51 = vpop.f32.mrf.mxu3  ;;  %v2708_v31 = vpop.f32.mrf.mxu1  ;;  %v2603_v57 = vunpack.c.l.b16 %v2562_v10 }
 0x236   : > { %v4209_v34 = vpack.c.bf16 %v4177_v40, %v4177_v40  ;;  %v3712_v33 = vadd.f32 %v3644_v51, %v3058_v56  ;;  %v3482_v56 = vrot.slane %v3480_v52, 4  ;;  %v3897_v40 = vsel %vm5371_vm7, %v3895_v59, %v3896_v39 }
 0x237   : > { %4962 = vmatmul.msk.bf16.gmra.mxu0 %vm709_vm4, %v3958_v43  ;;  %v6406_v43 = vld [vmem:[%s5185_s29 + $0xc8] sm:$0x1]  ;;  %v2565_v51 = vsel %vm5371_vm7, %v2563_v20, %v2564_v0  ;;  %v3941_v60 = vunpack.c.l.b16 %v3897_v40  ;;  %v4897_v0 = vld [vmem:[%s5185_s29 + $0xcc] sm:$0xf] }
 0x238   : > { %4242 = vst.msk [vmem:[%s6230_s20 + $0x1c] sm:$0xf] %vm4234_vm8, %v4209_v34  ;;  %v4110_v22 = vadd.f32 %v4042_v29, %v3712_v33  ;;  %v2992_v30 = vpop.f32.mrf.mxu2  ;;  %4736 = vmatmul.msk.bf16.gmra.mxu1 %vm709_vm4, %v2620_v23  ;;  %v3561_v23 = vpack.c.b16 %v3543_v3, %v3542_v15  ;;  %v3483_v33 = vor.u32 %v3482_v56, %v6403_v55  ;;  %v3486_v41 = vshll.u32 %v6406_v43, 16  ;;  %v6586_v15 = vld [vmem:[#allocation3_spill] sm:$0xff] }
 0x239   : > { %v3059_v8 = vadd.f32 %v2992_v30, %v2772_v2  ;;  %v2773_v3 = vadd.f32 %v2708_v31, %v6586_v15  ;;  %v2604_v39 = vunpack.c.l.b16 %v2565_v51  ;;  %v4947_v56 = vrot.slane %v4931_v16, 9 }
 0x23a   : > { %v4146_v62 = vadd.f32 %v6203_v6, %v4110_v22  ;;  %v3474_v22 = vrot.slane %v3473_v50, 4  ;;  %v3484_v30 = vrot.slane %v3483_v33, 4  ;;  %v3488_v59 = vrot.slane %v3486_v41, 5 }
 0x23b   : > { %v2621_v31 = vpack.c.b16 %v2604_v39, %v2603_v57  ;;  %v3491_v10 = vshrl.u32 %v4897_v0, 16  ;;  %v3494_v51 = vshll.u32 %v4897_v0, 16  ;;  %v3500_v50 = vshll.u32 %v6428_v14, 16 }
 0x23c   : > { %v4178_v53 = vmax.f32 %v4146_v62, 0.0  ;;  %v4044_v4 = vpop.f32.mrf.mxu0  ;;  %v4721_v15 = vrot.slane %v4705_v1, 9 }
 0x23d   : > { %v3646_v29 = vpop.f32.mrf.mxu3  ;;  %4849 = vmatmul.msk.bf16.gmra.mxu2 %vm709_vm4, %v5014_v27  ;;  %v2710_v58 = vpop.f32.mrf.mxu1  ;;  %v3959_v27 = vpack.c.b16 %v3941_v60, %v3940_v63  ;;  %v3903_v63 = vrot.slane %v6406_v43, 5  ;;  %v5015_v60 = vld [vmem:[%s5185_s29 + $0xc0] sm:$0xff] }
 0x23e   : > { %v4210_v54 = vpack.c.bf16 %v4178_v53, %v4178_v53  ;;  %v3713_v34 = vadd.f32 %v3646_v29, %v3059_v8  ;;  %v5094_v53 = vld [vmem:[%s5185_s29 + $0xc4] sm:$0xf]  ;;  %v3479_v29 = vsel %vm5197_vm3, %v3474_v22, %v6403_v55  ;;  %v2774_v33 = vadd.f32 %v2710_v58, %v5815_v47 }
 0x23f   : > { %v3902_v55 = vrot.slane %v3900_v13, 4  ;;  %v3901_v47 = vsel %vm5371_vm7, %v4947_v56, %v3900_v13  ;;  %v3493_v58 = vrot.slane %v3491_v10, 4 }
 0x240   : > { %4243 = vst.msk [vmem:[%s6230_s20 + $0x20] sm:$0xf] %vm4234_vm8, %v4210_v54  ;;  %v4111_v52 = vadd.f32 %v4044_v4, %v3713_v34  ;;  %v2995_v19 = vpop.f32.mrf.mxu2  ;;  %v2568_v4 = vrot.slane %v5094_v53, 5  ;;  %v3504_v54 = vshrl.u32 %v6428_v14, 16 }
 0x241   : > { %v3060_v2 = vadd.f32 %v2995_v19, %v2773_v3  ;;  %v5095_v19 = vld [vmem:[%s5185_s29 + $0xc8] sm:$0x1] }
 0x242   : > { %v4147_v12 = vadd.f32 %v6203_v6, %v4111_v52  ;;  %4914 = vmatmul.msk.bf16.gmra.mxu3 %vm709_vm4, %v3561_v23  ;;  %v3489_v23 = vsel %vm5197_vm3, %v3484_v30, %v3488_v59  ;;  %v3544_v52 = vunpack.c.l.b16 %v3479_v29  ;;  %v2570_v3 = vrot.slane %v2568_v4, 4 }
 0x243   : > { %v2571_v57 = vrot.slane %v5095_v19, 5  ;;  %v3502_v30 = vrot.slane %v3500_v50, 5  ;;  %v3506_v59 = vrot.slane %v3504_v54, 4  ;;  %v2569_v0 = vsel %vm5371_vm7, %v4721_v15, %v2568_v4  ;;  %v4932_v19 = vld [vmem:[%s5185_s29 + $0xcc] sm:$0xe] }
 0x244   : > { %v4179_v48 = vmax.f32 %v4147_v12, 0.0  ;;  %v4047_v20 = vpop.f32.mrf.mxu0  ;;  %v3545_v12 = vunpack.c.l.b16 %v3489_v23  ;;  %v2605_v54 = vunpack.c.l.b16 %v2569_v0 }
 0x245   : > { %v3649_v62 = vpop.f32.mrf.mxu3  ;;  %v2713_v8 = vpop.f32.mrf.mxu1  ;;  %v2572_v13 = vsel %vm5371_vm7, %v2570_v3, %v2571_v57  ;;  %v3507_v23 = vor.u32 %v3506_v59, %v3502_v30  ;;  %v3907_v57 = vrot.slane %v6428_v14, 5 }
 0x246   : > { %v4211_v42 = vpack.c.bf16 %v4179_v48, %v4179_v48  ;;  %v3714_v40 = vadd.f32 %v3649_v62, %v3060_v2  ;;  %v3496_v2 = vrot.slane %v3494_v51, 5  ;;  %v4899_v48 = vld [vmem:[%s5185_s29 + $0xd4] sm:$0x1]  ;;  %v3562_v53 = vpack.c.b16 %v3545_v12, %v3544_v52 }
 0x247   : > { %4963 = vmatmul.msk.bf16.gmra.mxu0 %vm709_vm4, %v3959_v27  ;;  %v3904_v27 = vsel %vm5371_vm7, %v3902_v55, %v3903_v63  ;;  %v3510_v1 = vshll.u32 %v4899_v48, 16  ;;  %v2775_v51 = vadd.f32 %v2713_v8, %v5826_v35  ;;  %v2606_v4 = vunpack.c.l.b16 %v2572_v13 }
 0x248   : > { %4244 = vst.msk [vmem:[%s6230_s20 + $0x24] sm:$0xf] %vm4234_vm8, %v4211_v42  ;;  %v4112_v34 = vadd.f32 %v4047_v20, %v3714_v40  ;;  %v2997_v41 = vpop.f32.mrf.mxu2  ;;  %4737 = vmatmul.msk.bf16.gmra.mxu1 %vm709_vm4, %v2621_v31  ;;  %v3942_v42 = vunpack.c.l.b16 %v3901_v47  ;;  %v3943_v40 = vunpack.c.l.b16 %v3904_v27  ;;  %v3497_v29 = vor.u32 %v3496_v2, %v3493_v58  ;;  %v5016_v27 = vld [vmem:[%s5185_s29 + $0xcc] sm:$0xff] }
 0x249   : > { %v3061_v22 = vadd.f32 %v2997_v41, %v2774_v33  ;;  %v3508_v63 = vrot.slane %v3507_v23, 4  ;;  %v2622_v3 = vpack.c.b16 %v2606_v4, %v2605_v54  ;;  %v4948_v58 = vrot.slane %v4932_v19, 9 }
 0x24a   : > { %v4148_v39 = vadd.f32 %v6203_v6, %v4112_v34  ;;  %v3960_v41 = vpack.c.b16 %v3943_v40, %v3942_v42  ;;  %v3498_v55 = vrot.slane %v3497_v29, 4 }
 0x24c   : > { %v4180_v16 = vmax.f32 %v4148_v39, 0.0  ;;  %v4049_v43 = vpop.f32.mrf.mxu0  ;;  %v3503_v12 = vsel %vm5197_vm3, %v3498_v55, %v3502_v30 }
 0x24d   : > { %v3651_v20 = vpop.f32.mrf.mxu3  ;;  %4850 = vmatmul.msk.bf16.gmra.mxu2 %vm709_vm4, %v5015_v60  ;;  %v2715_v31 = vpop.f32.mrf.mxu1  ;;  %v3512_v60 = vrot.slane %v3510_v1, 5  ;;  %v3546_v30 = vunpack.c.l.b16 %v3503_v12 }
 0x24e   : > { %v4212_v62 = vpack.c.bf16 %v4180_v16, %v4180_v16  ;;  %v3715_v56 = vadd.f32 %v3651_v20, %v3061_v22  ;;  %v2776_v59 = vadd.f32 %v2715_v31, %v5842_v21  ;;  %v3909_v16 = vrot.slane %v3907_v57, 4 }
 0x24f   : > { %v3513_v47 = vsel %vm5197_vm3, %v3508_v63, %v3512_v60 }
 0x250   : > { %4245 = vst.msk [vmem:[%s6230_s20 + $0x28] sm:$0xf] %vm4234_vm8, %v4212_v62  ;;  %v4113_v10 = vadd.f32 %v4049_v43, %v3715_v56  ;;  %v3000_v50 = vpop.f32.mrf.mxu2  ;;  %v3910_v43 = vrot.slane %v4899_v48, 5  ;;  %v3547_v13 = vunpack.c.l.b16 %v3513_v47  ;;  %v3908_v56 = vsel %vm5371_vm7, %v4948_v58, %v3907_v57 }
 0x251   : > { %v3062_v33 = vadd.f32 %v3000_v50, %v2775_v51  ;;  %v3944_v29 = vunpack.c.l.b16 %v3908_v56 }
 0x252   : > { %v4149_v34 = vadd.f32 %v6203_v6, %v4113_v10  ;;  %4915 = vmatmul.msk.bf16.gmra.mxu3 %vm709_vm4, %v3562_v53  ;;  %v3911_v21 = vsel %vm5371_vm7, %v3909_v16, %v3910_v43  ;;  %v3563_v40 = vpack.c.b16 %v3547_v13, %v3546_v30 }
 0x253   : > { %v3945_v23 = vunpack.c.l.b16 %v3911_v21 }
 0x254   : > { %v4181_v52 = vmax.f32 %v4149_v34, 0.0  ;;  %v4052_v15 = vpop.f32.mrf.mxu0 }
 0x255   : > { %v3654_v35 = vpop.f32.mrf.mxu3  ;;  %v2718_v8 = vpop.f32.mrf.mxu1  ;;  %v3961_v54 = vpack.c.b16 %v3945_v23, %v3944_v29 }
 0x256   : > { %v4213_v39 = vpack.c.bf16 %v4181_v52, %v4181_v52  ;;  %v3716_v22 = vadd.f32 %v3654_v35, %v3062_v33  ;;  %v2777_v10 = vadd.f32 %v2718_v8, %v5860_v7 }
 0x257   : > { %4964 = vmatmul.msk.bf16.gmra.mxu0 %vm709_vm4, %v3960_v41 }
 0x258   : > { %4246 = vst.msk [vmem:[%s6230_s20 + $0x2c] sm:$0xf] %vm4234_vm8, %v4213_v39  ;;  %v4114_v2 = vadd.f32 %v4052_v15, %v3716_v22  ;;  %v3002_v14 = vpop.f32.mrf.mxu2  ;;  %4738 = vmatmul.msk.bf16.gmra.mxu1 %vm709_vm4, %v2622_v3 }
 0x259   : > { %v3063_v0 = vadd.f32 %v3002_v14, %v2776_v59 }
 0x25a   : > { %v4150_v20 = vadd.f32 %v6203_v6, %v4114_v2 }
 0x25c   : > { %v4182_v36 = vmax.f32 %v4150_v20, 0.0  ;;  %v4054_v62 = vpop.f32.mrf.mxu0 }
 0x25d   : > { %v3656_v31 = vpop.f32.mrf.mxu3  ;;  %4851 = vmatmul.msk.bf16.gmra.mxu2 %vm709_vm4, %v5016_v27  ;;  %v2720_v53 = vpop.f32.mrf.mxu1 }
 0x25e   : > { %v4214_v48 = vpack.c.bf16 %v4182_v36, %v4182_v36  ;;  %v3717_v42 = vadd.f32 %v3656_v31, %v3063_v0  ;;  %v2778_v7 = vadd.f32 %v2720_v53, %v5880_v37 }
 0x260   : > { %4247 = vst.msk [vmem:[%s6230_s20 + $0x30] sm:$0xf] %vm4234_vm8, %v4214_v48  ;;  %v4115_v1 = vadd.f32 %v4054_v62, %v3717_v42  ;;  %v3005_v51 = vpop.f32.mrf.mxu2 }
 0x261   : > { %v3064_v18 = vadd.f32 %v3005_v51, %v2777_v10 }
 0x262   : > { %v4151_v50 = vadd.f32 %v6203_v6, %v4115_v1  ;;  %4916 = vmatmul.msk.bf16.gmra.mxu3 %vm709_vm4, %v3563_v40 }
 0x264   : > { %v4183_v4 = vmax.f32 %v4151_v50, 0.0  ;;  %v4057_v34 = vpop.f32.mrf.mxu0 }
 0x265   : > { %v3659_v33 = vpop.f32.mrf.mxu3  ;;  %v2723_v41 = vpop.f32.mrf.mxu1 }
 0x266   : > { %v4215_v55 = vpack.c.bf16 %v4183_v4, %v4183_v4  ;;  %v3718_v63 = vadd.f32 %v3659_v33, %v3064_v18  ;;  %v2779_v47 = vadd.f32 %v2723_v41, %v5899_v11 }
 0x267   : > { %4965 = vmatmul.msk.bf16.gmra.mxu0 %vm709_vm4, %v3961_v54 }
 0x268   : > { %4248 = vst.msk [vmem:[%s6230_s20 + $0x34] sm:$0xf] %vm4234_vm8, %v4215_v55  ;;  %v4116_v60 = vadd.f32 %v4057_v34, %v3718_v63  ;;  %v3007_v52 = vpop.f32.mrf.mxu2 }
 0x269   : > { %v3065_v3 = vadd.f32 %v3007_v52, %v2778_v7 }
 0x26a   : > { %v4152_v15 = vadd.f32 %v6203_v6, %v4116_v60 }
 0x26c   : > { %v4184_v19 = vmax.f32 %v4152_v15, 0.0  ;;  %v4059_v57 = vpop.f32.mrf.mxu0 }
 0x26d   : > { %v3661_v35 = vpop.f32.mrf.mxu3  ;;  %v2725_v8 = vpop.f32.mrf.mxu1 }
 0x26e   : > { %v4216_v39 = vpack.c.bf16 %v4184_v19, %v4184_v19  ;;  %v3719_v22 = vadd.f32 %v3661_v35, %v3065_v3  ;;  %v2780_v30 = vadd.f32 %v2725_v8, %v5920_v9 }
 0x270   : > { %4249 = vst.msk [vmem:[%s6230_s20 + $0x38] sm:$0xf] %vm4234_vm8, %v4216_v39  ;;  %v4117_v12 = vadd.f32 %v4059_v57, %v3719_v22  ;;  %v3010_v58 = vpop.f32.mrf.mxu2 }
 0x271   : > { %v3066_v37 = vadd.f32 %v3010_v58, %v2779_v47 }
 0x272   : > { %v4153_v2 = vadd.f32 %v6203_v6, %v4117_v12 }
 0x274   : > { %v4185_v59 = vmax.f32 %v4153_v2, 0.0  ;;  %v4062_v14 = vpop.f32.mrf.mxu0 }
 0x275   : > { %v3664_v16 = vpop.f32.mrf.mxu3  ;;  %v2728_v43 = vpop.f32.mrf.mxu1 }
 0x276   : > { %v4217_v27 = vpack.c.bf16 %v4185_v59, %v4185_v59  ;;  %v3720_v20 = vadd.f32 %v3664_v16, %v3066_v37  ;;  %v2781_v40 = vadd.f32 %v2728_v43, %v5938_v17  ;;  %v6509_v17 = vld [vmem:[%s6576_s2] ss:$0 sm:$0xff] }
 0x278   : > { %4250 = vst.msk [vmem:[%s6230_s20 + $0x3c] sm:$0xf] %vm4234_vm8, %v4217_v27  ;;  %v4118_v0 = vadd.f32 %v4062_v14, %v3720_v20  ;;  %v3012_v13 = vpop.f32.mrf.mxu2 }
 0x279   : > { %v3067_v11 = vadd.f32 %v3012_v13, %v2780_v30 }
 0x27a   : > { %v4154_v36 = vadd.f32 %v6203_v6, %v4118_v0 }
 0x27c   : > { %v4186_v62 = vmax.f32 %v4154_v36, 0.0  ;;  %v4064_v56 = vpop.f32.mrf.mxu0 }
 0x27d   : > { %v3666_v21 = vpop.f32.mrf.mxu3  ;;  %v2730_v31 = vpop.f32.mrf.mxu1 }
 0x27e   : > { %v4218_v53 = vpack.c.bf16 %v4186_v62, %v4186_v62  ;;  %v3721_v48 = vadd.f32 %v3666_v21, %v3067_v11  ;;  %v2782_v34 = vadd.f32 %v2730_v31, %v5958_v26 }
 0x280   : > { %4251 = vst.msk [vmem:[%s6230_s20 + $0x40] sm:$0xf] %vm4234_vm8, %v4218_v53  ;;  %v4119_v42 = vadd.f32 %v4064_v56, %v3721_v48  ;;  %v3015_v29 = vpop.f32.mrf.mxu2 }
 0x281   : > { %v3068_v9 = vadd.f32 %v3015_v29, %v2781_v40 }
 0x282   : > { %v4155_v23 = vadd.f32 %v6203_v6, %v4119_v42 }
 0x284   : > { %v4187_v1 = vmax.f32 %v4155_v23, 0.0  ;;  %v4067_v10 = vpop.f32.mrf.mxu0 }
 0x285   : > { %v3669_v51 = vpop.f32.mrf.mxu3  ;;  %v2733_v50 = vpop.f32.mrf.mxu1 }
 0x286   : > { %v4219_v18 = vpack.c.bf16 %v4187_v1, %v4187_v1  ;;  %v3722_v54 = vadd.f32 %v3669_v51, %v3068_v9  ;;  %v2783_v26 = vadd.f32 %v2733_v50, %v5977_v25 }
 0x288   : > { %4252 = vst.msk [vmem:[%s6230_s20 + $0x44] sm:$0xf] %vm4234_vm8, %v4219_v18  ;;  %v4120_v4 = vadd.f32 %v4067_v10, %v3722_v54  ;;  %v3017_v33 = vpop.f32.mrf.mxu2 }
 0x289   : > { %v3069_v41 = vadd.f32 %v3017_v33, %v2782_v34 }
 0x28a   : > { %v4156_v6 = vadd.f32 %v6509_v17, %v4120_v4 }
 0x28c   : > { %v4188_v55 = vmax.f32 %v4156_v6, 0.0  ;;  %v4069_v63 = vpop.f32.mrf.mxu0 }
 0x28d   : > { %v3671_v60 = vpop.f32.mrf.mxu3  ;;  %v2735_v7 = vpop.f32.mrf.mxu1 }
 0x28e   : > { %v4220_v52 = vpack.c.bf16 %v4188_v55, %v4188_v55  ;;  %v3723_v15 = vadd.f32 %v3671_v60, %v3069_v41  ;;  %v2784_v37 = vadd.f32 %v2735_v7, %v5998_v28 }
 0x290   : > { %4253 = vst.msk [vmem:[%s6230_s20 + $0x48] sm:$0xf] %vm4234_vm8, %v4220_v52  ;;  %v4121_v3 = vadd.f32 %v4069_v63, %v3723_v15  ;;  %v3020_v19 = vpop.f32.mrf.mxu2 }
 0x291   : > { %v3070_v35 = vadd.f32 %v3020_v19, %v2783_v26 }
 0x292   : > { %v4157_v57 = vadd.f32 %v6509_v17, %v4121_v3 }
 0x294   : > { %v4189_v8 = vmax.f32 %v4157_v57, 0.0  ;;  %v4072_v39 = vpop.f32.mrf.mxu0 }
 0x295   : > { %v3674_v22 = vpop.f32.mrf.mxu3  ;;  %v2738_v12 = vpop.f32.mrf.mxu1 }
 0x296   : > { %v4221_v47 = vpack.c.bf16 %v4189_v8, %v4189_v8  ;;  %v3724_v58 = vadd.f32 %v3674_v22, %v3070_v35  ;;  %v2785_v36 = vadd.f32 %v2738_v12, %v6016_v38 }
 0x298   : > { %4254 = vst.msk [vmem:[%s6230_s20 + $0x4c] sm:$0xf] %vm4234_vm8, %v4221_v47  ;;  %v4122_v2 = vadd.f32 %v4072_v39, %v3724_v58  ;;  %v3022_v59 = vpop.f32.mrf.mxu2 }
 0x299   : > { %v3071_v25 = vadd.f32 %v3022_v59, %v2784_v37 }
 0x29a   : > { %v4158_v14 = vadd.f32 %v6509_v17, %v4122_v2 }
 0x29c   : > { %v4190_v16 = vmax.f32 %v4158_v14, 0.0  ;;  %v4074_v43 = vpop.f32.mrf.mxu0 }
 0x29d   : > { %v3676_v27 = vpop.f32.mrf.mxu3  ;;  %v2740_v20 = vpop.f32.mrf.mxu1 }
 0x29e   : > { %v4222_v0 = vpack.c.bf16 %v4190_v16, %v4190_v16  ;;  %v3725_v30 = vadd.f32 %v3676_v27, %v3071_v25  ;;  %v2786_v29 = vadd.f32 %v2740_v20, %v6036_v49 }
 0x2a0   : > { %4255 = vst.msk [vmem:[%s6230_s20 + $0x50] sm:$0xf] %vm4234_vm8, %v4222_v0  ;;  %v4123_v13 = vadd.f32 %v4074_v43, %v3725_v30  ;;  %v3025_v11 = vpop.f32.mrf.mxu2 }
 0x2a1   : > { %v3072_v28 = vadd.f32 %v3025_v11, %v2785_v36 }
 0x2a2   : > { %v4159_v62 = vadd.f32 %v6509_v17, %v4123_v13 }
 0x2a4   : > { %v4191_v56 = vmax.f32 %v4159_v62, 0.0  ;;  %v4077_v21 = vpop.f32.mrf.mxu0 }
 0x2a5   : > { %v3679_v31 = vpop.f32.mrf.mxu3  ;;  %v2743_v53 = vpop.f32.mrf.mxu1 }
 0x2a6   : > { %v4223_v48 = vpack.c.bf16 %v4191_v56, %v4191_v56  ;;  %v3726_v42 = vadd.f32 %v3679_v31, %v3072_v28  ;;  %v2787_v34 = vadd.f32 %v2743_v53, %v6055_v44  ;;  %v6587_v31 = vld [vmem:[#allocation4_spill] sm:$0xff] }
 0x2a8   : > { %4256 = vst.msk [vmem:[%s6230_s20 + $0x54] sm:$0xf] %vm4234_vm8, %v4223_v48  ;;  %v4124_v40 = vadd.f32 %v4077_v21, %v3726_v42  ;;  %v3027_v23 = vpop.f32.mrf.mxu2 }
 0x2a9   : > { %v3073_v38 = vadd.f32 %v3027_v23, %v2786_v29 }
 0x2aa   : > { %v4160_v9 = vadd.f32 %v6509_v17, %v4124_v40 }
 0x2ac   : > { %v4192_v1 = vmax.f32 %v4160_v9, 0.0  ;;  %v4079_v10 = vpop.f32.mrf.mxu0 }
 0x2ad   : > { %v3681_v51 = vpop.f32.mrf.mxu3  ;;  %v2745_v50 = vpop.f32.mrf.mxu1 }
 0x2ae   : > { %v4224_v18 = vpack.c.bf16 %v4192_v1, %v4192_v1  ;;  %v3727_v54 = vadd.f32 %v3681_v51, %v3073_v38  ;;  %v2788_v3 = vadd.f32 %v2745_v50, %v6076_v61 }
 0x2b0   : > { %4257 = vst.msk [vmem:[%s6230_s20 + $0x58] sm:$0xf] %vm4234_vm8, %v4224_v18  ;;  %v4125_v4 = vadd.f32 %v4079_v10, %v3727_v54  ;;  %v3030_v33 = vpop.f32.mrf.mxu2 }
 0x2b1   : > { %v3074_v49 = vadd.f32 %v3030_v33, %v2787_v34 }
 0x2b2   : > { %v4161_v6 = vadd.f32 %v6509_v17, %v4125_v4 }
 0x2b4   : > { %v4193_v41 = vmax.f32 %v4161_v6, 0.0  ;;  %v4082_v55 = vpop.f32.mrf.mxu0 }
 0x2b5   : > { %v3684_v63 = vpop.f32.mrf.mxu3  ;;  %v2748_v60 = vpop.f32.mrf.mxu1 }
 0x2b6   : > { %v4225_v7 = vpack.c.bf16 %v4193_v41, %v4193_v41  ;;  %v3728_v52 = vadd.f32 %v3684_v63, %v3074_v49  ;;  %v2789_v58 = vadd.f32 %v2748_v60, %v6094_v24 }
 0x2b8   : > { %4258 = vst.msk [vmem:[%s6230_s20 + $0x5c] sm:$0xf] %vm4234_vm8, %v4225_v7  ;;  %v4126_v15 = vadd.f32 %v4082_v55, %v3728_v52  ;;  %v3032_v26 = vpop.f32.mrf.mxu2 }
 0x2b9   : > { %v3075_v44 = vadd.f32 %v3032_v26, %v2788_v3 }
 0x2ba   : > { %v4162_v19 = vadd.f32 %v6509_v17, %v4126_v15 }
 0x2bc   : > { %v4194_v57 = vmax.f32 %v4162_v19, 0.0  ;;  %v4084_v35 = vpop.f32.mrf.mxu0 }
 0x2bd   : > { %v3686_v8 = vpop.f32.mrf.mxu3  ;;  %v2750_v39 = vpop.f32.mrf.mxu1 }
 0x2be   : > { %v4226_v22 = vpack.c.bf16 %v4194_v57, %v4194_v57  ;;  %v3729_v12 = vadd.f32 %v3686_v8, %v3075_v44  ;;  %v2790_v0 = vadd.f32 %v2750_v39, %v6120_v5 }
 0x2c0   : > { %4259 = vst.msk [vmem:[%s6230_s20 + $0x60] sm:$0xf] %vm4234_vm8, %v4226_v22  ;;  %v4127_v47 = vadd.f32 %v4084_v35, %v3729_v12  ;;  %v3035_v2 = vpop.f32.mrf.mxu2 }
 0x2c1   : > { %v3076_v61 = vadd.f32 %v3035_v2, %v2789_v58 }
 0x2c2   : > { %v4163_v37 = vadd.f32 %v6509_v17, %v4127_v47 }
 0x2c4   : > { %v4195_v59 = vmax.f32 %v4163_v37, 0.0  ;;  %v4087_v14 = vpop.f32.mrf.mxu0 }
 0x2c5   : > { %v3689_v25 = vpop.f32.mrf.mxu3  ;;  %v2753_v27 = vpop.f32.mrf.mxu1 }
 0x2c6   : > { %v4227_v16 = vpack.c.bf16 %v4195_v59, %v4195_v59  ;;  %v3730_v43 = vadd.f32 %v3689_v25, %v3076_v61  ;;  %v2791_v53 = vadd.f32 %v2753_v27, %v6587_v31 }
 0x2c8   : > { %4260 = vst.msk [vmem:[%s6230_s20 + $0x64] sm:$0xf] %vm4234_vm8, %v4227_v16  ;;  %v4128_v20 = vadd.f32 %v4087_v14, %v3730_v43  ;;  %v3037_v30 = vpop.f32.mrf.mxu2 }
 0x2c9   : > { %v3077_v24 = vadd.f32 %v3037_v30, %v2790_v0 }
 0x2ca   : > { %v4164_v13 = vadd.f32 %v6509_v17, %v4128_v20 }
 0x2cc   : > { %v4196_v36 = vmax.f32 %v4164_v13, 0.0  ;;  %v4089_v11 = vpop.f32.mrf.mxu0 }
 0x2cd   : > { %v3691_v62 = vpop.f32.mrf.mxu3  ;;  %v2755_v42 = vpop.f32.mrf.mxu1 }
 0x2ce   : > { %v4228_v28 = vpack.c.bf16 %v4196_v36, %v4196_v36  ;;  %v3731_v56 = vadd.f32 %v3691_v62, %v3077_v24  ;;  %v2792_v51 = vadd.f32 %v2755_v42, %v6159_v45 }
 0x2d0   : > { %4261 = vst.msk [vmem:[%s6230_s20 + $0x68] sm:$0xf] %vm4234_vm8, %v4228_v28  ;;  %v4129_v21 = vadd.f32 %v4089_v11, %v3731_v56  ;;  %v3040_v48 = vpop.f32.mrf.mxu2 }
 0x2d1   : > { %v3078_v5 = vadd.f32 %v3040_v48, %v2791_v53 }
 0x2d2   : > { %v4165_v40 = vadd.f32 %v6509_v17, %v4129_v21 }
 0x2d4   : > { %v4197_v29 = vmax.f32 %v4165_v40, 0.0  ;;  %v4092_v23 = vpop.f32.mrf.mxu0 }
 0x2d5   : > { %v3694_v9 = vpop.f32.mrf.mxu3  ;;  %v2758_v4 = vpop.f32.mrf.mxu1 }
 0x2d6   : > { %v4229_v38 = vpack.c.bf16 %v4197_v29, %v4197_v29  ;;  %v3732_v1 = vadd.f32 %v3694_v9, %v3078_v5  ;;  %v2793_v63 = vadd.f32 %v2758_v4, %v6174_v32 }
 0x2d8   : > { %4262 = vst.msk [vmem:[%s6230_s20 + $0x6c] sm:$0xf] %vm4234_vm8, %v4229_v38  ;;  %v4130_v10 = vadd.f32 %v4092_v23, %v3732_v1  ;;  %v3042_v50 = vpop.f32.mrf.mxu2 }
 0x2d9   : > { %v3079_v54 = vadd.f32 %v3042_v50, %v2792_v51 }
 0x2da   : > { %v4166_v18 = vadd.f32 %v6509_v17, %v4130_v10 }
 0x2dc   : > { %v4198_v34 = vmax.f32 %v4166_v18, 0.0  ;;  %v4094_v33 = vpop.f32.mrf.mxu0 }
 0x2dd   : > { %v3696_v6 = vpop.f32.mrf.mxu3  ;;  %v2760_v15 = vpop.f32.mrf.mxu1 }
 0x2de   : > { %v4230_v49 = vpack.c.bf16 %v4198_v34, %v4198_v34  ;;  %v3733_v41 = vadd.f32 %v3696_v6, %v3079_v54  ;;  %v2794_v35 = vadd.f32 %v2760_v15, %v6195_v46 }
 0x2e0   : > { %4263 = vst.msk [vmem:[%s6230_s20 + $0x70] sm:$0xf] %vm4234_vm8, %v4230_v49  ;;  %v4131_v55 = vadd.f32 %v4094_v33, %v3733_v41  ;;  %v3045_v60 = vpop.f32.mrf.mxu2 }
 0x2e1   : > { %v3080_v45 = vadd.f32 %v3045_v60, %v2793_v63 }
 0x2e2   : > { %v4167_v7 = vadd.f32 %v6509_v17, %v4131_v55 }
 0x2e4   : > { %v4199_v52 = vmax.f32 %v4167_v7, 0.0  ;;  %v4097_v3 = vpop.f32.mrf.mxu0 }
 0x2e5   : > { %v3699_v26 = vpop.f32.mrf.mxu3 }
 0x2e6   : > { %v4231_v19 = vpack.c.bf16 %v4199_v52, %v4199_v52  ;;  %v3734_v44 = vadd.f32 %v3699_v26, %v3080_v45 }
 0x2e8   : > { %4264 = vst.msk [vmem:[%s6230_s20 + $0x74] sm:$0xf] %vm4234_vm8, %v4231_v19  ;;  %v4132_v57 = vadd.f32 %v4097_v3, %v3734_v44  ;;  %v3047_v8 = vpop.f32.mrf.mxu2 }
 0x2e9   : > { %v3081_v39 = vadd.f32 %v3047_v8, %v2794_v35 }
 0x2ea   : > { %v4168_v32 = vadd.f32 %v6509_v17, %v4132_v57 }
 0x2ec   : > { %v4200_v22 = vmax.f32 %v4168_v32, 0.0  ;;  %v4099_v2 = vpop.f32.mrf.mxu0 }
 0x2ed   : > { %v3701_v12 = vpop.f32.mrf.mxu3 }
 0x2ee   : > { %v4232_v47 = vpack.c.bf16 %v4200_v22, %v4200_v22  ;;  %v3735_v58 = vadd.f32 %v3701_v12, %v3081_v39 }
 0x2f0   : > { %4265 = vst.msk [vmem:[%s6230_s20 + $0x78] sm:$0xf] %vm4234_vm8, %v4232_v47  ;;  %v4133_v37 = vadd.f32 %v4099_v2, %v3735_v58 }
 0x2f2   : > { %v4169_v61 = vadd.f32 %v6509_v17, %v4133_v37 }
 0x2f4   : > { %v4201_v59 = vmax.f32 %v4169_v61, 0.0 }
 0x2f6   : > { %v4233_v14 = vpack.c.bf16 %v4201_v59, %v4201_v59 }
 0x2f8   : > { %4266 = vst.msk [vmem:[%s6230_s20 + $0x7c] sm:$0xf] %vm4234_vm8, %v4233_v14 }
 0x2f9 PF: > { %s13_s14 = sadd.s32 1, %s5119_s14   ;;  %s6588_s12 = smov %s5115_s13 }
 0x2fa   : > { %p10_p5 = scmp.ge.s32.totalorder %s13_s14, 4   ;;  %s6589_s13 = smov %s6591_s15 }
 0x2fc   :  { %12 = sbr.rel (!%p10_p5) target bundleno = 2 (0x2), region = 78 }

</bundles_post_ra>
